<compile_context>
chip_gen: v6e
topology: v6e:2x2x1
jax: 0.10.0
libtpu: 0.0.40
codegen_flags: <defaults>
</compile_context>

<pallas_src>
import functools

import numpy as np
import jax
import jax.numpy as jnp
from jax import lax
from jax.experimental import pallas as pl
from jax.experimental.pallas import tpu as pltpu


# ----------------------------------------------------------------------------
# Pallas kernel: full encoder forward for one batch tile, VMEM-resident.
# ----------------------------------------------------------------------------
def _encoder_kernel(patches_ref, w1_ref, w2_ref, b2_ref, wd_ref, bd_ref,
                    wh_ref, bh_ref, z_ref, *, tb, n_q, n_p):
    """patches_ref rows are ordered (conv2-tap q, conv2-output position p,
    sample b); every slice below is a contiguous, 8-aligned row block."""
    f32 = jnp.float32
    F1 = w1_ref.shape[1]            # conv1 filters
    F2 = w2_ref.shape[1]            # conv2 filters
    rows_q = n_p * tb               # rows per conv2-tap block (multiple of 8)

    w1 = w1_ref[...]                # [128, F1] bf16 (im2col weight + bias row)

    # conv1 (im2col matmul; bias via the indicator column so conv2's zero
    # padding of the post-ReLU conv1 output stays exactly zero) fused with the
    # conv2 accumulation over its k*k taps.
    acc2 = jnp.zeros((rows_q, F2), f32)
    for q in range(n_q):
        p_q = patches_ref[q * rows_q:(q + 1) * rows_q, :]          # [rows_q, 128] bf16
        h1_q = jnp.dot(p_q, w1, preferred_element_type=f32)        # conv1 @ tap q
        h1_q = jnp.maximum(h1_q, 0.0)                              # ReLU(conv1)
        w2_q = w2_ref[q * F1:(q + 1) * F1, :].astype(f32)          # [F1, F2]
        acc2 = acc2 + jnp.dot(h1_q, w2_q, preferred_element_type=f32)
    h2 = jnp.maximum(acc2 + b2_ref[...], 0.0)                      # [n_p*tb, F2], rows=(p,b)

    # dense hidden layer; the NCHW flatten is folded into per-spatial-position
    # weight blocks (host-side permutation), so no flatten/transpose in-kernel.
    accd = jnp.zeros((tb, wd_ref.shape[1]), f32)
    for p in range(n_p):
        h2_p = h2[p * tb:(p + 1) * tb, :]                          # [tb, F2]
        wd_p = wd_ref[p * F2:(p + 1) * F2, :].astype(f32)          # [F2, Dh]
        accd = accd + jnp.dot(h2_p, wd_p, preferred_element_type=f32)
    hd = jnp.maximum(accd + bd_ref[...], 0.0)                      # [tb, Dh]

    # merged mu/logvar head, zero-padded to a lane-dense 128-wide output slab.
    z = jnp.dot(hd, wh_ref[...].astype(f32), preferred_element_type=f32) + bh_ref[...]
    z_ref[...] = z.astype(z_ref.dtype)


def encoder_forward(fused, x, batch_tile=8):
    """x: [B, C, H, W] (NCHW, like PyTorch).  Returns (mu, scale)."""
    geo = fused["geo"]
    n_q, n_p, latent = geo["n_q"], geo["n_p"], geo["latent"]
    gidx, gmask, extra = fused["gidx"], fused["gmask"], fused["extra"]
    R, K1 = gidx.shape
    K1p = fused["w1"].shape[0]
    Nh = fused["wh"].shape[1]

    B = x.shape[0]
    tb = batch_tile
    assert tb % 8 == 0, "batch tile must be a multiple of 8 (sublane alignment)"
    G = -(-B // tb)
    Bp = G * tb

    # ---- wrapper-side layout plumbing: composed im2col gather of the RAW
    # input (no arithmetic; all FLOPs stay in the kernel), bf16 cast, and
    # batch-tile-major row ordering (q, p, b) per tile.
    xf = x.reshape(B, -1).astype(jnp.float32)
    patches = jnp.take(xf, gidx.reshape(-1), axis=1).reshape(B, R, K1)
    patches = patches * gmask[None]
    patches = jnp.concatenate(
        [patches, jnp.broadcast_to(extra[None], (B, R, K1p - K1))], axis=-1)
    patches = patches.astype(jnp.bfloat16)
    if Bp > B:
        patches = jnp.concatenate(
            [patches, jnp.zeros((Bp - B, R, K1p), jnp.bfloat16)], axis=0)
    patches = patches.reshape(G, tb, R, K1p).transpose(0, 2, 1, 3)
    patches = patches.reshape(G * R * tb, K1p)

    weights = (fused["w1"], fused["w2"], fused["b2"], fused["wd"],
               fused["bd"], fused["wh"], fused["bh"])

    rows_q = n_p * tb
    F1 = fused["w1"].shape[1]
    F2 = fused["w2"].shape[1]
    Dh = fused["wd"].shape[1]
    flops_step = 2 * (n_q * rows_q * K1p * F1 + n_q * rows_q * F1 * F2
                      + n_p * tb * F2 * Dh + tb * Dh * Nh)
    bytes_step = (rows_q * n_q * K1p * 2
                  + sum(int(np.prod(w.shape)) * w.dtype.itemsize for w in weights)
                  + tb * Nh * 4)

    kernel = functools.partial(_encoder_kernel, tb=tb, n_q=n_q, n_p=n_p)
    z = pl.pallas_call(
        kernel,
        grid=(G,),
        in_specs=[pl.BlockSpec((R * tb, K1p), lambda i: (i, 0))] +
                 [pl.BlockSpec(w.shape, lambda i: (0, 0)) for w in weights],
        out_specs=pl.BlockSpec((tb, Nh), lambda i: (i, 0)),
        out_shape=jax.ShapeDtypeStruct((Bp, Nh), jnp.float32),
        compiler_params=pltpu.CompilerParams(
            dimension_semantics=("parallel",)),
        cost_estimate=pl.CostEstimate(flops=G * flops_step,
                                      transcendentals=0,
                                      bytes_accessed=G * bytes_step),
    )(patches, *weights)

    mu = z[:B, :latent]
    scale = jnp.exp(0.5 * z[:B, latent:2 * latent])
    return mu, scale
    # TODO(synk): torch.distributions.Normal has no Pallas equivalent; we
    # return its (loc, scale) parameters.


# ----------------------------------------------------------------------------
# One-time host-side parameter preparation (numpy; zero per-forward cost).
# ----------------------------------------------------------------------------
def build_fused_params(params, input_hw):
    """Build (a) composed im2col gather tables for conv1 under conv2's patch
    extraction, (b) small im2col weight matrices in bf16 (conv1 bias folded in
    via an indicator column), (c) the dense weight with the NCHW flatten folded
    in as a row permutation, and (d) the merged, 128-lane-padded mu/logvar head."""
    (w1t, b1, pad1), (w2t, b2, pad2) = params["conv"]
    w1t = np.asarray(w1t, np.float64)
    b1 = np.asarray(b1, np.float64)
    w2t = np.asarray(w2t, np.float64)
    b2 = np.asarray(b2, np.float64)
    F1, C, k1, _ = w1t.shape
    F2, _, k2, _ = w2t.shape
    H, W = input_hw
    s = 2
    H1 = (H + 2 * pad1 - k1) // s + 1
    W1 = (W + 2 * pad1 - k1) // s + 1
    H2 = (H1 + 2 * pad2 - k2) // s + 1
    W2 = (W1 + 2 * pad2 - k2) // s + 1
    n_q = k2 * k2
    n_p = H2 * W2
    K1 = C * k1 * k1
    K1p = int(np.ceil((K1 + 1) / 128.0)) * 128
    R = n_q * n_p

    gidx = np.zeros((R, K1), np.int32)
    gmask = np.zeros((R, K1), np.float32)
    extra = np.zeros((R, K1p - K1), np.float32)   # col 0 = conv2-padding indicator
    for kh2 in range(k2):
        for kw2 in range(k2):
            q = kh2 * k2 + kw2
            for ho2 in range(H2):
                for wo2 in range(W2):
                    p = ho2 * W2 + wo2
                    r = q * n_p + p
                    r1 = s * ho2 - pad2 + kh2
                    s1 = s * wo2 - pad2 + kw2
                    if not (0 <= r1 < H1 and 0 <= s1 < W1):
                        continue                  # conv2 zero-padding position
                    extra[r, 0] = 1.0
                    for c in range(C):
                        for kh1 in range(k1):
                            hi = s * r1 - pad1 + kh1
                            if hi < 0 or hi >= H:
                                continue
                            for kw1 in range(k1):
                                wi = s * s1 - pad1 + kw1
                                if wi < 0 or wi >= W:
                                    continue
                                col = (c * k1 + kh1) * k1 + kw1
                                gidx[r, col] = (c * H + hi) * W + wi
                                gmask[r, col] = 1.0

    # conv1 im2col weight [K1p, F1]; row K1 carries the bias (activated only
    # through the indicator column).
    w1m = np.zeros((K1p, F1), np.float64)
    w1m[:K1, :] = w1t.transpose(1, 2, 3, 0).reshape(K1, F1)
    w1m[K1, :] = b1

    # conv2 im2col weight, grouped per tap q: rows (q, c_in) -> cols f2.
    w2m = np.zeros((n_q * F1, F2), np.float64)
    for kh2 in range(k2):
        for kw2 in range(k2):
            q = kh2 * k2 + kw2
            w2m[q * F1:(q + 1) * F1, :] = w2t[:, :, kh2, kw2].T

    # dense weight: NCHW flatten (f2-major) re-ordered to (p, f2)-major rows.
    wd, bd = params["dense"][0]
    wd = np.asarray(wd, np.float64)
    Dh = wd.shape[1]
    wdp = np.zeros((n_p * F2, Dh), np.float64)
    for p in range(n_p):
        for f in range(F2):
            wdp[p * F2 + f, :] = wd[f * n_p + p, :]

    # merged mu/logvar head, zero-padded to a lane-dense 128-wide output.
    w_mu, b_mu = params["w_mu"]
    w_lv, b_lv = params["w_logvar"]
    latent = int(np.asarray(w_mu).shape[1])
    Nh = max(128, int(np.ceil(2 * latent / 128.0)) * 128)
    whp = np.zeros((Dh, Nh), np.float64)
    whp[:, :latent] = np.asarray(w_mu)
    whp[:, latent:2 * latent] = np.asarray(w_lv)
    bhp = np.zeros((1, Nh), np.float64)
    bhp[0, :latent] = np.asarray(b_mu)
    bhp[0, latent:2 * latent] = np.asarray(b_lv)

    wdtype = jnp.bfloat16   # bf16 weights halve weight DMA; accumulation stays f32
    return {
        "gidx": jnp.asarray(gidx),
        "gmask": jnp.asarray(gmask),
        "extra": jnp.asarray(extra),
        "w1": jnp.asarray(w1m, wdtype),
        "w2": jnp.asarray(w2m, wdtype),
        "b2": jnp.asarray(b2.reshape(1, -1), jnp.float32),
        "wd": jnp.asarray(wdp, wdtype),
        "bd": jnp.asarray(np.asarray(bd).reshape(1, -1), jnp.float32),
        "wh": jnp.asarray(whp, wdtype),
        "bh": jnp.asarray(bhp, jnp.float32),
        "geo": {"n_q": n_q, "n_p": n_p, "latent": latent},
    }


# ----------------------------------------------------------------------------
# Deterministic synthetic parameters (same structure as the PyTorch module)
# ----------------------------------------------------------------------------
def make_params(key, input_channels, input_hw, conv_flts, dense_dims, latent_dim):
    params = {"conv": [], "dense": []}
    cur_c = input_channels
    h, w = input_hw
    for cnt, f in enumerate(conv_flts):
        k = 3 if cnt == len(conv_flts) - 1 else 5
        pad = 2
        key, k1, k2 = jax.random.split(key, 3)
        wgt = jax.random.normal(k1, (f, cur_c, k, k), jnp.float32) * 0.05
        b = jax.random.normal(k2, (f,), jnp.float32) * 0.05
        params["conv"].append((wgt, b, pad))
        cur_c = f
        h = (h + 2 * pad - k) // 2 + 1
        w = (w + 2 * pad - k) // 2 + 1
    cur_d = cur_c * h * w
    for d in dense_dims:
        key, k1, k2 = jax.random.split(key, 3)
        wgt = jax.random.normal(k1, (cur_d, d), jnp.float32) * 0.05
        b = jax.random.normal(k2, (d,), jnp.float32) * 0.05
        params["dense"].append((wgt, b))
        cur_d = d
    key, k1, k2, k3, k4 = jax.random.split(key, 5)
    params["w_mu"] = (jax.random.normal(k1, (cur_d, latent_dim), jnp.float32) * 0.05,
                      jax.random.normal(k2, (latent_dim,), jnp.float32) * 0.05)
    params["w_logvar"] = (jax.random.normal(k3, (cur_d, latent_dim), jnp.float32) * 0.05,
                          jax.random.normal(k4, (latent_dim,), jnp.float32) * 0.05)
    return params


# ----------------------------------------------------------------------------
# Pure-JAX reference (uses the ORIGINAL f32 conv/dense weights).
# ----------------------------------------------------------------------------
def reference_forward(params, x):
    out = x
    for (w, b, pad) in params["conv"]:
        out = lax.conv_general_dilated(
            out, w, window_strides=(2, 2), padding=[(pad, pad), (pad, pad)],
            dimension_numbers=("NCHW", "OIHW", "NCHW"))
        out = jnp.maximum(out + b[None, :, None, None], 0.0)
    out = out.reshape(out.shape[0], -1)
    for (w, b) in params["dense"]:
        out = jnp.maximum(out @ w + b, 0.0)
    mu = out @ params["w_mu"][0] + params["w_mu"][1]
    logvar = out @ params["w_logvar"][0] + params["w_logvar"][1]
    return mu, jnp.exp(0.5 * logvar)


if __name__ == "__main__":
    # Encoder(input_channels=4, input_dim=[16,16], conv_flts=[8,16],
    #         dense_hidden_dims=[32], latent_dim=8)
    B, C, H, W = 2, 4, 16, 16
    conv_flts = [8, 16]
    dense_dims = [32]
    latent_dim = 8

    key = jax.random.PRNGKey(0)
    key, kx = jax.random.split(key)
    x = jax.random.normal(kx, (B, C, H, W), jnp.float32)
    params = make_params(key, C, (H, W), conv_flts, dense_dims, latent_dim)
    fused = build_fused_params(params, (H, W))

    fwd = jax.jit(functools.partial(encoder_forward, fused))
    mu, scale = fwd(x)
    mu, scale = jax.block_until_ready((mu, scale))

    mu_ref, scale_ref = reference_forward(params, x)
    assert mu.shape == (B, latent_dim) and scale.shape == (B, latent_dim)
    # bf16 weights / patches vs. the f32 reference -> loosened tolerance.
    assert jnp.allclose(mu, mu_ref, rtol=2e-2, atol=2e-2)
    assert jnp.allclose(scale, scale_ref, rtol=2e-2, atol=2e-2)

    print("KERNEL_OK")
</pallas_src>

<mosaic_0001>
module attributes {stable_mosaic.version = 11 : i64} {
  func.func @_encoder_kernel(%arg0: i32, %arg1: memref<1800x128xbf16, #tpu.memory_space<vmem>>, %arg2: memref<128x8xbf16, #tpu.memory_space<vmem>>, %arg3: memref<72x16xbf16, #tpu.memory_space<vmem>>, %arg4: memref<1x16xf32, #tpu.memory_space<vmem>>, %arg5: memref<400x32xbf16, #tpu.memory_space<vmem>>, %arg6: memref<1x32xf32, #tpu.memory_space<vmem>>, %arg7: memref<32x128xbf16, #tpu.memory_space<vmem>>, %arg8: memref<1x128xf32, #tpu.memory_space<vmem>>, %arg9: memref<8x128xf32, #tpu.memory_space<vmem>>) attributes {dimension_semantics = [#tpu.dimension_semantics<parallel>], iteration_bounds = array<i64: 1>, scalar_prefetch = 0 : i64, scratch_operands = 0 : i64, tpu.core_type = #tpu.core_type<tc>, window_params = [{transform_indices = @transform_0, window_bounds = array<i64: 1800, 128>}, {pipeline_mode = #tpu.pipeline_mode<synchronous>, transform_indices = @transform_1, window_bounds = array<i64: 128, 8>}, {pipeline_mode = #tpu.pipeline_mode<synchronous>, transform_indices = @transform_2, window_bounds = array<i64: 72, 16>}, {pipeline_mode = #tpu.pipeline_mode<synchronous>, transform_indices = @transform_3, window_bounds = array<i64: 1, 16>}, {pipeline_mode = #tpu.pipeline_mode<synchronous>, transform_indices = @transform_4, window_bounds = array<i64: 400, 32>}, {pipeline_mode = #tpu.pipeline_mode<synchronous>, transform_indices = @transform_5, window_bounds = array<i64: 1, 32>}, {pipeline_mode = #tpu.pipeline_mode<synchronous>, transform_indices = @transform_6, window_bounds = array<i64: 32, 128>}, {pipeline_mode = #tpu.pipeline_mode<synchronous>, transform_indices = @transform_7, window_bounds = array<i64: 1, 128>}, {transform_indices = @transform_8, window_bounds = array<i64: 8, 128>}]} {
    %c0 = arith.constant 0 : index
    %c0_0 = arith.constant 0 : index
    %0 = vector.load %arg2[%c0, %c0_0] : memref<128x8xbf16, #tpu.memory_space<vmem>>, vector<128x8xbf16>
    %cst = arith.constant 0.000000e+00 : f32
    %1 = vector.broadcast %cst : f32 to vector<200x16xf32>
    %c0_1 = arith.constant 0 : index
    %c0_2 = arith.constant 0 : index
    %2 = vector.load %arg1[%c0_1, %c0_2] : memref<1800x128xbf16, #tpu.memory_space<vmem>>, vector<200x128xbf16>
    %cst_3 = arith.constant dense<0.000000e+00> : vector<200x8xf32>
    %3 = tpu.matmul %2, %0, %cst_3 {dimension_numbers = #tpu.dot_dimension_numbers<[1], [0], [0], [1], [0, 0, 1, 1], [], []>} : vector<200x128xbf16>, vector<128x8xbf16>, vector<200x8xf32> -> vector<200x8xf32>
    %cst_4 = arith.constant 0.000000e+00 : f32
    %4 = vector.broadcast %cst_4 : f32 to vector<200x8xf32>
    %5 = arith.maximumf %3, %4 : vector<200x8xf32>
    %c0_5 = arith.constant 0 : index
    %c0_6 = arith.constant 0 : index
    %6 = vector.load %arg3[%c0_5, %c0_6] : memref<72x16xbf16, #tpu.memory_space<vmem>>, vector<8x16xbf16>
    %7 = arith.extf %6 : vector<8x16xbf16> to vector<8x16xf32>
    %cst_7 = arith.constant dense<0.000000e+00> : vector<200x16xf32>
    %8 = tpu.matmul %5, %7, %cst_7 {dimension_numbers = #tpu.dot_dimension_numbers<[1], [0], [0], [1], [0, 0, 1, 1], [], []>} : vector<200x8xf32>, vector<8x16xf32>, vector<200x16xf32> -> vector<200x16xf32>
    %9 = arith.addf %1, %8 : vector<200x16xf32>
    %c200 = arith.constant 200 : index
    %c0_8 = arith.constant 0 : index
    %10 = vector.load %arg1[%c200, %c0_8] : memref<1800x128xbf16, #tpu.memory_space<vmem>>, vector<200x128xbf16>
    %cst_9 = arith.constant dense<0.000000e+00> : vector<200x8xf32>
    %11 = tpu.matmul %10, %0, %cst_9 {dimension_numbers = #tpu.dot_dimension_numbers<[1], [0], [0], [1], [0, 0, 1, 1], [], []>} : vector<200x128xbf16>, vector<128x8xbf16>, vector<200x8xf32> -> vector<200x8xf32>
    %cst_10 = arith.constant 0.000000e+00 : f32
    %12 = vector.broadcast %cst_10 : f32 to vector<200x8xf32>
    %13 = arith.maximumf %11, %12 : vector<200x8xf32>
    %c8 = arith.constant 8 : index
    %c0_11 = arith.constant 0 : index
    %14 = vector.load %arg3[%c8, %c0_11] : memref<72x16xbf16, #tpu.memory_space<vmem>>, vector<8x16xbf16>
    %15 = arith.extf %14 : vector<8x16xbf16> to vector<8x16xf32>
    %cst_12 = arith.constant dense<0.000000e+00> : vector<200x16xf32>
    %16 = tpu.matmul %13, %15, %cst_12 {dimension_numbers = #tpu.dot_dimension_numbers<[1], [0], [0], [1], [0, 0, 1, 1], [], []>} : vector<200x8xf32>, vector<8x16xf32>, vector<200x16xf32> -> vector<200x16xf32>
    %17 = arith.addf %9, %16 : vector<200x16xf32>
    %c400 = arith.constant 400 : index
    %c0_13 = arith.constant 0 : index
    %18 = vector.load %arg1[%c400, %c0_13] : memref<1800x128xbf16, #tpu.memory_space<vmem>>, vector<200x128xbf16>
    %cst_14 = arith.constant dense<0.000000e+00> : vector<200x8xf32>
    %19 = tpu.matmul %18, %0, %cst_14 {dimension_numbers = #tpu.dot_dimension_numbers<[1], [0], [0], [1], [0, 0, 1, 1], [], []>} : vector<200x128xbf16>, vector<128x8xbf16>, vector<200x8xf32> -> vector<200x8xf32>
    %cst_15 = arith.constant 0.000000e+00 : f32
    %20 = vector.broadcast %cst_15 : f32 to vector<200x8xf32>
    %21 = arith.maximumf %19, %20 : vector<200x8xf32>
    %c16 = arith.constant 16 : index
    %c0_16 = arith.constant 0 : index
    %22 = vector.load %arg3[%c16, %c0_16] : memref<72x16xbf16, #tpu.memory_space<vmem>>, vector<8x16xbf16>
    %23 = arith.extf %22 : vector<8x16xbf16> to vector<8x16xf32>
    %cst_17 = arith.constant dense<0.000000e+00> : vector<200x16xf32>
    %24 = tpu.matmul %21, %23, %cst_17 {dimension_numbers = #tpu.dot_dimension_numbers<[1], [0], [0], [1], [0, 0, 1, 1], [], []>} : vector<200x8xf32>, vector<8x16xf32>, vector<200x16xf32> -> vector<200x16xf32>
    %25 = arith.addf %17, %24 : vector<200x16xf32>
    %c600 = arith.constant 600 : index
    %c0_18 = arith.constant 0 : index
    %26 = vector.load %arg1[%c600, %c0_18] : memref<1800x128xbf16, #tpu.memory_space<vmem>>, vector<200x128xbf16>
    %cst_19 = arith.constant dense<0.000000e+00> : vector<200x8xf32>
    %27 = tpu.matmul %26, %0, %cst_19 {dimension_numbers = #tpu.dot_dimension_numbers<[1], [0], [0], [1], [0, 0, 1, 1], [], []>} : vector<200x128xbf16>, vector<128x8xbf16>, vector<200x8xf32> -> vector<200x8xf32>
    %cst_20 = arith.constant 0.000000e+00 : f32
    %28 = vector.broadcast %cst_20 : f32 to vector<200x8xf32>
    %29 = arith.maximumf %27, %28 : vector<200x8xf32>
    %c24 = arith.constant 24 : index
    %c0_21 = arith.constant 0 : index
    %30 = vector.load %arg3[%c24, %c0_21] : memref<72x16xbf16, #tpu.memory_space<vmem>>, vector<8x16xbf16>
    %31 = arith.extf %30 : vector<8x16xbf16> to vector<8x16xf32>
    %cst_22 = arith.constant dense<0.000000e+00> : vector<200x16xf32>
    %32 = tpu.matmul %29, %31, %cst_22 {dimension_numbers = #tpu.dot_dimension_numbers<[1], [0], [0], [1], [0, 0, 1, 1], [], []>} : vector<200x8xf32>, vector<8x16xf32>, vector<200x16xf32> -> vector<200x16xf32>
    %33 = arith.addf %25, %32 : vector<200x16xf32>
    %c800 = arith.constant 800 : index
    %c0_23 = arith.constant 0 : index
    %34 = vector.load %arg1[%c800, %c0_23] : memref<1800x128xbf16, #tpu.memory_space<vmem>>, vector<200x128xbf16>
    %cst_24 = arith.constant dense<0.000000e+00> : vector<200x8xf32>
    %35 = tpu.matmul %34, %0, %cst_24 {dimension_numbers = #tpu.dot_dimension_numbers<[1], [0], [0], [1], [0, 0, 1, 1], [], []>} : vector<200x128xbf16>, vector<128x8xbf16>, vector<200x8xf32> -> vector<200x8xf32>
    %cst_25 = arith.constant 0.000000e+00 : f32
    %36 = vector.broadcast %cst_25 : f32 to vector<200x8xf32>
    %37 = arith.maximumf %35, %36 : vector<200x8xf32>
    %c32 = arith.constant 32 : index
    %c0_26 = arith.constant 0 : index
    %38 = vector.load %arg3[%c32, %c0_26] : memref<72x16xbf16, #tpu.memory_space<vmem>>, vector<8x16xbf16>
    %39 = arith.extf %38 : vector<8x16xbf16> to vector<8x16xf32>
    %cst_27 = arith.constant dense<0.000000e+00> : vector<200x16xf32>
    %40 = tpu.matmul %37, %39, %cst_27 {dimension_numbers = #tpu.dot_dimension_numbers<[1], [0], [0], [1], [0, 0, 1, 1], [], []>} : vector<200x8xf32>, vector<8x16xf32>, vector<200x16xf32> -> vector<200x16xf32>
    %41 = arith.addf %33, %40 : vector<200x16xf32>
    %c1000 = arith.constant 1000 : index
    %c0_28 = arith.constant 0 : index
    %42 = vector.load %arg1[%c1000, %c0_28] : memref<1800x128xbf16, #tpu.memory_space<vmem>>, vector<200x128xbf16>
    %cst_29 = arith.constant dense<0.000000e+00> : vector<200x8xf32>
    %43 = tpu.matmul %42, %0, %cst_29 {dimension_numbers = #tpu.dot_dimension_numbers<[1], [0], [0], [1], [0, 0, 1, 1], [], []>} : vector<200x128xbf16>, vector<128x8xbf16>, vector<200x8xf32> -> vector<200x8xf32>
    %cst_30 = arith.constant 0.000000e+00 : f32
    %44 = vector.broadcast %cst_30 : f32 to vector<200x8xf32>
    %45 = arith.maximumf %43, %44 : vector<200x8xf32>
    %c40 = arith.constant 40 : index
    %c0_31 = arith.constant 0 : index
    %46 = vector.load %arg3[%c40, %c0_31] : memref<72x16xbf16, #tpu.memory_space<vmem>>, vector<8x16xbf16>
    %47 = arith.extf %46 : vector<8x16xbf16> to vector<8x16xf32>
    %cst_32 = arith.constant dense<0.000000e+00> : vector<200x16xf32>
    %48 = tpu.matmul %45, %47, %cst_32 {dimension_numbers = #tpu.dot_dimension_numbers<[1], [0], [0], [1], [0, 0, 1, 1], [], []>} : vector<200x8xf32>, vector<8x16xf32>, vector<200x16xf32> -> vector<200x16xf32>
    %49 = arith.addf %41, %48 : vector<200x16xf32>
    %c1200 = arith.constant 1200 : index
    %c0_33 = arith.constant 0 : index
    %50 = vector.load %arg1[%c1200, %c0_33] : memref<1800x128xbf16, #tpu.memory_space<vmem>>, vector<200x128xbf16>
    %cst_34 = arith.constant dense<0.000000e+00> : vector<200x8xf32>
    %51 = tpu.matmul %50, %0, %cst_34 {dimension_numbers = #tpu.dot_dimension_numbers<[1], [0], [0], [1], [0, 0, 1, 1], [], []>} : vector<200x128xbf16>, vector<128x8xbf16>, vector<200x8xf32> -> vector<200x8xf32>
    %cst_35 = arith.constant 0.000000e+00 : f32
    %52 = vector.broadcast %cst_35 : f32 to vector<200x8xf32>
    %53 = arith.maximumf %51, %52 : vector<200x8xf32>
    %c48 = arith.constant 48 : index
    %c0_36 = arith.constant 0 : index
    %54 = vector.load %arg3[%c48, %c0_36] : memref<72x16xbf16, #tpu.memory_space<vmem>>, vector<8x16xbf16>
    %55 = arith.extf %54 : vector<8x16xbf16> to vector<8x16xf32>
    %cst_37 = arith.constant dense<0.000000e+00> : vector<200x16xf32>
    %56 = tpu.matmul %53, %55, %cst_37 {dimension_numbers = #tpu.dot_dimension_numbers<[1], [0], [0], [1], [0, 0, 1, 1], [], []>} : vector<200x8xf32>, vector<8x16xf32>, vector<200x16xf32> -> vector<200x16xf32>
    %57 = arith.addf %49, %56 : vector<200x16xf32>
    %c1400 = arith.constant 1400 : index
    %c0_38 = arith.constant 0 : index
    %58 = vector.load %arg1[%c1400, %c0_38] : memref<1800x128xbf16, #tpu.memory_space<vmem>>, vector<200x128xbf16>
    %cst_39 = arith.constant dense<0.000000e+00> : vector<200x8xf32>
    %59 = tpu.matmul %58, %0, %cst_39 {dimension_numbers = #tpu.dot_dimension_numbers<[1], [0], [0], [1], [0, 0, 1, 1], [], []>} : vector<200x128xbf16>, vector<128x8xbf16>, vector<200x8xf32> -> vector<200x8xf32>
    %cst_40 = arith.constant 0.000000e+00 : f32
    %60 = vector.broadcast %cst_40 : f32 to vector<200x8xf32>
    %61 = arith.maximumf %59, %60 : vector<200x8xf32>
    %c56 = arith.constant 56 : index
    %c0_41 = arith.constant 0 : index
    %62 = vector.load %arg3[%c56, %c0_41] : memref<72x16xbf16, #tpu.memory_space<vmem>>, vector<8x16xbf16>
    %63 = arith.extf %62 : vector<8x16xbf16> to vector<8x16xf32>
    %cst_42 = arith.constant dense<0.000000e+00> : vector<200x16xf32>
    %64 = tpu.matmul %61, %63, %cst_42 {dimension_numbers = #tpu.dot_dimension_numbers<[1], [0], [0], [1], [0, 0, 1, 1], [], []>} : vector<200x8xf32>, vector<8x16xf32>, vector<200x16xf32> -> vector<200x16xf32>
    %65 = arith.addf %57, %64 : vector<200x16xf32>
    %c1600 = arith.constant 1600 : index
    %c0_43 = arith.constant 0 : index
    %66 = vector.load %arg1[%c1600, %c0_43] : memref<1800x128xbf16, #tpu.memory_space<vmem>>, vector<200x128xbf16>
    %cst_44 = arith.constant dense<0.000000e+00> : vector<200x8xf32>
    %67 = tpu.matmul %66, %0, %cst_44 {dimension_numbers = #tpu.dot_dimension_numbers<[1], [0], [0], [1], [0, 0, 1, 1], [], []>} : vector<200x128xbf16>, vector<128x8xbf16>, vector<200x8xf32> -> vector<200x8xf32>
    %cst_45 = arith.constant 0.000000e+00 : f32
    %68 = vector.broadcast %cst_45 : f32 to vector<200x8xf32>
    %69 = arith.maximumf %67, %68 : vector<200x8xf32>
    %c64 = arith.constant 64 : index
    %c0_46 = arith.constant 0 : index
    %70 = vector.load %arg3[%c64, %c0_46] : memref<72x16xbf16, #tpu.memory_space<vmem>>, vector<8x16xbf16>
    %71 = arith.extf %70 : vector<8x16xbf16> to vector<8x16xf32>
    %cst_47 = arith.constant dense<0.000000e+00> : vector<200x16xf32>
    %72 = tpu.matmul %69, %71, %cst_47 {dimension_numbers = #tpu.dot_dimension_numbers<[1], [0], [0], [1], [0, 0, 1, 1], [], []>} : vector<200x8xf32>, vector<8x16xf32>, vector<200x16xf32> -> vector<200x16xf32>
    %73 = arith.addf %65, %72 : vector<200x16xf32>
    %c0_48 = arith.constant 0 : index
    %c0_49 = arith.constant 0 : index
    %74 = vector.load %arg4[%c0_48, %c0_49] : memref<1x16xf32, #tpu.memory_space<vmem>>, vector<1x16xf32>
    %75 = vector.broadcast %74 : vector<1x16xf32> to vector<200x16xf32>
    %76 = arith.addf %73, %75 : vector<200x16xf32>
    %cst_50 = arith.constant 0.000000e+00 : f32
    %77 = vector.broadcast %cst_50 : f32 to vector<200x16xf32>
    %78 = arith.maximumf %76, %77 : vector<200x16xf32>
    %cst_51 = arith.constant 0.000000e+00 : f32
    %79 = vector.broadcast %cst_51 : f32 to vector<8x32xf32>
    %80 = vector.extract_strided_slice %78 {offsets = [0, 0], sizes = [8, 16], strides = [1, 1]} : vector<200x16xf32> to vector<8x16xf32>
    %c0_52 = arith.constant 0 : index
    %c0_53 = arith.constant 0 : index
    %81 = vector.load %arg5[%c0_52, %c0_53] : memref<400x32xbf16, #tpu.memory_space<vmem>>, vector<16x32xbf16>
    %82 = arith.extf %81 : vector<16x32xbf16> to vector<16x32xf32>
    %cst_54 = arith.constant dense<0.000000e+00> : vector<8x32xf32>
    %83 = tpu.matmul %80, %82, %cst_54 {dimension_numbers = #tpu.dot_dimension_numbers<[1], [0], [0], [1], [0, 0, 1, 1], [], []>} : vector<8x16xf32>, vector<16x32xf32>, vector<8x32xf32> -> vector<8x32xf32>
    %84 = arith.addf %79, %83 : vector<8x32xf32>
    %85 = vector.extract_strided_slice %78 {offsets = [8, 0], sizes = [8, 16], strides = [1, 1]} : vector<200x16xf32> to vector<8x16xf32>
    %c16_55 = arith.constant 16 : index
    %c0_56 = arith.constant 0 : index
    %86 = vector.load %arg5[%c16_55, %c0_56] : memref<400x32xbf16, #tpu.memory_space<vmem>>, vector<16x32xbf16>
    %87 = arith.extf %86 : vector<16x32xbf16> to vector<16x32xf32>
    %cst_57 = arith.constant dense<0.000000e+00> : vector<8x32xf32>
    %88 = tpu.matmul %85, %87, %cst_57 {dimension_numbers = #tpu.dot_dimension_numbers<[1], [0], [0], [1], [0, 0, 1, 1], [], []>} : vector<8x16xf32>, vector<16x32xf32>, vector<8x32xf32> -> vector<8x32xf32>
    %89 = arith.addf %84, %88 : vector<8x32xf32>
    %90 = vector.extract_strided_slice %78 {offsets = [16, 0], sizes = [8, 16], strides = [1, 1]} : vector<200x16xf32> to vector<8x16xf32>
    %c32_58 = arith.constant 32 : index
    %c0_59 = arith.constant 0 : index
    %91 = vector.load %arg5[%c32_58, %c0_59] : memref<400x32xbf16, #tpu.memory_space<vmem>>, vector<16x32xbf16>
    %92 = arith.extf %91 : vector<16x32xbf16> to vector<16x32xf32>
    %cst_60 = arith.constant dense<0.000000e+00> : vector<8x32xf32>
    %93 = tpu.matmul %90, %92, %cst_60 {dimension_numbers = #tpu.dot_dimension_numbers<[1], [0], [0], [1], [0, 0, 1, 1], [], []>} : vector<8x16xf32>, vector<16x32xf32>, vector<8x32xf32> -> vector<8x32xf32>
    %94 = arith.addf %89, %93 : vector<8x32xf32>
    %95 = vector.extract_strided_slice %78 {offsets = [24, 0], sizes = [8, 16], strides = [1, 1]} : vector<200x16xf32> to vector<8x16xf32>
    %c48_61 = arith.constant 48 : index
    %c0_62 = arith.constant 0 : index
    %96 = vector.load %arg5[%c48_61, %c0_62] : memref<400x32xbf16, #tpu.memory_space<vmem>>, vector<16x32xbf16>
    %97 = arith.extf %96 : vector<16x32xbf16> to vector<16x32xf32>
    %cst_63 = arith.constant dense<0.000000e+00> : vector<8x32xf32>
    %98 = tpu.matmul %95, %97, %cst_63 {dimension_numbers = #tpu.dot_dimension_numbers<[1], [0], [0], [1], [0, 0, 1, 1], [], []>} : vector<8x16xf32>, vector<16x32xf32>, vector<8x32xf32> -> vector<8x32xf32>
    %99 = arith.addf %94, %98 : vector<8x32xf32>
    %100 = vector.extract_strided_slice %78 {offsets = [32, 0], sizes = [8, 16], strides = [1, 1]} : vector<200x16xf32> to vector<8x16xf32>
    %c64_64 = arith.constant 64 : index
    %c0_65 = arith.constant 0 : index
    %101 = vector.load %arg5[%c64_64, %c0_65] : memref<400x32xbf16, #tpu.memory_space<vmem>>, vector<16x32xbf16>
    %102 = arith.extf %101 : vector<16x32xbf16> to vector<16x32xf32>
    %cst_66 = arith.constant dense<0.000000e+00> : vector<8x32xf32>
    %103 = tpu.matmul %100, %102, %cst_66 {dimension_numbers = #tpu.dot_dimension_numbers<[1], [0], [0], [1], [0, 0, 1, 1], [], []>} : vector<8x16xf32>, vector<16x32xf32>, vector<8x32xf32> -> vector<8x32xf32>
    %104 = arith.addf %99, %103 : vector<8x32xf32>
    %105 = vector.extract_strided_slice %78 {offsets = [40, 0], sizes = [8, 16], strides = [1, 1]} : vector<200x16xf32> to vector<8x16xf32>
    %c80 = arith.constant 80 : index
    %c0_67 = arith.constant 0 : index
    %106 = vector.load %arg5[%c80, %c0_67] : memref<400x32xbf16, #tpu.memory_space<vmem>>, vector<16x32xbf16>
    %107 = arith.extf %106 : vector<16x32xbf16> to vector<16x32xf32>
    %cst_68 = arith.constant dense<0.000000e+00> : vector<8x32xf32>
    %108 = tpu.matmul %105, %107, %cst_68 {dimension_numbers = #tpu.dot_dimension_numbers<[1], [0], [0], [1], [0, 0, 1, 1], [], []>} : vector<8x16xf32>, vector<16x32xf32>, vector<8x32xf32> -> vector<8x32xf32>
    %109 = arith.addf %104, %108 : vector<8x32xf32>
    %110 = vector.extract_strided_slice %78 {offsets = [48, 0], sizes = [8, 16], strides = [1, 1]} : vector<200x16xf32> to vector<8x16xf32>
    %c96 = arith.constant 96 : index
    %c0_69 = arith.constant 0 : index
    %111 = vector.load %arg5[%c96, %c0_69] : memref<400x32xbf16, #tpu.memory_space<vmem>>, vector<16x32xbf16>
    %112 = arith.extf %111 : vector<16x32xbf16> to vector<16x32xf32>
    %cst_70 = arith.constant dense<0.000000e+00> : vector<8x32xf32>
    %113 = tpu.matmul %110, %112, %cst_70 {dimension_numbers = #tpu.dot_dimension_numbers<[1], [0], [0], [1], [0, 0, 1, 1], [], []>} : vector<8x16xf32>, vector<16x32xf32>, vector<8x32xf32> -> vector<8x32xf32>
    %114 = arith.addf %109, %113 : vector<8x32xf32>
    %115 = vector.extract_strided_slice %78 {offsets = [56, 0], sizes = [8, 16], strides = [1, 1]} : vector<200x16xf32> to vector<8x16xf32>
    %c112 = arith.constant 112 : index
    %c0_71 = arith.constant 0 : index
    %116 = vector.load %arg5[%c112, %c0_71] : memref<400x32xbf16, #tpu.memory_space<vmem>>, vector<16x32xbf16>
    %117 = arith.extf %116 : vector<16x32xbf16> to vector<16x32xf32>
    %cst_72 = arith.constant dense<0.000000e+00> : vector<8x32xf32>
    %118 = tpu.matmul %115, %117, %cst_72 {dimension_numbers = #tpu.dot_dimension_numbers<[1], [0], [0], [1], [0, 0, 1, 1], [], []>} : vector<8x16xf32>, vector<16x32xf32>, vector<8x32xf32> -> vector<8x32xf32>
    %119 = arith.addf %114, %118 : vector<8x32xf32>
    %120 = vector.extract_strided_slice %78 {offsets = [64, 0], sizes = [8, 16], strides = [1, 1]} : vector<200x16xf32> to vector<8x16xf32>
    %c128 = arith.constant 128 : index
    %c0_73 = arith.constant 0 : index
    %121 = vector.load %arg5[%c128, %c0_73] : memref<400x32xbf16, #tpu.memory_space<vmem>>, vector<16x32xbf16>
    %122 = arith.extf %121 : vector<16x32xbf16> to vector<16x32xf32>
    %cst_74 = arith.constant dense<0.000000e+00> : vector<8x32xf32>
    %123 = tpu.matmul %120, %122, %cst_74 {dimension_numbers = #tpu.dot_dimension_numbers<[1], [0], [0], [1], [0, 0, 1, 1], [], []>} : vector<8x16xf32>, vector<16x32xf32>, vector<8x32xf32> -> vector<8x32xf32>
    %124 = arith.addf %119, %123 : vector<8x32xf32>
    %125 = vector.extract_strided_slice %78 {offsets = [72, 0], sizes = [8, 16], strides = [1, 1]} : vector<200x16xf32> to vector<8x16xf32>
    %c144 = arith.constant 144 : index
    %c0_75 = arith.constant 0 : index
    %126 = vector.load %arg5[%c144, %c0_75] : memref<400x32xbf16, #tpu.memory_space<vmem>>, vector<16x32xbf16>
    %127 = arith.extf %126 : vector<16x32xbf16> to vector<16x32xf32>
    %cst_76 = arith.constant dense<0.000000e+00> : vector<8x32xf32>
    %128 = tpu.matmul %125, %127, %cst_76 {dimension_numbers = #tpu.dot_dimension_numbers<[1], [0], [0], [1], [0, 0, 1, 1], [], []>} : vector<8x16xf32>, vector<16x32xf32>, vector<8x32xf32> -> vector<8x32xf32>
    %129 = arith.addf %124, %128 : vector<8x32xf32>
    %130 = vector.extract_strided_slice %78 {offsets = [80, 0], sizes = [8, 16], strides = [1, 1]} : vector<200x16xf32> to vector<8x16xf32>
    %c160 = arith.constant 160 : index
    %c0_77 = arith.constant 0 : index
    %131 = vector.load %arg5[%c160, %c0_77] : memref<400x32xbf16, #tpu.memory_space<vmem>>, vector<16x32xbf16>
    %132 = arith.extf %131 : vector<16x32xbf16> to vector<16x32xf32>
    %cst_78 = arith.constant dense<0.000000e+00> : vector<8x32xf32>
    %133 = tpu.matmul %130, %132, %cst_78 {dimension_numbers = #tpu.dot_dimension_numbers<[1], [0], [0], [1], [0, 0, 1, 1], [], []>} : vector<8x16xf32>, vector<16x32xf32>, vector<8x32xf32> -> vector<8x32xf32>
    %134 = arith.addf %129, %133 : vector<8x32xf32>
    %135 = vector.extract_strided_slice %78 {offsets = [88, 0], sizes = [8, 16], strides = [1, 1]} : vector<200x16xf32> to vector<8x16xf32>
    %c176 = arith.constant 176 : index
    %c0_79 = arith.constant 0 : index
    %136 = vector.load %arg5[%c176, %c0_79] : memref<400x32xbf16, #tpu.memory_space<vmem>>, vector<16x32xbf16>
    %137 = arith.extf %136 : vector<16x32xbf16> to vector<16x32xf32>
    %cst_80 = arith.constant dense<0.000000e+00> : vector<8x32xf32>
    %138 = tpu.matmul %135, %137, %cst_80 {dimension_numbers = #tpu.dot_dimension_numbers<[1], [0], [0], [1], [0, 0, 1, 1], [], []>} : vector<8x16xf32>, vector<16x32xf32>, vector<8x32xf32> -> vector<8x32xf32>
    %139 = arith.addf %134, %138 : vector<8x32xf32>
    %140 = vector.extract_strided_slice %78 {offsets = [96, 0], sizes = [8, 16], strides = [1, 1]} : vector<200x16xf32> to vector<8x16xf32>
    %c192 = arith.constant 192 : index
    %c0_81 = arith.constant 0 : index
    %141 = vector.load %arg5[%c192, %c0_81] : memref<400x32xbf16, #tpu.memory_space<vmem>>, vector<16x32xbf16>
    %142 = arith.extf %141 : vector<16x32xbf16> to vector<16x32xf32>
    %cst_82 = arith.constant dense<0.000000e+00> : vector<8x32xf32>
    %143 = tpu.matmul %140, %142, %cst_82 {dimension_numbers = #tpu.dot_dimension_numbers<[1], [0], [0], [1], [0, 0, 1, 1], [], []>} : vector<8x16xf32>, vector<16x32xf32>, vector<8x32xf32> -> vector<8x32xf32>
    %144 = arith.addf %139, %143 : vector<8x32xf32>
    %145 = vector.extract_strided_slice %78 {offsets = [104, 0], sizes = [8, 16], strides = [1, 1]} : vector<200x16xf32> to vector<8x16xf32>
    %c208 = arith.constant 208 : index
    %c0_83 = arith.constant 0 : index
    %146 = vector.load %arg5[%c208, %c0_83] : memref<400x32xbf16, #tpu.memory_space<vmem>>, vector<16x32xbf16>
    %147 = arith.extf %146 : vector<16x32xbf16> to vector<16x32xf32>
    %cst_84 = arith.constant dense<0.000000e+00> : vector<8x32xf32>
    %148 = tpu.matmul %145, %147, %cst_84 {dimension_numbers = #tpu.dot_dimension_numbers<[1], [0], [0], [1], [0, 0, 1, 1], [], []>} : vector<8x16xf32>, vector<16x32xf32>, vector<8x32xf32> -> vector<8x32xf32>
    %149 = arith.addf %144, %148 : vector<8x32xf32>
    %150 = vector.extract_strided_slice %78 {offsets = [112, 0], sizes = [8, 16], strides = [1, 1]} : vector<200x16xf32> to vector<8x16xf32>
    %c224 = arith.constant 224 : index
    %c0_85 = arith.constant 0 : index
    %151 = vector.load %arg5[%c224, %c0_85] : memref<400x32xbf16, #tpu.memory_space<vmem>>, vector<16x32xbf16>
    %152 = arith.extf %151 : vector<16x32xbf16> to vector<16x32xf32>
    %cst_86 = arith.constant dense<0.000000e+00> : vector<8x32xf32>
    %153 = tpu.matmul %150, %152, %cst_86 {dimension_numbers = #tpu.dot_dimension_numbers<[1], [0], [0], [1], [0, 0, 1, 1], [], []>} : vector<8x16xf32>, vector<16x32xf32>, vector<8x32xf32> -> vector<8x32xf32>
    %154 = arith.addf %149, %153 : vector<8x32xf32>
    %155 = vector.extract_strided_slice %78 {offsets = [120, 0], sizes = [8, 16], strides = [1, 1]} : vector<200x16xf32> to vector<8x16xf32>
    %c240 = arith.constant 240 : index
    %c0_87 = arith.constant 0 : index
    %156 = vector.load %arg5[%c240, %c0_87] : memref<400x32xbf16, #tpu.memory_space<vmem>>, vector<16x32xbf16>
    %157 = arith.extf %156 : vector<16x32xbf16> to vector<16x32xf32>
    %cst_88 = arith.constant dense<0.000000e+00> : vector<8x32xf32>
    %158 = tpu.matmul %155, %157, %cst_88 {dimension_numbers = #tpu.dot_dimension_numbers<[1], [0], [0], [1], [0, 0, 1, 1], [], []>} : vector<8x16xf32>, vector<16x32xf32>, vector<8x32xf32> -> vector<8x32xf32>
    %159 = arith.addf %154, %158 : vector<8x32xf32>
    %160 = vector.extract_strided_slice %78 {offsets = [128, 0], sizes = [8, 16], strides = [1, 1]} : vector<200x16xf32> to vector<8x16xf32>
    %c256 = arith.constant 256 : index
    %c0_89 = arith.constant 0 : index
    %161 = vector.load %arg5[%c256, %c0_89] : memref<400x32xbf16, #tpu.memory_space<vmem>>, vector<16x32xbf16>
    %162 = arith.extf %161 : vector<16x32xbf16> to vector<16x32xf32>
    %cst_90 = arith.constant dense<0.000000e+00> : vector<8x32xf32>
    %163 = tpu.matmul %160, %162, %cst_90 {dimension_numbers = #tpu.dot_dimension_numbers<[1], [0], [0], [1], [0, 0, 1, 1], [], []>} : vector<8x16xf32>, vector<16x32xf32>, vector<8x32xf32> -> vector<8x32xf32>
    %164 = arith.addf %159, %163 : vector<8x32xf32>
    %165 = vector.extract_strided_slice %78 {offsets = [136, 0], sizes = [8, 16], strides = [1, 1]} : vector<200x16xf32> to vector<8x16xf32>
    %c272 = arith.constant 272 : index
    %c0_91 = arith.constant 0 : index
    %166 = vector.load %arg5[%c272, %c0_91] : memref<400x32xbf16, #tpu.memory_space<vmem>>, vector<16x32xbf16>
    %167 = arith.extf %166 : vector<16x32xbf16> to vector<16x32xf32>
    %cst_92 = arith.constant dense<0.000000e+00> : vector<8x32xf32>
    %168 = tpu.matmul %165, %167, %cst_92 {dimension_numbers = #tpu.dot_dimension_numbers<[1], [0], [0], [1], [0, 0, 1, 1], [], []>} : vector<8x16xf32>, vector<16x32xf32>, vector<8x32xf32> -> vector<8x32xf32>
    %169 = arith.addf %164, %168 : vector<8x32xf32>
    %170 = vector.extract_strided_slice %78 {offsets = [144, 0], sizes = [8, 16], strides = [1, 1]} : vector<200x16xf32> to vector<8x16xf32>
    %c288 = arith.constant 288 : index
    %c0_93 = arith.constant 0 : index
    %171 = vector.load %arg5[%c288, %c0_93] : memref<400x32xbf16, #tpu.memory_space<vmem>>, vector<16x32xbf16>
    %172 = arith.extf %171 : vector<16x32xbf16> to vector<16x32xf32>
    %cst_94 = arith.constant dense<0.000000e+00> : vector<8x32xf32>
    %173 = tpu.matmul %170, %172, %cst_94 {dimension_numbers = #tpu.dot_dimension_numbers<[1], [0], [0], [1], [0, 0, 1, 1], [], []>} : vector<8x16xf32>, vector<16x32xf32>, vector<8x32xf32> -> vector<8x32xf32>
    %174 = arith.addf %169, %173 : vector<8x32xf32>
    %175 = vector.extract_strided_slice %78 {offsets = [152, 0], sizes = [8, 16], strides = [1, 1]} : vector<200x16xf32> to vector<8x16xf32>
    %c304 = arith.constant 304 : index
    %c0_95 = arith.constant 0 : index
    %176 = vector.load %arg5[%c304, %c0_95] : memref<400x32xbf16, #tpu.memory_space<vmem>>, vector<16x32xbf16>
    %177 = arith.extf %176 : vector<16x32xbf16> to vector<16x32xf32>
    %cst_96 = arith.constant dense<0.000000e+00> : vector<8x32xf32>
    %178 = tpu.matmul %175, %177, %cst_96 {dimension_numbers = #tpu.dot_dimension_numbers<[1], [0], [0], [1], [0, 0, 1, 1], [], []>} : vector<8x16xf32>, vector<16x32xf32>, vector<8x32xf32> -> vector<8x32xf32>
    %179 = arith.addf %174, %178 : vector<8x32xf32>
    %180 = vector.extract_strided_slice %78 {offsets = [160, 0], sizes = [8, 16], strides = [1, 1]} : vector<200x16xf32> to vector<8x16xf32>
    %c320 = arith.constant 320 : index
    %c0_97 = arith.constant 0 : index
    %181 = vector.load %arg5[%c320, %c0_97] : memref<400x32xbf16, #tpu.memory_space<vmem>>, vector<16x32xbf16>
    %182 = arith.extf %181 : vector<16x32xbf16> to vector<16x32xf32>
    %cst_98 = arith.constant dense<0.000000e+00> : vector<8x32xf32>
    %183 = tpu.matmul %180, %182, %cst_98 {dimension_numbers = #tpu.dot_dimension_numbers<[1], [0], [0], [1], [0, 0, 1, 1], [], []>} : vector<8x16xf32>, vector<16x32xf32>, vector<8x32xf32> -> vector<8x32xf32>
    %184 = arith.addf %179, %183 : vector<8x32xf32>
    %185 = vector.extract_strided_slice %78 {offsets = [168, 0], sizes = [8, 16], strides = [1, 1]} : vector<200x16xf32> to vector<8x16xf32>
    %c336 = arith.constant 336 : index
    %c0_99 = arith.constant 0 : index
    %186 = vector.load %arg5[%c336, %c0_99] : memref<400x32xbf16, #tpu.memory_space<vmem>>, vector<16x32xbf16>
    %187 = arith.extf %186 : vector<16x32xbf16> to vector<16x32xf32>
    %cst_100 = arith.constant dense<0.000000e+00> : vector<8x32xf32>
    %188 = tpu.matmul %185, %187, %cst_100 {dimension_numbers = #tpu.dot_dimension_numbers<[1], [0], [0], [1], [0, 0, 1, 1], [], []>} : vector<8x16xf32>, vector<16x32xf32>, vector<8x32xf32> -> vector<8x32xf32>
    %189 = arith.addf %184, %188 : vector<8x32xf32>
    %190 = vector.extract_strided_slice %78 {offsets = [176, 0], sizes = [8, 16], strides = [1, 1]} : vector<200x16xf32> to vector<8x16xf32>
    %c352 = arith.constant 352 : index
    %c0_101 = arith.constant 0 : index
    %191 = vector.load %arg5[%c352, %c0_101] : memref<400x32xbf16, #tpu.memory_space<vmem>>, vector<16x32xbf16>
    %192 = arith.extf %191 : vector<16x32xbf16> to vector<16x32xf32>
    %cst_102 = arith.constant dense<0.000000e+00> : vector<8x32xf32>
    %193 = tpu.matmul %190, %192, %cst_102 {dimension_numbers = #tpu.dot_dimension_numbers<[1], [0], [0], [1], [0, 0, 1, 1], [], []>} : vector<8x16xf32>, vector<16x32xf32>, vector<8x32xf32> -> vector<8x32xf32>
    %194 = arith.addf %189, %193 : vector<8x32xf32>
    %195 = vector.extract_strided_slice %78 {offsets = [184, 0], sizes = [8, 16], strides = [1, 1]} : vector<200x16xf32> to vector<8x16xf32>
    %c368 = arith.constant 368 : index
    %c0_103 = arith.constant 0 : index
    %196 = vector.load %arg5[%c368, %c0_103] : memref<400x32xbf16, #tpu.memory_space<vmem>>, vector<16x32xbf16>
    %197 = arith.extf %196 : vector<16x32xbf16> to vector<16x32xf32>
    %cst_104 = arith.constant dense<0.000000e+00> : vector<8x32xf32>
    %198 = tpu.matmul %195, %197, %cst_104 {dimension_numbers = #tpu.dot_dimension_numbers<[1], [0], [0], [1], [0, 0, 1, 1], [], []>} : vector<8x16xf32>, vector<16x32xf32>, vector<8x32xf32> -> vector<8x32xf32>
    %199 = arith.addf %194, %198 : vector<8x32xf32>
    %200 = vector.extract_strided_slice %78 {offsets = [192, 0], sizes = [8, 16], strides = [1, 1]} : vector<200x16xf32> to vector<8x16xf32>
    %c384 = arith.constant 384 : index
    %c0_105 = arith.constant 0 : index
    %201 = vector.load %arg5[%c384, %c0_105] : memref<400x32xbf16, #tpu.memory_space<vmem>>, vector<16x32xbf16>
    %202 = arith.extf %201 : vector<16x32xbf16> to vector<16x32xf32>
    %cst_106 = arith.constant dense<0.000000e+00> : vector<8x32xf32>
    %203 = tpu.matmul %200, %202, %cst_106 {dimension_numbers = #tpu.dot_dimension_numbers<[1], [0], [0], [1], [0, 0, 1, 1], [], []>} : vector<8x16xf32>, vector<16x32xf32>, vector<8x32xf32> -> vector<8x32xf32>
    %204 = arith.addf %199, %203 : vector<8x32xf32>
    %c0_107 = arith.constant 0 : index
    %c0_108 = arith.constant 0 : index
    %205 = vector.load %arg6[%c0_107, %c0_108] : memref<1x32xf32, #tpu.memory_space<vmem>>, vector<1x32xf32>
    %206 = vector.broadcast %205 : vector<1x32xf32> to vector<8x32xf32>
    %207 = arith.addf %204, %206 : vector<8x32xf32>
    %cst_109 = arith.constant 0.000000e+00 : f32
    %208 = vector.broadcast %cst_109 : f32 to vector<8x32xf32>
    %209 = arith.maximumf %207, %208 : vector<8x32xf32>
    %c0_110 = arith.constant 0 : index
    %c0_111 = arith.constant 0 : index
    %210 = vector.load %arg7[%c0_110, %c0_111] : memref<32x128xbf16, #tpu.memory_space<vmem>>, vector<32x128xbf16>
    %211 = arith.extf %210 : vector<32x128xbf16> to vector<32x128xf32>
    %cst_112 = arith.constant dense<0.000000e+00> : vector<8x128xf32>
    %212 = tpu.matmul %209, %211, %cst_112 {dimension_numbers = #tpu.dot_dimension_numbers<[1], [0], [0], [1], [0, 0, 1, 1], [], []>} : vector<8x32xf32>, vector<32x128xf32>, vector<8x128xf32> -> vector<8x128xf32>
    %c0_113 = arith.constant 0 : index
    %c0_114 = arith.constant 0 : index
    %213 = vector.load %arg8[%c0_113, %c0_114] : memref<1x128xf32, #tpu.memory_space<vmem>>, vector<1x128xf32>
    %214 = vector.broadcast %213 : vector<1x128xf32> to vector<8x128xf32>
    %215 = arith.addf %212, %214 : vector<8x128xf32>
    %c0_115 = arith.constant 0 : index
    %c0_116 = arith.constant 0 : index
    %216 = vector.load %arg9[%c0_115, %c0_116] : memref<8x128xf32, #tpu.memory_space<vmem>>, vector<8x128xf32>
    tpu.vector_store %arg9[%c0_115, %c0_116], %215 {strides = array<i32>} : memref<8x128xf32, #tpu.memory_space<vmem>>, vector<8x128xf32>,
    return
  }
  func.func @transform_0(%arg0: i32) -> (i32, i32) {
    %c0_i32 = arith.constant 0 : i32
    %c0_i32_0 = arith.constant 0 : i32
    return %arg0, %c0_i32 : i32, i32
  }
  func.func @transform_1(%arg0: i32) -> (i32, i32) {
    %c0_i32 = arith.constant 0 : i32
    %c0_i32_0 = arith.constant 0 : i32
    %c0_i32_1 = arith.constant 0 : i32
    return %c0_i32, %c0_i32_0 : i32, i32
  }
  func.func @transform_2(%arg0: i32) -> (i32, i32) {
    %c0_i32 = arith.constant 0 : i32
    %c0_i32_0 = arith.constant 0 : i32
    %c0_i32_1 = arith.constant 0 : i32
    return %c0_i32, %c0_i32_0 : i32, i32
  }
  func.func @transform_3(%arg0: i32) -> (i32, i32) {
    %c0_i32 = arith.constant 0 : i32
    %c0_i32_0 = arith.constant 0 : i32
    %c0_i32_1 = arith.constant 0 : i32
    return %c0_i32, %c0_i32_0 : i32, i32
  }
  func.func @transform_4(%arg0: i32) -> (i32, i32) {
    %c0_i32 = arith.constant 0 : i32
    %c0_i32_0 = arith.constant 0 : i32
    %c0_i32_1 = arith.constant 0 : i32
    return %c0_i32, %c0_i32_0 : i32, i32
  }
  func.func @transform_5(%arg0: i32) -> (i32, i32) {
    %c0_i32 = arith.constant 0 : i32
    %c0_i32_0 = arith.constant 0 : i32
    %c0_i32_1 = arith.constant 0 : i32
    return %c0_i32, %c0_i32_0 : i32, i32
  }
  func.func @transform_6(%arg0: i32) -> (i32, i32) {
    %c0_i32 = arith.constant 0 : i32
    %c0_i32_0 = arith.constant 0 : i32
    %c0_i32_1 = arith.constant 0 : i32
    return %c0_i32, %c0_i32_0 : i32, i32
  }
  func.func @transform_7(%arg0: i32) -> (i32, i32) {
    %c0_i32 = arith.constant 0 : i32
    %c0_i32_0 = arith.constant 0 : i32
    %c0_i32_1 = arith.constant 0 : i32
    return %c0_i32, %c0_i32_0 : i32, i32
  }
  func.func @transform_8(%arg0: i32) -> (i32, i32) {
    %c0_i32 = arith.constant 0 : i32
    %c0_i32_0 = arith.constant 0 : i32
    return %arg0, %c0_i32 : i32, i32
  }
}

</mosaic_0001>

<bundles_post_ra>
// kernel: encoder_forward.1
= control target key start
LH: loop header
LB: loop body
LE: loop exit
PB: predicated region body
PF: predicated region fallthrough
CT: control target
= control target key end

     0   :  { %v9799_v0 = vmov 0.0   ;;  %vm9800_vm0 = vmmov 0   ;;  %vm622_vm1 = vcmask 64512   ;;  %vm5096_vm2 = vcmask 130048   ;;  %s12382_s1 = inlined_call_operand.vmem [shape: bf16[128,8], index: 1, kind: input, shape index: {}]   ;;  %s12383_s0 = inlined_call_operand.vmem [shape: bf16[1800,128], index: 0, kind: input, shape index: {}]   ;;  %s12384_s2 = inlined_call_operand.vmem [shape: bf16[72,16], index: 2, kind: input, shape index: {}]   ;;  %s12385_s4 = inlined_call_operand.vmem [shape: bf16[400,32], index: 4, kind: input, shape index: {}]   ;;  %s12386_s3 = inlined_call_operand.vmem [shape: f32[1,16], index: 3, kind: input, shape index: {}]   ;;  %s12387_s6 = inlined_call_operand.vmem [shape: bf16[32,128], index: 6, kind: input, shape index: {}]   ;;  %s12388_s5 = inlined_call_operand.vmem [shape: f32[1,32], index: 5, kind: input, shape index: {}]   ;;  %s12389_s7 = inlined_call_operand.vmem [shape: f32[1,128], index: 7, kind: input, shape index: {}]   ;;  %s12390_s8 = inlined_call_operand.vmem [shape: f32[8,128], index: 8, kind: output, shape index: {}]  }
   0x1   :  { %8223 = vmatprep.subr.bf16.mxu1 %v9799_v0  ;;  %v9850_v1 = vld [vmem:[%s12382_s1 + $0x38] sm:$0xff]   ;;  %8239 = vmatprep.mubr.msk.bf16.mxu1 %vm9800_vm0, %v9799_v0  ;;  %v9861_v2 = vld [vmem:[%s12382_s1 + $0x30] sm:$0xff]   ;;  %v9870_v3 = vld [vmem:[%s12382_s1 + $0x28] sm:$0xff]   ;;  %vm7061_vm3 = vcmask 261120  }
   0x2   :  { %8155 = vmatprep.subr.bf16.mxu0 %v9799_v0  ;;  %8171 = vmatprep.mubr.msk.bf16.mxu0 %vm9800_vm0, %v9799_v0  ;;  %v9879_v4 = vld [vmem:[%s12382_s1 + $0x20] sm:$0xff]   ;;  %v9888_v5 = vld [vmem:[%s12382_s1 + $0x18] sm:$0xff]   ;;  %v9897_v6 = vld [vmem:[%s12382_s1 + $0x10] sm:$0xff]  }
   0x3   :  { %8224 = vmatpush3.bf16.msra.mxu1 %v9850_v1  ;;  %8156 = vmatpush3.bf16.msra.mxu0 %v9850_v1  ;;  %v9906_v7 = vld [vmem:[%s12382_s1 + $0x8] sm:$0xff]   ;;  %v9915_v8 = vld [vmem:[%s12382_s1] sm:$0xff]   ;;  %v9660_v15 = vld [vmem:[%s12383_s0 + $0x74] sm:$0xff]  }
   0x4   :  { %8225 = vmatprep.subr.bf16.mxu1 %v9799_v0  ;;  %8157 = vmatprep.subr.bf16.mxu0 %v9799_v0  ;;  %v9923_v9 = vld [vmem:[%s12384_s2] sm:$0xff]   ;;  %v9659_v13 = vld [vmem:[%s12383_s0 + $0x6c] sm:$0xff]   ;;  %v9674_v18 = vld [vmem:[%s12383_s0 + $0x18] sm:$0xff]  }
   0x5   :  { %v9658_v10 = vld [vmem:[%s12383_s0 + $0x64] sm:$0xff]   ;;  %v621_v12 = vunpack.c.h.bf16 %v9923_v9  ;;  %v9673_v16 = vld [vmem:[%s12383_s0 + $0x10] sm:$0xff]   ;;  %v9661_v17 = vld [vmem:[%s12383_s0 + $0x7c] sm:$0xff]  }
   0x6   :  { %v9669_v11 = vld [vmem:[%s12383_s0] sm:$0xff]   ;;  %v9671_v14 = vld [vmem:[%s12383_s0 + $0x8] sm:$0xff]   ;;  %v9664_v23 = vld [vmem:[%s12383_s0 + $0x94] sm:$0xff]  }
   0x7   :  { %8226 = vmatpush3.bf16.msra.mxu1 %v9861_v2  ;;  %8158 = vmatpush3.bf16.msra.mxu0 %v9861_v2  ;;  %v9662_v19 = vld [vmem:[%s12383_s0 + $0x84] sm:$0xff]   ;;  %v9663_v21 = vld [vmem:[%s12383_s0 + $0x8c] sm:$0xff]   ;;  %v9665_v25 = vld [vmem:[%s12383_s0 + $0x9c] sm:$0xff]  }
   0x8   :  { %8227 = vmatprep.subr.bf16.mxu1 %v9799_v0  ;;  %8159 = vmatprep.subr.bf16.mxu0 %v9799_v0  ;;  %v9675_v20 = vld [vmem:[%s12383_s0 + $0x20] sm:$0xff]   ;;  %v9676_v22 = vld [vmem:[%s12383_s0 + $0x28] sm:$0xff]   ;;  %v9677_v24 = vld [vmem:[%s12383_s0 + $0x30] sm:$0xff]  }
   0x9   :  { %v9678_v26 = vld [vmem:[%s12383_s0 + $0x38] sm:$0xff]   ;;  %v9666_v27 = vld [vmem:[%s12383_s0 + $0xa4] sm:$0xff]   ;;  %v9667_v29 = vld [vmem:[%s12383_s0 + $0xac] sm:$0xff]  }
   0xa   :  { %v9679_v28 = vld [vmem:[%s12383_s0 + $0x40] sm:$0xff]   ;;  %v9680_v30 = vld [vmem:[%s12383_s0 + $0x48] sm:$0xff]   ;;  %v9668_v31 = vld [vmem:[%s12383_s0 + $0xb4] sm:$0xff]  }
   0xb   :  { %8228 = vmatpush3.bf16.msra.mxu1 %v9870_v3  ;;  %8160 = vmatpush3.bf16.msra.mxu0 %v9870_v3  ;;  %v9681_v32 = vld [vmem:[%s12383_s0 + $0x50] sm:$0xff]   ;;  %v9670_v33 = vld [vmem:[%s12383_s0 + $0xbc] sm:$0xff]   ;;  %v9672_v35 = vld [vmem:[%s12383_s0 + $0xc4] ss:$0 sps:$4 sm:$0xff]  }
   0xc   :  { %8229 = vmatprep.subr.bf16.mxu1 %v9799_v0  ;;  %8161 = vmatprep.subr.bf16.mxu0 %v9799_v0  ;;  %v9682_v34 = vld [vmem:[%s12383_s0 + $0x58] sm:$0xff]   ;;  %v9683_v36 = vld [vmem:[%s12383_s0 + $0x60] ss:$0 sps:$4 sm:$0xff]  }
   0xf   :  { %8230 = vmatpush3.bf16.msra.mxu1 %v9879_v4  ;;  %8162 = vmatpush3.bf16.msra.mxu0 %v9879_v4 }
  0x10   :  { %8231 = vmatprep.subr.bf16.mxu1 %v9799_v0  ;;  %8163 = vmatprep.subr.bf16.mxu0 %v9799_v0 }
  0x13   :  { %8232 = vmatpush3.bf16.msra.mxu1 %v9888_v5  ;;  %8164 = vmatpush3.bf16.msra.mxu0 %v9888_v5 }
  0x14   :  { %8233 = vmatprep.subr.bf16.mxu1 %v9799_v0  ;;  %8165 = vmatprep.subr.bf16.mxu0 %v9799_v0 }
  0x17   :  { %8234 = vmatpush3.bf16.msra.mxu1 %v9897_v6  ;;  %8166 = vmatpush3.bf16.msra.mxu0 %v9897_v6 }
  0x18   :  { %8235 = vmatprep.subr.bf16.mxu1 %v9799_v0  ;;  %8167 = vmatprep.subr.bf16.mxu0 %v9799_v0 }
  0x1b   :  { %8236 = vmatpush3.bf16.msra.mxu1 %v9906_v7  ;;  %8168 = vmatpush3.bf16.msra.mxu0 %v9906_v7 }
  0x1c   :  { %8237 = vmatprep.subr.bf16.mxu1 %v9799_v0  ;;  %8169 = vmatprep.subr.bf16.mxu0 %v9799_v0 }
  0x1f   :  { %8238 = vmatpush3.bf16.msra.mxu1 %v9915_v8  ;;  %8170 = vmatpush3.bf16.msra.mxu0 %v9915_v8 }
  0x20   :  { %8291 = vmatprep.subr.mxu0 %v9799_v0  ;;  %9646 = vmatprep.subr.mxu1 %v9799_v0 }
  0x22   :  { %8240 = vmatmul.mubr.bf16.vlgmr.msra.gmra.mxu1 %v9658_v10  ;;  %8172 = vmatmul.mubr.bf16.vlgmr.msra.gmra.mxu0 %v9669_v11 }
  0x23   :  { %8243 = vmatprep.mubr.msk.bf16.mxu1 %vm9800_vm0, %v9799_v0  ;;  %8292 = vmatpush3.msra.mxu0 %v621_v12 }
  0x24   :  { %8175 = vmatprep.mubr.msk.bf16.mxu0 %vm9800_vm0, %v9799_v0  ;;  %8445 = vmatprep.subr.bf16.mxu0 %v9799_v0 }
  0x25   :  { %9647 = vmatpush3.msra.mxu1 %v621_v12 }
  0x26   :  { %8368 = vmatprep.subr.mxu1 %v9799_v0 }
  0x2a   :  { %8244 = vmatmul.mubr.bf16.gmra.mxu1 %v9659_v13  ;;  %8176 = vmatmul.mubr.bf16.gmra.mxu0 %v9671_v14 }
  0x2b   :  { %8247 = vmatprep.mubr.msk.bf16.mxu1 %vm9800_vm0, %v9799_v0  ;;  %8179 = vmatprep.mubr.msk.bf16.mxu0 %vm9800_vm0, %v9799_v0 }
  0x32   :  { %8248 = vmatmul.mubr.bf16.gmra.mxu1 %v9660_v15  ;;  %8180 = vmatmul.mubr.bf16.gmra.mxu0 %v9673_v16 }
  0x33   :  { %8251 = vmatprep.mubr.msk.bf16.mxu1 %vm9800_vm0, %v9799_v0  ;;  %8183 = vmatprep.mubr.msk.bf16.mxu0 %vm9800_vm0, %v9799_v0 }
  0x3a   :  { %8252 = vmatmul.mubr.bf16.gmra.mxu1 %v9661_v17  ;;  %8184 = vmatmul.mubr.bf16.gmra.mxu0 %v9674_v18 }
  0x3b   :  { %8255 = vmatprep.mubr.msk.bf16.mxu1 %vm9800_vm0, %v9799_v0  ;;  %8187 = vmatprep.mubr.msk.bf16.mxu0 %vm9800_vm0, %v9799_v0 }
  0x42   :  { %8256 = vmatmul.mubr.bf16.gmra.mxu1 %v9662_v19  ;;  %8188 = vmatmul.mubr.bf16.gmra.mxu0 %v9675_v20 }
  0x43   :  { %8259 = vmatprep.mubr.msk.bf16.mxu1 %vm9800_vm0, %v9799_v0  ;;  %8191 = vmatprep.mubr.msk.bf16.mxu0 %vm9800_vm0, %v9799_v0 }
  0x4a   :  { %8260 = vmatmul.mubr.bf16.gmra.mxu1 %v9663_v21  ;;  %8192 = vmatmul.mubr.bf16.gmra.mxu0 %v9676_v22 }
  0x4b   :  { %8263 = vmatprep.mubr.msk.bf16.mxu1 %vm9800_vm0, %v9799_v0  ;;  %8195 = vmatprep.mubr.msk.bf16.mxu0 %vm9800_vm0, %v9799_v0 }
  0x52   :  { %8264 = vmatmul.mubr.bf16.gmra.mxu1 %v9664_v23  ;;  %8196 = vmatmul.mubr.bf16.gmra.mxu0 %v9677_v24 }
  0x53   :  { %8267 = vmatprep.mubr.msk.bf16.mxu1 %vm9800_vm0, %v9799_v0  ;;  %8199 = vmatprep.mubr.msk.bf16.mxu0 %vm9800_vm0, %v9799_v0 }
  0x5a   :  { %8268 = vmatmul.mubr.bf16.gmra.mxu1 %v9665_v25  ;;  %8200 = vmatmul.mubr.bf16.gmra.mxu0 %v9678_v26 }
  0x5b   :  { %8271 = vmatprep.mubr.msk.bf16.mxu1 %vm9800_vm0, %v9799_v0  ;;  %8203 = vmatprep.mubr.msk.bf16.mxu0 %vm9800_vm0, %v9799_v0 }
  0x62   :  { %8272 = vmatmul.mubr.bf16.gmra.mxu1 %v9666_v27  ;;  %8204 = vmatmul.mubr.bf16.gmra.mxu0 %v9679_v28 }
  0x63   :  { %8275 = vmatprep.mubr.msk.bf16.mxu1 %vm9800_vm0, %v9799_v0  ;;  %8207 = vmatprep.mubr.msk.bf16.mxu0 %vm9800_vm0, %v9799_v0 }
  0x6a   :  { %8276 = vmatmul.mubr.bf16.gmra.mxu1 %v9667_v29  ;;  %8208 = vmatmul.mubr.bf16.gmra.mxu0 %v9680_v30 }
  0x6b   :  { %8279 = vmatprep.mubr.msk.bf16.mxu1 %vm9800_vm0, %v9799_v0  ;;  %8211 = vmatprep.mubr.msk.bf16.mxu0 %vm9800_vm0, %v9799_v0 }
  0x72   :  { %8280 = vmatmul.mubr.bf16.gmra.mxu1 %v9668_v31  ;;  %8212 = vmatmul.mubr.bf16.gmra.mxu0 %v9681_v32 }
  0x73   :  { %8283 = vmatprep.mubr.msk.bf16.mxu1 %vm9800_vm0, %v9799_v0  ;;  %8215 = vmatprep.mubr.msk.bf16.mxu0 %vm9800_vm0, %v9799_v0 }
  0x7a   :  { %8284 = vmatmul.mubr.bf16.gmra.mxu1 %v9670_v33  ;;  %8216 = vmatmul.mubr.bf16.gmra.mxu0 %v9682_v34 }
  0x7b   :  { %8287 = vmatprep.mubr.msk.bf16.mxu1 %vm9800_vm0, %v9799_v0  ;;  %8219 = vmatprep.mubr.msk.bf16.mxu0 %vm9800_vm0, %v9799_v0 }
  0x82   :  { %8288 = vmatmul.mubr.bf16.gmra.mxu1 %v9672_v35  ;;  %8220 = vmatmul.mubr.bf16.gmra.mxu0 %v9683_v36 }
  0x83   :  { %8293 = vmatprep.mubr.msk.f32.mxu0 %vm9800_vm0, %v9799_v0  ;;  %8365 = vmatprep.mubr.msk.f32.mxu1 %vm9800_vm0, %v9799_v0 }
  0xe2   :  { %v493_v37 = vpop.f32.mrf.mxu1  ;;  %v10062_v38 = vpop.f32.mrf.mxu0 }
  0xe3   :  { %v595_v39 = vmax.f32 %v493_v37, 0.0 }
  0xe4   :  { %v8241_v40 = vpop.f32.mrf.mxu1  ;;  %v8173_v41 = vpop.f32.mrf.mxu0 }
  0xe5   :  { %8294 = vmatmul.mubr.msk.f32.vlgmr.msra.gmra.mxu0 %vm622_vm1, %v595_v39 }
  0xe6   :  { %8446 = vmatpush3.bf16.msra.mxu0 %v9850_v1  ;;  %v496_v42 = vpop.f32.mrf.mxu1  ;;  %8296 = vmatprep.mubr.msk.f32.mxu0 %vm9800_vm0, %v9799_v0  ;;  %v10068_v43 = vpop.f32.mrf.mxu0 }
  0xe7   :  { %v596_v44 = vmax.f32 %v496_v42, 0.0  ;;  %8447 = vmatprep.subr.bf16.mxu0 %v9799_v0 }
  0xe8   :  { %v8242_v45 = vpop.f32.mrf.mxu1  ;;  %v8174_v46 = vpop.f32.mrf.mxu0 }
  0xe9   :  { %8297 = vmatmul.mubr.msk.f32.gmra.mxu0 %vm622_vm1, %v596_v44 }
  0xea   :  { %v501_v47 = vpop.f32.mrf.mxu1  ;;  %8299 = vmatprep.mubr.msk.f32.mxu0 %vm9800_vm0, %v9799_v0  ;;  %8448 = vmatpush3.bf16.msra.mxu0 %v9861_v2  ;;  %v10075_v48 = vpop.f32.mrf.mxu0 }
  0xeb   :  { %v597_v49 = vmax.f32 %v501_v47, 0.0  ;;  %8449 = vmatprep.subr.bf16.mxu0 %v9799_v0 }
  0xec   :  { %v8245_v50 = vpop.f32.mrf.mxu1  ;;  %v8177_v51 = vpop.f32.mrf.mxu0 }
  0xed   :  { %8300 = vmatmul.mubr.msk.f32.gmra.mxu0 %vm622_vm1, %v597_v49 }
  0xee   :  { %v504_v52 = vpop.f32.mrf.mxu1  ;;  %8302 = vmatprep.mubr.msk.f32.mxu0 %vm9800_vm0, %v9799_v0  ;;  %8450 = vmatpush3.bf16.msra.mxu0 %v9870_v3  ;;  %v10082_v53 = vpop.f32.mrf.mxu0 }
  0xef   :  { %v598_v54 = vmax.f32 %v504_v52, 0.0  ;;  %8451 = vmatprep.subr.bf16.mxu0 %v9799_v0 }
  0xf0   :  { %v8246_v55 = vpop.f32.mrf.mxu1  ;;  %v8178_v56 = vpop.f32.mrf.mxu0 }
  0xf1   :  { %8303 = vmatmul.mubr.msk.f32.gmra.mxu0 %vm622_vm1, %v598_v54 }
  0xf2   :  { %v509_v57 = vpop.f32.mrf.mxu1  ;;  %8305 = vmatprep.mubr.msk.f32.mxu0 %vm9800_vm0, %v9799_v0  ;;  %8452 = vmatpush3.bf16.msra.mxu0 %v9879_v4  ;;  %v10089_v58 = vpop.f32.mrf.mxu0 }
  0xf3   :  { %v599_v59 = vmax.f32 %v509_v57, 0.0  ;;  %8453 = vmatprep.subr.bf16.mxu0 %v9799_v0 }
  0xf4   :  { %v8249_v60 = vpop.f32.mrf.mxu1  ;;  %v8181_v61 = vpop.f32.mrf.mxu0 }
  0xf5   :  { %8306 = vmatmul.mubr.msk.f32.gmra.mxu0 %vm622_vm1, %v599_v59 }
  0xf6   :  { %v512_v62 = vpop.f32.mrf.mxu1  ;;  %8308 = vmatprep.mubr.msk.f32.mxu0 %vm9800_vm0, %v9799_v0  ;;  %8454 = vmatpush3.bf16.msra.mxu0 %v9888_v5  ;;  %v10096_v63 = vpop.f32.mrf.mxu0 }
  0xf7   :  { %v600_v1 = vmax.f32 %v512_v62, 0.0  ;;  %8455 = vmatprep.subr.bf16.mxu0 %v9799_v0 }
  0xf8   :  { %v8250_v2 = vpop.f32.mrf.mxu1  ;;  %v8182_v3 = vpop.f32.mrf.mxu0 }
  0xf9   :  { %8309 = vmatmul.mubr.msk.f32.gmra.mxu0 %vm622_vm1, %v600_v1 }
  0xfa   :  { %v517_v4 = vpop.f32.mrf.mxu1  ;;  %8311 = vmatprep.mubr.msk.f32.mxu0 %vm9800_vm0, %v9799_v0  ;;  %8456 = vmatpush3.bf16.msra.mxu0 %v9897_v6  ;;  %v10103_v10 = vpop.f32.mrf.mxu0 }
  0xfb   :  { %v601_v11 = vmax.f32 %v517_v4, 0.0  ;;  %8457 = vmatprep.subr.bf16.mxu0 %v9799_v0 }
  0xfc   :  { %v8253_v5 = vpop.f32.mrf.mxu1  ;;  %v8185_v12 = vpop.f32.mrf.mxu0 }
  0xfd   :  { %8312 = vmatmul.mubr.msk.f32.gmra.mxu0 %vm622_vm1, %v601_v11 }
  0xfe   :  { %v520_v13 = vpop.f32.mrf.mxu1  ;;  %8314 = vmatprep.mubr.msk.f32.mxu0 %vm9800_vm0, %v9799_v0  ;;  %8458 = vmatpush3.bf16.msra.mxu0 %v9906_v7  ;;  %v10110_v14 = vpop.f32.mrf.mxu0 }
  0xff   :  { %v602_v15 = vmax.f32 %v520_v13, 0.0  ;;  %8459 = vmatprep.subr.bf16.mxu0 %v9799_v0 }
 0x100   :  { %v8254_v6 = vpop.f32.mrf.mxu1  ;;  %v8186_v16 = vpop.f32.mrf.mxu0 }
 0x101   :  { %8315 = vmatmul.mubr.msk.f32.gmra.mxu0 %vm622_vm1, %v602_v15 }
 0x102   :  { %v525_v17 = vpop.f32.mrf.mxu1  ;;  %8317 = vmatprep.mubr.msk.f32.mxu0 %vm9800_vm0, %v9799_v0  ;;  %8460 = vmatpush3.bf16.msra.mxu0 %v9915_v8  ;;  %v10117_v18 = vpop.f32.mrf.mxu0 }
 0x103   :  { %v603_v19 = vmax.f32 %v525_v17, 0.0  ;;  %8658 = vmatprep.subr.mxu0 %v9799_v0 }
 0x104   :  { %v8257_v7 = vpop.f32.mrf.mxu1  ;;  %v8189_v20 = vpop.f32.mrf.mxu0 }
 0x105   :  { %8318 = vmatmul.mubr.msk.f32.gmra.mxu0 %vm622_vm1, %v603_v19 }
 0x106   :  { %v528_v21 = vpop.f32.mrf.mxu1  ;;  %8320 = vmatprep.mubr.msk.f32.mxu0 %vm9800_vm0, %v9799_v0  ;;  %v10123_v22 = vpop.f32.mrf.mxu0 }
 0x107   :  { %v604_v23 = vmax.f32 %v528_v21, 0.0 }
 0x108   :  { %v8258_v24 = vpop.f32.mrf.mxu1  ;;  %v8190_v25 = vpop.f32.mrf.mxu0 }
 0x109   :  { %8321 = vmatmul.mubr.msk.f32.gmra.mxu0 %vm622_vm1, %v604_v23 }
 0x10a   :  { %v533_v8 = vpop.f32.mrf.mxu1  ;;  %8323 = vmatprep.mubr.msk.f32.mxu0 %vm9800_vm0, %v9799_v0  ;;  %v10128_v26 = vpop.f32.mrf.mxu0 }
 0x10b   :  { %v605_v27 = vmax.f32 %v533_v8, 0.0 }
 0x10c   :  { %v8261_v28 = vpop.f32.mrf.mxu1  ;;  %v8193_v29 = vpop.f32.mrf.mxu0 }
 0x10d   :  { %8324 = vmatmul.mubr.msk.f32.gmra.mxu0 %vm622_vm1, %v605_v27 }
 0x10e   :  { %v536_v30 = vpop.f32.mrf.mxu1  ;;  %8326 = vmatprep.mubr.msk.f32.mxu0 %vm9800_vm0, %v9799_v0  ;;  %v10133_v31 = vpop.f32.mrf.mxu0 }
 0x10f   :  { %v606_v32 = vmax.f32 %v536_v30, 0.0 }
 0x110   :  { %v8262_v33 = vpop.f32.mrf.mxu1  ;;  %v8194_v34 = vpop.f32.mrf.mxu0 }
 0x111   :  { %8327 = vmatmul.mubr.msk.f32.gmra.mxu0 %vm622_vm1, %v606_v32 }
 0x112   :  { %v541_v35 = vpop.f32.mrf.mxu1  ;;  %8329 = vmatprep.mubr.msk.f32.mxu0 %vm9800_vm0, %v9799_v0  ;;  %v10138_v36 = vpop.f32.mrf.mxu0 }
 0x113   :  { %v607_v37 = vmax.f32 %v541_v35, 0.0 }
 0x114   :  { %v8265_v39 = vpop.f32.mrf.mxu1  ;;  %v8197_v40 = vpop.f32.mrf.mxu0 }
 0x115   :  { %8330 = vmatmul.mubr.msk.f32.gmra.mxu0 %vm622_vm1, %v607_v37 }
 0x116   :  { %v544_v41 = vpop.f32.mrf.mxu1  ;;  %8332 = vmatprep.mubr.msk.f32.mxu0 %vm9800_vm0, %v9799_v0  ;;  %v10143_v42 = vpop.f32.mrf.mxu0 }
 0x117   :  { %v608_v44 = vmax.f32 %v544_v41, 0.0 }
 0x118   :  { %v8266_v45 = vpop.f32.mrf.mxu1  ;;  %v8198_v46 = vpop.f32.mrf.mxu0 }
 0x119   :  { %8333 = vmatmul.mubr.msk.f32.gmra.mxu0 %vm622_vm1, %v608_v44 }
 0x11a   :  { %v549_v47 = vpop.f32.mrf.mxu1  ;;  %8335 = vmatprep.mubr.msk.f32.mxu0 %vm9800_vm0, %v9799_v0  ;;  %v10148_v49 = vpop.f32.mrf.mxu0 }
 0x11b   :  { %v609_v50 = vmax.f32 %v549_v47, 0.0 }
 0x11c   :  { %v8269_v51 = vpop.f32.mrf.mxu1  ;;  %v8201_v52 = vpop.f32.mrf.mxu0 }
 0x11d   :  { %8336 = vmatmul.mubr.msk.f32.gmra.mxu0 %vm622_vm1, %v609_v50  ;;  %v9684_v51 = vld [vmem:[%s12383_s0 + $0xc8] sm:$0xff]  }
 0x11e   :  { %v552_v54 = vpop.f32.mrf.mxu1  ;;  %8338 = vmatprep.mubr.msk.f32.mxu0 %vm9800_vm0, %v9799_v0  ;;  %v10153_v55 = vpop.f32.mrf.mxu0 }
 0x11f   :  { %v610_v56 = vmax.f32 %v552_v54, 0.0  ;;  %v357_v54 = vunpack.c.l.bf16 %v9923_v9  ;;  %v331_v9 = vmax.f32 %v10062_v38, 0.0  ;;  %v333_v38 = vmax.f32 %v10075_v48, 0.0 }
 0x120   :  { %v8270_v57 = vpop.f32.mrf.mxu1  ;;  %v8202_v59 = vpop.f32.mrf.mxu0  ;;  %v335_v48 = vmax.f32 %v10089_v58, 0.0  ;;  %v337_v58 = vmax.f32 %v10103_v10, 0.0  ;;  %v339_v10 = vmax.f32 %v10117_v18, 0.0  ;;  %v341_v18 = vmax.f32 %v10128_v26, 0.0 }
 0x121   :  { %8339 = vmatmul.mubr.msk.f32.gmra.mxu0 %vm622_vm1, %v610_v56  ;;  %v1415_v59 = vld [vmem:[%s12384_s2 + $0x8] sm:$0xf]  ;;  %v343_v26 = vmax.f32 %v10138_v36, 0.0  ;;  %v345_v36 = vmax.f32 %v10148_v49, 0.0 }
 0x122   :  { %v557_v60 = vpop.f32.mrf.mxu1  ;;  %8341 = vmatprep.mubr.msk.f32.mxu0 %vm9800_vm0, %v9799_v0  ;;  %v10158_v61 = vpop.f32.mrf.mxu0 }
 0x123   :  { %v611_v62 = vmax.f32 %v557_v60, 0.0  ;;  %v347_v49 = vmax.f32 %v10158_v61, 0.0 }
 0x124   :  { %v8273_v1 = vpop.f32.mrf.mxu1  ;;  %v8205_v2 = vpop.f32.mrf.mxu0 }
 0x125   :  { %8342 = vmatmul.mubr.msk.f32.gmra.mxu0 %vm622_vm1, %v611_v62 }
 0x126   :  { %v560_v3 = vpop.f32.mrf.mxu1  ;;  %8344 = vmatprep.mubr.msk.f32.mxu0 %vm9800_vm0, %v9799_v0  ;;  %v10163_v4 = vpop.f32.mrf.mxu0 }
 0x127   :  { %v612_v11 = vmax.f32 %v560_v3, 0.0  ;;  %v1416_v3 = vunpack.c.l.bf16 %v1415_v59 }
 0x128   :  { %v8274_v5 = vpop.f32.mrf.mxu1  ;;  %v8206_v12 = vpop.f32.mrf.mxu0 }
 0x129   :  { %8345 = vmatmul.mubr.msk.f32.gmra.mxu0 %vm622_vm1, %v612_v11  ;;  %v9685_v12 = vld [vmem:[%s12383_s0 + $0xd0] sm:$0xff]  }
 0x12a   :  { %v565_v13 = vpop.f32.mrf.mxu1  ;;  %8347 = vmatprep.mubr.msk.f32.mxu0 %vm9800_vm0, %v9799_v0  ;;  %v10168_v15 = vpop.f32.mrf.mxu0 }
 0x12b   :  { %v613_v6 = vmax.f32 %v565_v13, 0.0  ;;  %v332_v13 = vmax.f32 %v10068_v43, 0.0  ;;  %v334_v43 = vmax.f32 %v10082_v53, 0.0  ;;  %v336_v53 = vmax.f32 %v10096_v63, 0.0 }
 0x12c   :  { %v8277_v16 = vpop.f32.mrf.mxu1  ;;  %v8209_v17 = vpop.f32.mrf.mxu0  ;;  %v338_v63 = vmax.f32 %v10110_v14, 0.0  ;;  %v340_v14 = vmax.f32 %v10123_v22, 0.0  ;;  %v342_v22 = vmax.f32 %v10133_v31, 0.0  ;;  %v344_v31 = vmax.f32 %v10143_v42, 0.0 }
 0x12d   :  { %8348 = vmatmul.mubr.msk.f32.gmra.mxu0 %vm622_vm1, %v613_v6  ;;  %v9686_v6 = vld [vmem:[%s12383_s0 + $0xd8] sm:$0xff]   ;;  %v9687_v16 = vld [vmem:[%s12383_s0 + $0xe0] sm:$0xff]   ;;  %v9688_v17 = vld [vmem:[%s12383_s0 + $0xe8] sm:$0xff]   ;;  %v346_v42 = vmax.f32 %v10153_v55, 0.0  ;;  %v348_v55 = vmax.f32 %v10163_v4, 0.0  ;;  %v349_v61 = vmax.f32 %v10168_v15, 0.0 }
 0x12e   :  { %v568_v19 = vpop.f32.mrf.mxu1  ;;  %8350 = vmatprep.mubr.msk.f32.mxu0 %vm9800_vm0, %v9799_v0  ;;  %v10173_v7 = vpop.f32.mrf.mxu0 }
 0x12f   :  { %v614_v20 = vmax.f32 %v568_v19, 0.0  ;;  %v9689_v19 = vld [vmem:[%s12383_s0 + $0xf0] sm:$0xff]   ;;  %v350_v4 = vmax.f32 %v10173_v7, 0.0 }
 0x130   :  { %v8278_v21 = vpop.f32.mrf.mxu1  ;;  %v8210_v23 = vpop.f32.mrf.mxu0 }
 0x131   :  { %8351 = vmatmul.mubr.msk.f32.gmra.mxu0 %vm622_vm1, %v614_v20  ;;  %v9690_v20 = vld [vmem:[%s12383_s0 + $0xf8] sm:$0xff]   ;;  %v9691_v21 = vld [vmem:[%s12383_s0 + $0x100] sm:$0xff]   ;;  %v9692_v23 = vld [vmem:[%s12383_s0 + $0x108] sm:$0xff]  }
 0x132   :  { %v573_v24 = vpop.f32.mrf.mxu1  ;;  %8353 = vmatprep.mubr.msk.f32.mxu0 %vm9800_vm0, %v9799_v0  ;;  %v10178_v25 = vpop.f32.mrf.mxu0 }
 0x133   :  { %v615_v8 = vmax.f32 %v573_v24, 0.0  ;;  %v9693_v24 = vld [vmem:[%s12383_s0 + $0x110] sm:$0xff]   ;;  %v351_v15 = vmax.f32 %v10178_v25, 0.0 }
 0x134   :  { %v8281_v27 = vpop.f32.mrf.mxu1  ;;  %v8213_v28 = vpop.f32.mrf.mxu0 }
 0x135   :  { %8354 = vmatmul.mubr.msk.f32.gmra.mxu0 %vm622_vm1, %v615_v8  ;;  %v9694_v8 = vld [vmem:[%s12383_s0 + $0x118] sm:$0xff]   ;;  %v9695_v27 = vld [vmem:[%s12383_s0 + $0x120] sm:$0xff]   ;;  %v9696_v28 = vld [vmem:[%s12383_s0 + $0x128] ss:$0 sps:$4 sm:$0xff]  }
 0x136   :  { %v576_v29 = vpop.f32.mrf.mxu1  ;;  %8356 = vmatprep.mubr.msk.f32.mxu0 %vm9800_vm0, %v9799_v0  ;;  %v10183_v30 = vpop.f32.mrf.mxu0 }
 0x137   :  { %v616_v32 = vmax.f32 %v576_v29, 0.0  ;;  %v352_v7 = vmax.f32 %v10183_v30, 0.0 }
 0x138   :  { %v8282_v33 = vpop.f32.mrf.mxu1  ;;  %v8214_v34 = vpop.f32.mrf.mxu0 }
 0x139   :  { %8357 = vmatmul.mubr.msk.f32.gmra.mxu0 %vm622_vm1, %v616_v32 }
 0x13a   :  { %v581_v35 = vpop.f32.mrf.mxu1  ;;  %8359 = vmatprep.mubr.msk.f32.mxu0 %vm9800_vm0, %v9799_v0  ;;  %v10188_v37 = vpop.f32.mrf.mxu0 }
 0x13b   :  { %v617_v39 = vmax.f32 %v581_v35, 0.0  ;;  %v353_v25 = vmax.f32 %v10188_v37, 0.0 }
 0x13c   :  { %v8285_v40 = vpop.f32.mrf.mxu1  ;;  %v8217_v41 = vpop.f32.mrf.mxu0 }
 0x13d   :  { %8360 = vmatmul.mubr.msk.f32.gmra.mxu0 %vm622_vm1, %v617_v39 }
 0x13e   :  { %v584_v44 = vpop.f32.mrf.mxu1  ;;  %8362 = vmatprep.mubr.msk.f32.mxu0 %vm9800_vm0, %v9799_v0  ;;  %v10193_v45 = vpop.f32.mrf.mxu0 }
 0x13f   :  { %v618_v46 = vmax.f32 %v584_v44, 0.0  ;;  %v354_v29 = vmax.f32 %v10193_v45, 0.0 }
 0x140   :  { %v8286_v47 = vpop.f32.mrf.mxu1  ;;  %v8218_v50 = vpop.f32.mrf.mxu0 }
 0x141   :  { %8363 = vmatmul.mubr.msk.f32.gmra.mxu0 %vm622_vm1, %v618_v46 }
 0x142   :  { %v589_v52 = vpop.f32.mrf.mxu1  ;;  %8461 = vmatprep.mubr.msk.bf16.mxu0 %vm9800_vm0, %v9799_v0  ;;  %v10202_v56 = vpop.f32.mrf.mxu0 }
 0x143   :  { %v619_v57 = vmax.f32 %v589_v52, 0.0  ;;  %v355_v32 = vmax.f32 %v10202_v56, 0.0 }
 0x144   :  { %v8221_v60 = vpop.f32.mrf.mxu0  ;;  %v8289_v62 = vpop.f32.mrf.mxu1 }
 0x145   :  { %8366 = vmatmul.mubr.msk.f32.vlgmr.msra.gmra.mxu1 %vm622_vm1, %v619_v57  ;;  %8462 = vmatmul.mubr.bf16.vlgmr.msra.gmra.mxu0 %v9684_v51 }
 0x146   :  { %8369 = vmatpush3.msra.mxu1 %v357_v54  ;;  %8370 = vmatprep.mubr.msk.f32.mxu1 %vm9800_vm0, %v9799_v0  ;;  %v328_v1 = vpop.f32.mrf.mxu0  ;;  %v592_v2 = vpop.f32.mrf.mxu1 }
 0x147   :  { %8465 = vmatprep.mubr.msk.bf16.mxu0 %vm9800_vm0, %v9799_v0  ;;  %8513 = vmatprep.subr.mxu1 %v9799_v0 }
 0x148   :  { %v8222_v11 = vpop.f32.mrf.mxu0  ;;  %v8290_v5 = vpop.f32.mrf.mxu1 }
 0x149   :  { %8371 = vmatmul.mubr.msk.f32.vlgmr.msra.gmra.mxu1 %vm622_vm1, %v331_v9 }
 0x14a   :  { %8373 = vmatprep.mubr.msk.f32.mxu1 %vm9800_vm0, %v9799_v0  ;;  %8514 = vmatpush3.msra.mxu1 %v1416_v3 }
 0x14b   :  { %8590 = vmatprep.subr.bf16.mxu1 %v9799_v0 }
 0x14d   :  { %8374 = vmatmul.mubr.msk.f32.gmra.mxu1 %vm622_vm1, %v332_v13  ;;  %8466 = vmatmul.mubr.bf16.gmra.mxu0 %v9685_v12 }
 0x14e   :  { %8376 = vmatprep.mubr.msk.f32.mxu1 %vm9800_vm0, %v9799_v0  ;;  %8469 = vmatprep.mubr.msk.bf16.mxu0 %vm9800_vm0, %v9799_v0 }
 0x151   :  { %8377 = vmatmul.mubr.msk.f32.gmra.mxu1 %vm622_vm1, %v333_v38 }
 0x152   :  { %8379 = vmatprep.mubr.msk.f32.mxu1 %vm9800_vm0, %v9799_v0 }
 0x155   :  { %8380 = vmatmul.mubr.msk.f32.gmra.mxu1 %vm622_vm1, %v334_v43  ;;  %8470 = vmatmul.mubr.bf16.gmra.mxu0 %v9686_v6 }
 0x156   :  { %8382 = vmatprep.mubr.msk.f32.mxu1 %vm9800_vm0, %v9799_v0  ;;  %8473 = vmatprep.mubr.msk.bf16.mxu0 %vm9800_vm0, %v9799_v0 }
 0x159   :  { %8383 = vmatmul.mubr.msk.f32.gmra.mxu1 %vm622_vm1, %v335_v48 }
 0x15a   :  { %8385 = vmatprep.mubr.msk.f32.mxu1 %vm9800_vm0, %v9799_v0 }
 0x15d   :  { %8386 = vmatmul.mubr.msk.f32.gmra.mxu1 %vm622_vm1, %v336_v53  ;;  %8474 = vmatmul.mubr.bf16.gmra.mxu0 %v9687_v16 }
 0x15e   :  { %8388 = vmatprep.mubr.msk.f32.mxu1 %vm9800_vm0, %v9799_v0  ;;  %8477 = vmatprep.mubr.msk.bf16.mxu0 %vm9800_vm0, %v9799_v0 }
 0x161   :  { %8389 = vmatmul.mubr.msk.f32.gmra.mxu1 %vm622_vm1, %v337_v58 }
 0x162   :  { %8391 = vmatprep.mubr.msk.f32.mxu1 %vm9800_vm0, %v9799_v0 }
 0x165   :  { %8392 = vmatmul.mubr.msk.f32.gmra.mxu1 %vm622_vm1, %v338_v63  ;;  %8478 = vmatmul.mubr.bf16.gmra.mxu0 %v9688_v17 }
 0x166   :  { %8394 = vmatprep.mubr.msk.f32.mxu1 %vm9800_vm0, %v9799_v0  ;;  %8481 = vmatprep.mubr.msk.bf16.mxu0 %vm9800_vm0, %v9799_v0 }
 0x169   :  { %8395 = vmatmul.mubr.msk.f32.gmra.mxu1 %vm622_vm1, %v339_v10 }
 0x16a   :  { %8397 = vmatprep.mubr.msk.f32.mxu1 %vm9800_vm0, %v9799_v0 }
 0x16d   :  { %8398 = vmatmul.mubr.msk.f32.gmra.mxu1 %vm622_vm1, %v340_v14  ;;  %8482 = vmatmul.mubr.bf16.gmra.mxu0 %v9689_v19 }
 0x16e   :  { %8400 = vmatprep.mubr.msk.f32.mxu1 %vm9800_vm0, %v9799_v0  ;;  %8485 = vmatprep.mubr.msk.bf16.mxu0 %vm9800_vm0, %v9799_v0 }
 0x171   :  { %8401 = vmatmul.mubr.msk.f32.gmra.mxu1 %vm622_vm1, %v341_v18 }
 0x172   :  { %8403 = vmatprep.mubr.msk.f32.mxu1 %vm9800_vm0, %v9799_v0 }
 0x175   :  { %8404 = vmatmul.mubr.msk.f32.gmra.mxu1 %vm622_vm1, %v342_v22  ;;  %8486 = vmatmul.mubr.bf16.gmra.mxu0 %v9690_v20 }
 0x176   :  { %8406 = vmatprep.mubr.msk.f32.mxu1 %vm9800_vm0, %v9799_v0  ;;  %8489 = vmatprep.mubr.msk.bf16.mxu0 %vm9800_vm0, %v9799_v0 }
 0x179   :  { %8407 = vmatmul.mubr.msk.f32.gmra.mxu1 %vm622_vm1, %v343_v26 }
 0x17a   :  { %8409 = vmatprep.mubr.msk.f32.mxu1 %vm9800_vm0, %v9799_v0 }
 0x17d   :  { %8410 = vmatmul.mubr.msk.f32.gmra.mxu1 %vm622_vm1, %v344_v31  ;;  %8490 = vmatmul.mubr.bf16.gmra.mxu0 %v9691_v21 }
 0x17e   :  { %8412 = vmatprep.mubr.msk.f32.mxu1 %vm9800_vm0, %v9799_v0  ;;  %8493 = vmatprep.mubr.msk.bf16.mxu0 %vm9800_vm0, %v9799_v0 }
 0x181   :  { %8413 = vmatmul.mubr.msk.f32.gmra.mxu1 %vm622_vm1, %v345_v36 }
 0x182   :  { %8415 = vmatprep.mubr.msk.f32.mxu1 %vm9800_vm0, %v9799_v0 }
 0x185   :  { %8416 = vmatmul.mubr.msk.f32.gmra.mxu1 %vm622_vm1, %v346_v42  ;;  %8494 = vmatmul.mubr.bf16.gmra.mxu0 %v9692_v23 }
 0x186   :  { %8418 = vmatprep.mubr.msk.f32.mxu1 %vm9800_vm0, %v9799_v0  ;;  %8497 = vmatprep.mubr.msk.bf16.mxu0 %vm9800_vm0, %v9799_v0 }
 0x189   :  { %8419 = vmatmul.mubr.msk.f32.gmra.mxu1 %vm622_vm1, %v347_v49 }
 0x18a   :  { %8421 = vmatprep.mubr.msk.f32.mxu1 %vm9800_vm0, %v9799_v0 }
 0x18d   :  { %8422 = vmatmul.mubr.msk.f32.gmra.mxu1 %vm622_vm1, %v348_v55  ;;  %8498 = vmatmul.mubr.bf16.gmra.mxu0 %v9693_v24 }
 0x18e   :  { %8424 = vmatprep.mubr.msk.f32.mxu1 %vm9800_vm0, %v9799_v0  ;;  %8501 = vmatprep.mubr.msk.bf16.mxu0 %vm9800_vm0, %v9799_v0 }
 0x191   :  { %8425 = vmatmul.mubr.msk.f32.gmra.mxu1 %vm622_vm1, %v349_v61  ;;  %v10428_v61 = vld [vmem:[%s12382_s1 + $0x38] sm:$0xff]  }
 0x192   :  { %8427 = vmatprep.mubr.msk.f32.mxu1 %vm9800_vm0, %v9799_v0 }
 0x195   :  { %8428 = vmatmul.mubr.msk.f32.gmra.mxu1 %vm622_vm1, %v350_v4  ;;  %8502 = vmatmul.mubr.bf16.gmra.mxu0 %v9694_v8 }
 0x196   :  { %8430 = vmatprep.mubr.msk.f32.mxu1 %vm9800_vm0, %v9799_v0  ;;  %8505 = vmatprep.mubr.msk.bf16.mxu0 %vm9800_vm0, %v9799_v0 }
 0x199   :  { %8431 = vmatmul.mubr.msk.f32.gmra.mxu1 %vm622_vm1, %v351_v15 }
 0x19a   :  { %8433 = vmatprep.mubr.msk.f32.mxu1 %vm9800_vm0, %v9799_v0 }
 0x19d   :  { %8434 = vmatmul.mubr.msk.f32.gmra.mxu1 %vm622_vm1, %v352_v7  ;;  %8506 = vmatmul.mubr.bf16.gmra.mxu0 %v9695_v27 }
 0x19e   :  { %8436 = vmatprep.mubr.msk.f32.mxu1 %vm9800_vm0, %v9799_v0  ;;  %8509 = vmatprep.mubr.msk.bf16.mxu0 %vm9800_vm0, %v9799_v0 }
 0x1a1   :  { %8437 = vmatmul.mubr.msk.f32.gmra.mxu1 %vm622_vm1, %v353_v25 }
 0x1a2   :  { %8439 = vmatprep.mubr.msk.f32.mxu1 %vm9800_vm0, %v9799_v0 }
 0x1a5   :  { %v10365_v30 = vpop.f32.mrf.mxu0  ;;  %8440 = vmatmul.mubr.msk.f32.gmra.mxu1 %vm622_vm1, %v354_v29  ;;  %8510 = vmatmul.mubr.bf16.gmra.mxu0 %v9696_v28  ;;  %v10444_v29 = vld [vmem:[%s12382_s1 + $0x30] sm:$0xff]  }
 0x1a6   :  { %8442 = vmatprep.mubr.msk.f32.mxu1 %vm9800_vm0, %v9799_v0  ;;  %8660 = vmatprep.mubr.msk.f32.mxu0 %vm9800_vm0, %v9799_v0 }
 0x1a7   :  { %v8295_v33 = vpop.f32.mrf.mxu0 }
 0x1a9   :  { %v10373_v34 = vpop.f32.mrf.mxu0  ;;  %8443 = vmatmul.mubr.msk.f32.gmra.mxu1 %vm622_vm1, %v355_v32 }
 0x1aa   :  { %8515 = vmatprep.mubr.msk.f32.mxu1 %vm9800_vm0, %v9799_v0 }
 0x1ab   :  { %v8298_v35 = vpop.f32.mrf.mxu0 }
 0x1ad   :  { %v10378_v37 = vpop.f32.mrf.mxu0 }
 0x1af   :  { %v8301_v39 = vpop.f32.mrf.mxu0 }
 0x1b1   :  { %v10380_v40 = vpop.f32.mrf.mxu0 }
 0x1b3   :  { %v8304_v41 = vpop.f32.mrf.mxu0 }
 0x1b5   :  { %v10382_v44 = vpop.f32.mrf.mxu0 }
 0x1b7   :  { %v8307_v45 = vpop.f32.mrf.mxu0 }
 0x1b8   :  { %v10456_v45 = vld [vmem:[%s12382_s1 + $0x28] sm:$0xff]  }
 0x1b9   :  { %v10384_v46 = vpop.f32.mrf.mxu0 }
 0x1bb   :  { %v8310_v47 = vpop.f32.mrf.mxu0 }
 0x1bd   :  { %v10386_v50 = vpop.f32.mrf.mxu0 }
 0x1bf   :  { %v8313_v51 = vpop.f32.mrf.mxu0 }
 0x1c1   :  { %v10388_v52 = vpop.f32.mrf.mxu0 }
 0x1c3   :  { %v8316_v54 = vpop.f32.mrf.mxu0 }
 0x1c5   :  { %v10390_v56 = vpop.f32.mrf.mxu0 }
 0x1c7   :  { %v8319_v57 = vpop.f32.mrf.mxu0 }
 0x1c9   :  { %v10392_v59 = vpop.f32.mrf.mxu0 }
 0x1cb   :  { %v8322_v60 = vpop.f32.mrf.mxu0 }
 0x1cd   :  { %v10394_v62 = vpop.f32.mrf.mxu0 }
 0x1cf   :  { %v8325_v1 = vpop.f32.mrf.mxu0 }
 0x1d0   :  { %v10468_v1 = vld [vmem:[%s12382_s1 + $0x20] sm:$0xff]  }
 0x1d1   :  { %v10396_v2 = vpop.f32.mrf.mxu0  ;;  %12396 = vst [vmem:[#allocation2_spill] sm:$0xff] %v10468_v1 }
 0x1d3   :  { %v8328_v3 = vpop.f32.mrf.mxu0 }
 0x1d5   :  { %v10398_v9 = vpop.f32.mrf.mxu0 }
 0x1d7   :  { %v8331_v11 = vpop.f32.mrf.mxu0 }
 0x1d9   :  { %v10400_v5 = vpop.f32.mrf.mxu0 }
 0x1db   :  { %v8334_v12 = vpop.f32.mrf.mxu0 }
 0x1dd   :  { %v10402_v13 = vpop.f32.mrf.mxu0 }
 0x1df   :  { %v8337_v38 = vpop.f32.mrf.mxu0 }
 0x1e1   :  { %v10404_v6 = vpop.f32.mrf.mxu0 }
 0x1e3   :  { %v8340_v43 = vpop.f32.mrf.mxu0 }
 0x1e5   :  { %v10406_v48 = vpop.f32.mrf.mxu0 }
 0x1e7   :  { %v8343_v16 = vpop.f32.mrf.mxu0 }
 0x1e8   :  { %v10480_v16 = vld [vmem:[%s12382_s1 + $0x18] sm:$0xff]  }
 0x1e9   :  { %v10408_v53 = vpop.f32.mrf.mxu0  ;;  %12397 = vst [vmem:[#allocation3_spill] sm:$0xff] %v10480_v16 }
 0x1eb   :  { %v8346_v58 = vpop.f32.mrf.mxu0 }
 0x1ed   :  { %v10410_v17 = vpop.f32.mrf.mxu0 }
 0x1ef   :  { %v8349_v63 = vpop.f32.mrf.mxu0 }
 0x1f1   :  { %v10412_v10 = vpop.f32.mrf.mxu0 }
 0x1f3   :  { %v8352_v19 = vpop.f32.mrf.mxu0 }
 0x1f5   :  { %v10414_v14 = vpop.f32.mrf.mxu0 }
 0x1f7   :  { %v8355_v18 = vpop.f32.mrf.mxu0 }
 0x1f9   :  { %v10416_v20 = vpop.f32.mrf.mxu0 }
 0x1fb   :  { %v8358_v22 = vpop.f32.mrf.mxu0 }
 0x1fd   :  { %v10418_v26 = vpop.f32.mrf.mxu0 }
 0x1ff   :  { %v8361_v21 = vpop.f32.mrf.mxu0 }
 0x200   :  { %v10492_v21 = vld [vmem:[%s12382_s1 + $0x10] sm:$0xff]  }
 0x201   :  { %v10420_v31 = vpop.f32.mrf.mxu0  ;;  %12398 = vst [vmem:[#allocation4_spill] sm:$0xff] %v10492_v21 }
 0x203   :  { %v8364_v36 = vpop.f32.mrf.mxu0 }
 0x205   :  { %v10422_v23 = vpop.f32.mrf.mxu1  ;;  %v1288_v42 = vpop.f32.mrf.mxu0 }
 0x206   :  { %v1390_v49 = vmax.f32 %v1288_v42, 0.0 }
 0x207   :  { %v8367_v24 = vpop.f32.mrf.mxu1  ;;  %v8463_v55 = vpop.f32.mrf.mxu0 }
 0x208   :  { %8516 = vmatmul.mubr.msk.f32.vlgmr.msra.gmra.mxu1 %vm622_vm1, %v1390_v49 }
 0x209   :  { %8591 = vmatpush3.bf16.msra.mxu1 %v10428_v61  ;;  %v10431_v8 = vpop.f32.mrf.mxu1  ;;  %v1291_v4 = vpop.f32.mrf.mxu0  ;;  %8518 = vmatprep.mubr.msk.f32.mxu1 %vm9800_vm0, %v9799_v0 }
 0x20a   :  { %v1391_v15 = vmax.f32 %v1291_v4, 0.0  ;;  %8592 = vmatprep.subr.bf16.mxu1 %v9799_v0  ;;  %v10504_v4 = vld [vmem:[%s12382_s1 + $0x8] sm:$0xff]  }
 0x20b   :  { %v8372_v27 = vpop.f32.mrf.mxu1  ;;  %v8464_v7 = vpop.f32.mrf.mxu0  ;;  %12399 = vst [vmem:[#allocation5_spill] sm:$0xff] %v10504_v4 }
 0x20c   :  { %8519 = vmatmul.mubr.msk.f32.gmra.mxu1 %vm622_vm1, %v1391_v15 }
 0x20d   :  { %v10437_v25 = vpop.f32.mrf.mxu1  ;;  %v1296_v28 = vpop.f32.mrf.mxu0  ;;  %8521 = vmatprep.mubr.msk.f32.mxu1 %vm9800_vm0, %v9799_v0  ;;  %8593 = vmatpush3.bf16.msra.mxu1 %v10444_v29 }
 0x20e   :  { %v1392_v32 = vmax.f32 %v1296_v28, 0.0  ;;  %8594 = vmatprep.subr.bf16.mxu1 %v9799_v0 }
 0x20f   :  { %v8375_v33 = vpop.f32.mrf.mxu1  ;;  %v8467_v35 = vpop.f32.mrf.mxu0 }
 0x210   :  { %8522 = vmatmul.mubr.msk.f32.gmra.mxu1 %vm622_vm1, %v1392_v32  ;;  %v10516_v33 = vld [vmem:[%s12382_s1] sm:$0xff]  }
 0x211   :  { %v10449_v39 = vpop.f32.mrf.mxu1  ;;  %v1299_v41 = vpop.f32.mrf.mxu0  ;;  %8524 = vmatprep.mubr.msk.f32.mxu1 %vm9800_vm0, %v9799_v0  ;;  %8595 = vmatpush3.bf16.msra.mxu1 %v10456_v45  ;;  %12400 = vst [vmem:[#allocation6_spill] sm:$0xff] %v10516_v33 }
 0x212   :  { %v1393_v47 = vmax.f32 %v1299_v41, 0.0  ;;  %8596 = vmatprep.subr.bf16.mxu1 %v9799_v0 }
 0x213   :  { %v8378_v51 = vpop.f32.mrf.mxu1  ;;  %v8468_v54 = vpop.f32.mrf.mxu0 }
 0x214   :  { %8525 = vmatmul.mubr.msk.f32.gmra.mxu1 %vm622_vm1, %v1393_v47 }
 0x215   :  { %v10461_v57 = vpop.f32.mrf.mxu1  ;;  %v1304_v60 = vpop.f32.mrf.mxu0  ;;  %8527 = vmatprep.mubr.msk.f32.mxu1 %vm9800_vm0, %v9799_v0  ;;  %8597 = vmatpush3.bf16.msra.mxu1 %v10468_v1 }
 0x216   :  { %v1394_v3 = vmax.f32 %v1304_v60, 0.0  ;;  %8598 = vmatprep.subr.bf16.mxu1 %v9799_v0 }
 0x217   :  { %v8381_v11 = vpop.f32.mrf.mxu1  ;;  %v8471_v12 = vpop.f32.mrf.mxu0 }
 0x218   :  { %8528 = vmatmul.mubr.msk.f32.gmra.mxu1 %vm622_vm1, %v1394_v3 }
 0x219   :  { %v10473_v38 = vpop.f32.mrf.mxu1  ;;  %v1307_v43 = vpop.f32.mrf.mxu0  ;;  %8530 = vmatprep.mubr.msk.f32.mxu1 %vm9800_vm0, %v9799_v0  ;;  %8599 = vmatpush3.bf16.msra.mxu1 %v10480_v16 }
 0x21a   :  { %v1395_v58 = vmax.f32 %v1307_v43, 0.0  ;;  %8600 = vmatprep.subr.bf16.mxu1 %v9799_v0 }
 0x21b   :  { %v8384_v63 = vpop.f32.mrf.mxu1  ;;  %v8472_v19 = vpop.f32.mrf.mxu0 }
 0x21c   :  { %8531 = vmatmul.mubr.msk.f32.gmra.mxu1 %vm622_vm1, %v1395_v58 }
 0x21d   :  { %v10485_v18 = vpop.f32.mrf.mxu1  ;;  %v1312_v22 = vpop.f32.mrf.mxu0  ;;  %8533 = vmatprep.mubr.msk.f32.mxu1 %vm9800_vm0, %v9799_v0  ;;  %8601 = vmatpush3.bf16.msra.mxu1 %v10492_v21 }
 0x21e   :  { %v1396_v36 = vmax.f32 %v1312_v22, 0.0  ;;  %8602 = vmatprep.subr.bf16.mxu1 %v9799_v0 }
 0x21f   :  { %v8387_v42 = vpop.f32.mrf.mxu1  ;;  %v8475_v49 = vpop.f32.mrf.mxu0 }
 0x220   :  { %8534 = vmatmul.mubr.msk.f32.gmra.mxu1 %vm622_vm1, %v1396_v36 }
 0x221   :  { %v10497_v24 = vpop.f32.mrf.mxu1  ;;  %v1315_v55 = vpop.f32.mrf.mxu0  ;;  %8536 = vmatprep.mubr.msk.f32.mxu1 %vm9800_vm0, %v9799_v0  ;;  %8603 = vmatpush3.bf16.msra.mxu1 %v10504_v4 }
 0x222   :  { %v1397_v15 = vmax.f32 %v1315_v55, 0.0  ;;  %8604 = vmatprep.subr.bf16.mxu1 %v9799_v0 }
 0x223   :  { %v8390_v27 = vpop.f32.mrf.mxu1  ;;  %v8476_v7 = vpop.f32.mrf.mxu0 }
 0x224   :  { %8537 = vmatmul.mubr.msk.f32.gmra.mxu1 %vm622_vm1, %v1397_v15 }
 0x225   :  { %v10509_v28 = vpop.f32.mrf.mxu1  ;;  %v1320_v32 = vpop.f32.mrf.mxu0  ;;  %8539 = vmatprep.mubr.msk.f32.mxu1 %vm9800_vm0, %v9799_v0  ;;  %8605 = vmatpush3.bf16.msra.mxu1 %v10516_v33 }
 0x226   :  { %v1398_v35 = vmax.f32 %v1320_v32, 0.0  ;;  %8803 = vmatprep.subr.mxu1 %v9799_v0 }
 0x227   :  { %v8393_v41 = vpop.f32.mrf.mxu1  ;;  %v8479_v47 = vpop.f32.mrf.mxu0 }
 0x228   :  { %8540 = vmatmul.mubr.msk.f32.gmra.mxu1 %vm622_vm1, %v1398_v35 }
 0x229   :  { %v10521_v51 = vpop.f32.mrf.mxu1  ;;  %v1323_v54 = vpop.f32.mrf.mxu0  ;;  %8542 = vmatprep.mubr.msk.f32.mxu1 %vm9800_vm0, %v9799_v0 }
 0x22a   :  { %v1399_v60 = vmax.f32 %v1323_v54, 0.0 }
 0x22b   :  { %v8396_v3 = vpop.f32.mrf.mxu1  ;;  %v8480_v11 = vpop.f32.mrf.mxu0 }
 0x22c   :  { %8543 = vmatmul.mubr.msk.f32.gmra.mxu1 %vm622_vm1, %v1399_v60 }
 0x22d   :  { %v10526_v12 = vpop.f32.mrf.mxu1  ;;  %v1328_v43 = vpop.f32.mrf.mxu0  ;;  %8545 = vmatprep.mubr.msk.f32.mxu1 %vm9800_vm0, %v9799_v0 }
 0x22e   :  { %v1400_v58 = vmax.f32 %v1328_v43, 0.0 }
 0x22f   :  { %v8399_v63 = vpop.f32.mrf.mxu1  ;;  %v8483_v19 = vpop.f32.mrf.mxu0 }
 0x230   :  { %8546 = vmatmul.mubr.msk.f32.gmra.mxu1 %vm622_vm1, %v1400_v58 }
 0x231   :  { %v10531_v22 = vpop.f32.mrf.mxu1  ;;  %v1331_v36 = vpop.f32.mrf.mxu0  ;;  %8548 = vmatprep.mubr.msk.f32.mxu1 %vm9800_vm0, %v9799_v0 }
 0x232   :  { %v1401_v42 = vmax.f32 %v1331_v36, 0.0 }
 0x233   :  { %v8402_v49 = vpop.f32.mrf.mxu1  ;;  %v8484_v55 = vpop.f32.mrf.mxu0 }
 0x234   :  { %8549 = vmatmul.mubr.msk.f32.gmra.mxu1 %vm622_vm1, %v1401_v42 }
 0x235   :  { %v10536_v15 = vpop.f32.mrf.mxu1  ;;  %v1336_v27 = vpop.f32.mrf.mxu0  ;;  %8551 = vmatprep.mubr.msk.f32.mxu1 %vm9800_vm0, %v9799_v0 }
 0x236   :  { %v1402_v7 = vmax.f32 %v1336_v27, 0.0 }
 0x237   :  { %v8405_v32 = vpop.f32.mrf.mxu1  ;;  %v8487_v35 = vpop.f32.mrf.mxu0 }
 0x238   :  { %8552 = vmatmul.mubr.msk.f32.gmra.mxu1 %vm622_vm1, %v1402_v7  ;;  %v1969_v7 = vld [vmem:[%s12384_s2 + $0xc] sm:$0xf] }
 0x239   :  { %v10541_v41 = vpop.f32.mrf.mxu1  ;;  %v1339_v47 = vpop.f32.mrf.mxu0  ;;  %8554 = vmatprep.mubr.msk.f32.mxu1 %vm9800_vm0, %v9799_v0 }
 0x23a   :  { %v1403_v54 = vmax.f32 %v1339_v47, 0.0  ;;  %v1970_v47 = vunpack.c.l.bf16 %v1969_v7 }
 0x23b   :  { %v8408_v60 = vpop.f32.mrf.mxu1  ;;  %v8488_v3 = vpop.f32.mrf.mxu0 }
 0x23c   :  { %8555 = vmatmul.mubr.msk.f32.gmra.mxu1 %vm622_vm1, %v1403_v54  ;;  %8659 = vmatpush3.msra.mxu0 %v1970_v47 }
 0x23d   :  { %v10546_v11 = vpop.f32.mrf.mxu1  ;;  %v1344_v43 = vpop.f32.mrf.mxu0  ;;  %8557 = vmatprep.mubr.msk.f32.mxu1 %vm9800_vm0, %v9799_v0  ;;  %8735 = vmatprep.subr.bf16.mxu0 %v9799_v0 }
 0x23e   :  { %v1404_v58 = vmax.f32 %v1344_v43, 0.0 }
 0x23f   :  { %v8411_v63 = vpop.f32.mrf.mxu1  ;;  %v8491_v19 = vpop.f32.mrf.mxu0 }
 0x240   :  { %8558 = vmatmul.mubr.msk.f32.gmra.mxu1 %vm622_vm1, %v1404_v58 }
 0x241   :  { %v10551_v36 = vpop.f32.mrf.mxu1  ;;  %v1347_v42 = vpop.f32.mrf.mxu0  ;;  %8560 = vmatprep.mubr.msk.f32.mxu1 %vm9800_vm0, %v9799_v0 }
 0x242   :  { %v1405_v49 = vmax.f32 %v1347_v42, 0.0 }
 0x243   :  { %v8414_v55 = vpop.f32.mrf.mxu1  ;;  %v8492_v27 = vpop.f32.mrf.mxu0 }
 0x244   :  { %8561 = vmatmul.mubr.msk.f32.gmra.mxu1 %vm622_vm1, %v1405_v49 }
 0x245   :  { %v10559_v32 = vpop.f32.mrf.mxu1  ;;  %v1352_v35 = vpop.f32.mrf.mxu0  ;;  %8563 = vmatprep.mubr.msk.f32.mxu1 %vm9800_vm0, %v9799_v0 }
 0x246   :  { %v1406_v54 = vmax.f32 %v1352_v35, 0.0 }
 0x247   :  { %v8417_v60 = vpop.f32.mrf.mxu1  ;;  %v8495_v3 = vpop.f32.mrf.mxu0 }
 0x248   :  { %8564 = vmatmul.mubr.msk.f32.gmra.mxu1 %vm622_vm1, %v1406_v54 }
 0x249   :  { %v10565_v43 = vpop.f32.mrf.mxu1  ;;  %v1355_v58 = vpop.f32.mrf.mxu0  ;;  %8566 = vmatprep.mubr.msk.f32.mxu1 %vm9800_vm0, %v9799_v0 }
 0x24a   :  { %v1407_v63 = vmax.f32 %v1355_v58, 0.0 }
 0x24b   :  { %v8420_v19 = vpop.f32.mrf.mxu1  ;;  %v8496_v42 = vpop.f32.mrf.mxu0 }
 0x24c   :  { %8567 = vmatmul.mubr.msk.f32.gmra.mxu1 %vm622_vm1, %v1407_v63 }
 0x24d   :  { %v10570_v49 = vpop.f32.mrf.mxu1  ;;  %v1360_v55 = vpop.f32.mrf.mxu0  ;;  %8569 = vmatprep.mubr.msk.f32.mxu1 %vm9800_vm0, %v9799_v0 }
 0x24e   :  { %v1408_v27 = vmax.f32 %v1360_v55, 0.0 }
 0x24f   :  { %v8423_v7 = vpop.f32.mrf.mxu1  ;;  %v8499_v35 = vpop.f32.mrf.mxu0 }
 0x250   :  { %8570 = vmatmul.mubr.msk.f32.gmra.mxu1 %vm622_vm1, %v1408_v27 }
 0x251   :  { %v10575_v47 = vpop.f32.mrf.mxu1  ;;  %v1363_v54 = vpop.f32.mrf.mxu0  ;;  %8572 = vmatprep.mubr.msk.f32.mxu1 %vm9800_vm0, %v9799_v0 }
 0x252   :  { %v1409_v60 = vmax.f32 %v1363_v54, 0.0 }
 0x253   :  { %v8426_v3 = vpop.f32.mrf.mxu1  ;;  %v8500_v58 = vpop.f32.mrf.mxu0 }
 0x254   :  { %8573 = vmatmul.mubr.msk.f32.gmra.mxu1 %vm622_vm1, %v1409_v60 }
 0x255   :  { %v10580_v63 = vpop.f32.mrf.mxu1  ;;  %v1368_v19 = vpop.f32.mrf.mxu0  ;;  %8575 = vmatprep.mubr.msk.f32.mxu1 %vm9800_vm0, %v9799_v0 }
 0x256   :  { %v1410_v42 = vmax.f32 %v1368_v19, 0.0 }
 0x257   :  { %v8429_v55 = vpop.f32.mrf.mxu1  ;;  %v8503_v27 = vpop.f32.mrf.mxu0 }
 0x258   :  { %8576 = vmatmul.mubr.msk.f32.gmra.mxu1 %vm622_vm1, %v1410_v42 }
 0x259   :  { %v10585_v7 = vpop.f32.mrf.mxu1  ;;  %v1371_v35 = vpop.f32.mrf.mxu0  ;;  %8578 = vmatprep.mubr.msk.f32.mxu1 %vm9800_vm0, %v9799_v0 }
 0x25a   :  { %v1411_v54 = vmax.f32 %v1371_v35, 0.0 }
 0x25b   :  { %v8432_v3 = vpop.f32.mrf.mxu1  ;;  %v8504_v60 = vpop.f32.mrf.mxu0 }
 0x25c   :  { %8579 = vmatmul.mubr.msk.f32.gmra.mxu1 %vm622_vm1, %v1411_v54 }
 0x25d   :  { %v10590_v58 = vpop.f32.mrf.mxu1  ;;  %v1376_v33 = vpop.f32.mrf.mxu0  ;;  %8581 = vmatprep.mubr.msk.f32.mxu1 %vm9800_vm0, %v9799_v0 }
 0x25e   :  { %v1412_v19 = vmax.f32 %v1376_v33, 0.0 }
 0x25f   :  { %v8435_v55 = vpop.f32.mrf.mxu1  ;;  %v8507_v42 = vpop.f32.mrf.mxu0 }
 0x260   :  { %8582 = vmatmul.mubr.msk.f32.gmra.mxu1 %vm622_vm1, %v1412_v19  ;;  %v9697_v42 = vld [vmem:[%s12383_s0 + $0x12c] sm:$0xff]  }
 0x261   :  { %v10595_v27 = vpop.f32.mrf.mxu1  ;;  %v1379_v4 = vpop.f32.mrf.mxu0  ;;  %8584 = vmatprep.mubr.msk.f32.mxu1 %vm9800_vm0, %v9799_v0 }
 0x262   :  { %v1413_v35 = vmax.f32 %v1379_v4, 0.0 }
 0x263   :  { %v8438_v3 = vpop.f32.mrf.mxu1  ;;  %v8508_v54 = vpop.f32.mrf.mxu0 }
 0x264   :  { %8585 = vmatmul.mubr.msk.f32.gmra.mxu1 %vm622_vm1, %v1413_v35 }
 0x265   :  { %v10600_v60 = vpop.f32.mrf.mxu1  ;;  %v1384_v21 = vpop.f32.mrf.mxu0  ;;  %8587 = vmatprep.mubr.msk.f32.mxu1 %vm9800_vm0, %v9799_v0 }
 0x266   :  { %v1414_v33 = vmax.f32 %v1384_v21, 0.0  ;;  %v9698_v21 = vld [vmem:[%s12383_s0 + $0x134] sm:$0xff]  }
 0x267   :  { %v8441_v55 = vpop.f32.mrf.mxu1  ;;  %v8511_v19 = vpop.f32.mrf.mxu0 }
 0x268   :  { %8588 = vmatmul.mubr.msk.f32.gmra.mxu1 %vm622_vm1, %v1414_v33  ;;  %v9699_v33 = vld [vmem:[%s12383_s0 + $0x13c] sm:$0xff]   ;;  %v9700_v55 = vld [vmem:[%s12383_s0 + $0x144] sm:$0xff]   ;;  %v9701_v19 = vld [vmem:[%s12383_s0 + $0x14c] sm:$0xff]  }
 0x269   :  { %v10608_v4 = vpop.f32.mrf.mxu1  ;;  %v1387_v3 = vpop.f32.mrf.mxu0  ;;  %8606 = vmatprep.mubr.msk.bf16.mxu1 %vm9800_vm0, %v9799_v0 }
 0x26a   :  { %v9703_v3 = vld [vmem:[%s12383_s0 + $0x15c] sm:$0xff]  }
 0x26b   :  { %v8444_v35 = vpop.f32.mrf.mxu1  ;;  %v8512_v54 = vpop.f32.mrf.mxu0 }
 0x26c   :  { %8607 = vmatmul.mubr.bf16.vlgmr.msra.gmra.mxu1 %v9697_v42  ;;  %v9702_v42 = vld [vmem:[%s12383_s0 + $0x154] sm:$0xff]   ;;  %v9704_v35 = vld [vmem:[%s12383_s0 + $0x164] sm:$0xff]   ;;  %v9705_v54 = vld [vmem:[%s12383_s0 + $0x16c] sm:$0xff]  }
 0x26d   :  { %8610 = vmatprep.mubr.msk.bf16.mxu1 %vm9800_vm0, %v9799_v0 }
 0x274   :  { %8611 = vmatmul.mubr.bf16.gmra.mxu1 %v9698_v21  ;;  %v9706_v21 = vld [vmem:[%s12383_s0 + $0x174] sm:$0xff]  }
 0x275   :  { %8614 = vmatprep.mubr.msk.bf16.mxu1 %vm9800_vm0, %v9799_v0 }
 0x27c   :  { %8615 = vmatmul.mubr.bf16.gmra.mxu1 %v9699_v33  ;;  %v9707_v33 = vld [vmem:[%s12383_s0 + $0x17c] sm:$0xff]  }
 0x27d   :  { %8618 = vmatprep.mubr.msk.bf16.mxu1 %vm9800_vm0, %v9799_v0 }
 0x284   :  { %8619 = vmatmul.mubr.bf16.gmra.mxu1 %v9700_v55  ;;  %v9708_v55 = vld [vmem:[%s12383_s0 + $0x184] sm:$0xff]  }
 0x285   :  { %8622 = vmatprep.mubr.msk.bf16.mxu1 %vm9800_vm0, %v9799_v0 }
 0x28c   :  { %8623 = vmatmul.mubr.bf16.gmra.mxu1 %v9701_v19  ;;  %v1030_v19 = vadd.f32 %v10431_v8, %v10365_v30  ;;  %v1040_v30 = vadd.f32 %v10449_v39, %v10378_v37  ;;  %v1055_v37 = vadd.f32 %v10485_v18, %v10384_v46  ;;  %v1070_v46 = vadd.f32 %v10521_v51, %v10390_v56 }
 0x28d   :  { %8626 = vmatprep.mubr.msk.bf16.mxu1 %vm9800_vm0, %v9799_v0  ;;  %v1085_v56 = vadd.f32 %v10536_v15, %v10396_v2  ;;  %v1100_v2 = vadd.f32 %v10551_v36, %v10402_v13  ;;  %v1115_v13 = vadd.f32 %v10570_v49, %v10408_v53  ;;  %v1130_v53 = vadd.f32 %v10585_v7, %v10414_v14 }
 0x28e   :  { %v1145_v14 = vadd.f32 %v10600_v60, %v10420_v31 }
 0x294   :  { %8627 = vmatmul.mubr.bf16.gmra.mxu1 %v9702_v42 }
 0x295   :  { %8630 = vmatprep.mubr.msk.bf16.mxu1 %vm9800_vm0, %v9799_v0 }
 0x29c   :  { %8631 = vmatmul.mubr.bf16.gmra.mxu1 %v9703_v3  ;;  %v9709_v3 = vld [vmem:[%s12383_s0 + $0x18c] ss:$0 sps:$4 sm:$0xff]  }
 0x29d   :  { %8634 = vmatprep.mubr.msk.bf16.mxu1 %vm9800_vm0, %v9799_v0 }
 0x2a4   :  { %8635 = vmatmul.mubr.bf16.gmra.mxu1 %v9704_v35 }
 0x2a5   :  { %8638 = vmatprep.mubr.msk.bf16.mxu1 %vm9800_vm0, %v9799_v0 }
 0x2ac   :  { %8639 = vmatmul.mubr.bf16.gmra.mxu1 %v9705_v54 }
 0x2ad   :  { %8642 = vmatprep.mubr.msk.bf16.mxu1 %vm9800_vm0, %v9799_v0 }
 0x2b4   :  { %8643 = vmatmul.mubr.bf16.gmra.mxu1 %v9706_v21  ;;  %v1035_v21 = vadd.f32 %v10437_v25, %v10373_v34 }
 0x2b5   :  { %8646 = vmatprep.mubr.msk.bf16.mxu1 %vm9800_vm0, %v9799_v0 }
 0x2bc   :  { %8647 = vmatmul.mubr.bf16.gmra.mxu1 %v9707_v33 }
 0x2bd   :  { %8650 = vmatprep.mubr.msk.bf16.mxu1 %vm9800_vm0, %v9799_v0 }
 0x2c4   :  { %8651 = vmatmul.mubr.bf16.gmra.mxu1 %v9708_v55 }
 0x2c5   :  { %8654 = vmatprep.mubr.msk.bf16.mxu1 %vm9800_vm0, %v9799_v0 }
 0x2c8   :  { %v1558_v42 = vpop.f32.mrf.mxu1 }
 0x2c9   :  { %v10674_v35 = vadd.f32 %v1558_v42, %v1030_v19  ;;  %v1045_v42 = vadd.f32 %v10461_v57, %v10380_v40  ;;  %v1060_v40 = vadd.f32 %v10497_v24, %v10386_v50  ;;  %v1075_v50 = vadd.f32 %v10526_v12, %v10392_v59 }
 0x2ca   :  { %v8517_v54 = vpop.f32.mrf.mxu1  ;;  %v1090_v59 = vadd.f32 %v10541_v41, %v10398_v9  ;;  %v1105_v9 = vadd.f32 %v10559_v32, %v10404_v6  ;;  %v1120_v6 = vadd.f32 %v10575_v47, %v10410_v17  ;;  %v1135_v17 = vadd.f32 %v10590_v58, %v10416_v20 }
 0x2cb   :  { %v1150_v20 = vadd.f32 %v10608_v4, %v10422_v23 }
 0x2cc   :  { %v1563_v33 = vpop.f32.mrf.mxu1  ;;  %8655 = vmatmul.mubr.bf16.gmra.mxu1 %v9709_v3  ;;  %v1050_v3 = vadd.f32 %v10473_v38, %v10382_v44  ;;  %v1065_v44 = vadd.f32 %v10509_v28, %v10388_v52  ;;  %v1080_v52 = vadd.f32 %v10531_v22, %v10394_v62  ;;  %v1095_v62 = vadd.f32 %v10546_v11, %v10400_v5 }
 0x2cd   :  { %v10678_v55 = vadd.f32 %v1563_v33, %v1035_v21  ;;  %8805 = vmatprep.mubr.msk.f32.mxu1 %vm9800_vm0, %v9799_v0  ;;  %v1110_v5 = vadd.f32 %v10565_v43, %v10406_v48  ;;  %v1125_v48 = vadd.f32 %v10580_v63, %v10412_v10  ;;  %v1140_v10 = vadd.f32 %v10595_v27, %v10418_v26 }
 0x2ce   :  { %v8520_v16 = vpop.f32.mrf.mxu1 }
 0x2d0   :  { %v1568_v8 = vpop.f32.mrf.mxu1 }
 0x2d1   :  { %v10684_v1 = vadd.f32 %v1568_v8, %v1040_v30 }
 0x2d2   :  { %v8523_v19 = vpop.f32.mrf.mxu1 }
 0x2d4   :  { %v1573_v54 = vpop.f32.mrf.mxu1 }
 0x2d5   :  { %v10688_v34 = vadd.f32 %v1573_v54, %v1045_v42 }
 0x2d6   :  { %v8526_v25 = vpop.f32.mrf.mxu1 }
 0x2d8   :  { %v1578_v21 = vpop.f32.mrf.mxu1 }
 0x2d9   :  { %v10692_v33 = vadd.f32 %v1578_v21, %v1050_v3 }
 0x2da   :  { %v8529_v16 = vpop.f32.mrf.mxu1 }
 0x2dc   :  { %v1583_v39 = vpop.f32.mrf.mxu1 }
 0x2dd   :  { %v10696_v30 = vadd.f32 %v1583_v39, %v1055_v37 }
 0x2de   :  { %v8532_v8 = vpop.f32.mrf.mxu1 }
 0x2e0   :  { %v1588_v57 = vpop.f32.mrf.mxu1 }
 0x2e1   :  { %v10700_v19 = vadd.f32 %v1588_v57, %v1060_v40 }
 0x2e2   :  { %v8535_v42 = vpop.f32.mrf.mxu1 }
 0x2e4   :  { %v1593_v38 = vpop.f32.mrf.mxu1 }
 0x2e5   :  { %v10704_v54 = vadd.f32 %v1593_v38, %v1065_v44 }
 0x2e6   :  { %v8538_v25 = vpop.f32.mrf.mxu1 }
 0x2e8   :  { %v1598_v18 = vpop.f32.mrf.mxu1 }
 0x2e9   :  { %v10708_v3 = vadd.f32 %v1598_v18, %v1070_v46 }
 0x2ea   :  { %v8541_v21 = vpop.f32.mrf.mxu1 }
 0x2ec   :  { %v1603_v24 = vpop.f32.mrf.mxu1 }
 0x2ed   :  { %v10712_v16 = vadd.f32 %v1603_v24, %v1075_v50 }
 0x2ee   :  { %v8544_v37 = vpop.f32.mrf.mxu1 }
 0x2f0   :  { %v1608_v28 = vpop.f32.mrf.mxu1 }
 0x2f1   :  { %v10716_v39 = vadd.f32 %v1608_v28, %v1080_v52 }
 0x2f2   :  { %v8547_v8 = vpop.f32.mrf.mxu1 }
 0x2f4   :  { %v1613_v51 = vpop.f32.mrf.mxu1 }
 0x2f5   :  { %v10720_v40 = vadd.f32 %v1613_v51, %v1085_v56 }
 0x2f6   :  { %v8550_v57 = vpop.f32.mrf.mxu1 }
 0x2f8   :  { %v1618_v12 = vpop.f32.mrf.mxu1 }
 0x2f9   :  { %v10724_v42 = vadd.f32 %v1618_v12, %v1090_v59 }
 0x2fa   :  { %v8553_v44 = vpop.f32.mrf.mxu1 }
 0x2fc   :  { %v1623_v22 = vpop.f32.mrf.mxu1 }
 0x2fd   :  { %v10728_v38 = vadd.f32 %v1623_v22, %v1095_v62 }
 0x2fe   :  { %v8556_v25 = vpop.f32.mrf.mxu1 }
 0x300   :  { %v1628_v15 = vpop.f32.mrf.mxu1 }
 0x301   :  { %v10732_v46 = vadd.f32 %v1628_v15, %v1100_v2 }
 0x302   :  { %v8559_v18 = vpop.f32.mrf.mxu1 }
 0x304   :  { %v1633_v41 = vpop.f32.mrf.mxu1 }
 0x305   :  { %v10736_v21 = vadd.f32 %v1633_v41, %v1105_v9 }
 0x306   :  { %v8562_v50 = vpop.f32.mrf.mxu1 }
 0x308   :  { %v1638_v11 = vpop.f32.mrf.mxu1 }
 0x309   :  { %v10740_v24 = vadd.f32 %v1638_v11, %v1110_v5 }
 0x30a   :  { %v8565_v37 = vpop.f32.mrf.mxu1 }
 0x30c   :  { %v1643_v36 = vpop.f32.mrf.mxu1 }
 0x30d   :  { %v10744_v52 = vadd.f32 %v1643_v36, %v1115_v13 }
 0x30e   :  { %v8568_v28 = vpop.f32.mrf.mxu1 }
 0x310   :  { %v1648_v32 = vpop.f32.mrf.mxu1 }
 0x311   :  { %v10748_v8 = vadd.f32 %v1648_v32, %v1120_v6 }
 0x312   :  { %v8571_v56 = vpop.f32.mrf.mxu1 }
 0x314   :  { %v1653_v43 = vpop.f32.mrf.mxu1 }
 0x315   :  { %v10752_v51 = vadd.f32 %v1653_v43, %v1125_v48  ;;  %v12403_v43 = vld [vmem:[#allocation4_spill] sm:$0xff] }
 0x316   :  { %v8574_v57 = vpop.f32.mrf.mxu1 }
 0x318   :  { %v1658_v49 = vpop.f32.mrf.mxu1 }
 0x319   :  { %v10756_v59 = vadd.f32 %v1658_v49, %v1130_v53 }
 0x31a   :  { %v8577_v12 = vpop.f32.mrf.mxu1 }
 0x31b   :  { %v12404_v12 = vld [vmem:[#allocation5_spill] sm:$0xff] }
 0x31c   :  { %v1663_v47 = vpop.f32.mrf.mxu1 }
 0x31d   :  { %v10760_v44 = vadd.f32 %v1663_v47, %v1135_v17 }
 0x31e   :  { %v8580_v62 = vpop.f32.mrf.mxu1 }
 0x320   :  { %v1668_v63 = vpop.f32.mrf.mxu1 }
 0x321   :  { %v10764_v22 = vadd.f32 %v1668_v63, %v1140_v10  ;;  %v12405_v10 = vld [vmem:[#allocation6_spill] sm:$0xff] }
 0x322   :  { %v8583_v25 = vpop.f32.mrf.mxu1 }
 0x324   :  { %v1673_v7 = vpop.f32.mrf.mxu1 }
 0x325   :  { %v10768_v2 = vadd.f32 %v1673_v7, %v1145_v14 }
 0x326   :  { %v8586_v15 = vpop.f32.mrf.mxu1 }
 0x328   :  { %v1678_v58 = vpop.f32.mrf.mxu1 }
 0x329   :  { %v10772_v18 = vadd.f32 %v1678_v58, %v1150_v20 }
 0x32a   :  { %v8589_v9 = vpop.f32.mrf.mxu1 }
 0x32c   :  { %v1842_v41 = vpop.f32.mrf.mxu1 }
 0x32d   :  { %v1944_v26 = vmax.f32 %v1842_v41, 0.0 }
 0x32e   :  { %v8608_v27 = vpop.f32.mrf.mxu1 }
 0x32f   :  { %8661 = vmatmul.mubr.msk.f32.vlgmr.msra.gmra.mxu0 %vm622_vm1, %v1944_v26 }
 0x330   :  { %8736 = vmatpush3.bf16.msra.mxu0 %v10428_v61  ;;  %v1845_v50 = vpop.f32.mrf.mxu1  ;;  %8663 = vmatprep.mubr.msk.f32.mxu0 %vm9800_vm0, %v9799_v0 }
 0x331   :  { %v1945_v31 = vmax.f32 %v1845_v50, 0.0  ;;  %8737 = vmatprep.subr.bf16.mxu0 %v9799_v0 }
 0x332   :  { %v8609_v60 = vpop.f32.mrf.mxu1 }
 0x333   :  { %8664 = vmatmul.mubr.msk.f32.gmra.mxu0 %vm622_vm1, %v1945_v31 }
 0x334   :  { %v1850_v23 = vpop.f32.mrf.mxu1  ;;  %8666 = vmatprep.mubr.msk.f32.mxu0 %vm9800_vm0, %v9799_v0  ;;  %8738 = vmatpush3.bf16.msra.mxu0 %v10444_v29  ;;  %v12401_v29 = vld [vmem:[#allocation2_spill] sm:$0xff] }
 0x335   :  { %v1946_v4 = vmax.f32 %v1850_v23, 0.0  ;;  %8739 = vmatprep.subr.bf16.mxu0 %v9799_v0 }
 0x336   :  { %v8612_v61 = vpop.f32.mrf.mxu1 }
 0x337   :  { %8667 = vmatmul.mubr.msk.f32.gmra.mxu0 %vm622_vm1, %v1946_v4 }
 0x338   :  { %v1853_v5 = vpop.f32.mrf.mxu1  ;;  %8669 = vmatprep.mubr.msk.f32.mxu0 %vm9800_vm0, %v9799_v0  ;;  %8740 = vmatpush3.bf16.msra.mxu0 %v10456_v45  ;;  %v12402_v45 = vld [vmem:[#allocation3_spill] sm:$0xff] }
 0x339   :  { %v1947_v11 = vmax.f32 %v1853_v5, 0.0  ;;  %8741 = vmatprep.subr.bf16.mxu0 %v9799_v0 }
 0x33a   :  { %v8613_v37 = vpop.f32.mrf.mxu1 }
 0x33b   :  { %8670 = vmatmul.mubr.msk.f32.gmra.mxu0 %vm622_vm1, %v1947_v11 }
 0x33c   :  { %v1858_v13 = vpop.f32.mrf.mxu1  ;;  %8672 = vmatprep.mubr.msk.f32.mxu0 %vm9800_vm0, %v9799_v0  ;;  %8742 = vmatpush3.bf16.msra.mxu0 %v12401_v29 }
 0x33d   :  { %v1948_v36 = vmax.f32 %v1858_v13, 0.0  ;;  %8743 = vmatprep.subr.bf16.mxu0 %v9799_v0 }
 0x33e   :  { %v8616_v28 = vpop.f32.mrf.mxu1 }
 0x33f   :  { %8673 = vmatmul.mubr.msk.f32.gmra.mxu0 %vm622_vm1, %v1948_v36  ;;  %v2523_v28 = vld [vmem:[%s12384_s2 + $0x10] sm:$0xf] }
 0x340   :  { %v1861_v6 = vpop.f32.mrf.mxu1  ;;  %8675 = vmatprep.mubr.msk.f32.mxu0 %vm9800_vm0, %v9799_v0  ;;  %8744 = vmatpush3.bf16.msra.mxu0 %v12402_v45  ;;  %v2524_v45 = vunpack.c.l.bf16 %v2523_v28  ;;  %v9717_v28 = vld [vmem:[%s12383_s0 + $0x1c8] sm:$0xff]  }
 0x341   :  { %v1949_v32 = vmax.f32 %v1861_v6, 0.0  ;;  %8745 = vmatprep.subr.bf16.mxu0 %v9799_v0 }
 0x342   :  { %v8617_v56 = vpop.f32.mrf.mxu1  ;;  %8804 = vmatpush3.msra.mxu1 %v2524_v45  ;;  %v9719_v45 = vld [vmem:[%s12383_s0 + $0x1d8] sm:$0xff]  }
 0x343   :  { %8676 = vmatmul.mubr.msk.f32.gmra.mxu0 %vm622_vm1, %v1949_v32  ;;  %8880 = vmatprep.subr.bf16.mxu1 %v9799_v0 }
 0x344   :  { %v1866_v48 = vpop.f32.mrf.mxu1  ;;  %8678 = vmatprep.mubr.msk.f32.mxu0 %vm9800_vm0, %v9799_v0  ;;  %8746 = vmatpush3.bf16.msra.mxu0 %v12403_v43 }
 0x345   :  { %v1950_v57 = vmax.f32 %v1866_v48, 0.0  ;;  %8747 = vmatprep.subr.bf16.mxu0 %v9799_v0 }
 0x346   :  { %v8620_v53 = vpop.f32.mrf.mxu1 }
 0x347   :  { %8679 = vmatmul.mubr.msk.f32.gmra.mxu0 %vm622_vm1, %v1950_v57 }
 0x348   :  { %v1869_v49 = vpop.f32.mrf.mxu1  ;;  %8681 = vmatprep.mubr.msk.f32.mxu0 %vm9800_vm0, %v9799_v0  ;;  %8748 = vmatpush3.bf16.msra.mxu0 %v12404_v12 }
 0x349   :  { %v1951_v17 = vmax.f32 %v1869_v49, 0.0  ;;  %8749 = vmatprep.subr.bf16.mxu0 %v9799_v0 }
 0x34a   :  { %v8621_v47 = vpop.f32.mrf.mxu1 }
 0x34b   :  { %8682 = vmatmul.mubr.msk.f32.gmra.mxu0 %vm622_vm1, %v1951_v17 }
 0x34c   :  { %v1874_v62 = vpop.f32.mrf.mxu1  ;;  %8684 = vmatprep.mubr.msk.f32.mxu0 %vm9800_vm0, %v9799_v0  ;;  %8750 = vmatpush3.bf16.msra.mxu0 %v12405_v10 }
 0x34d   :  { %v1952_v63 = vmax.f32 %v1874_v62, 0.0  ;;  %8948 = vmatprep.subr.mxu0 %v9799_v0 }
 0x34e   :  { %v8624_v25 = vpop.f32.mrf.mxu1 }
 0x34f   :  { %8685 = vmatmul.mubr.msk.f32.gmra.mxu0 %vm622_vm1, %v1952_v63 }
 0x350   :  { %v1877_v14 = vpop.f32.mrf.mxu1  ;;  %8687 = vmatprep.mubr.msk.f32.mxu0 %vm9800_vm0, %v9799_v0 }
 0x351   :  { %v1953_v7 = vmax.f32 %v1877_v14, 0.0 }
 0x352   :  { %v8625_v15 = vpop.f32.mrf.mxu1 }
 0x353   :  { %8688 = vmatmul.mubr.msk.f32.gmra.mxu0 %vm622_vm1, %v1953_v7 }
 0x354   :  { %v1882_v20 = vpop.f32.mrf.mxu1  ;;  %8690 = vmatprep.mubr.msk.f32.mxu0 %vm9800_vm0, %v9799_v0 }
 0x355   :  { %v1954_v58 = vmax.f32 %v1882_v20, 0.0 }
 0x356   :  { %v8628_v9 = vpop.f32.mrf.mxu1 }
 0x357   :  { %8691 = vmatmul.mubr.msk.f32.gmra.mxu0 %vm622_vm1, %v1954_v58 }
 0x358   :  { %v1885_v41 = vpop.f32.mrf.mxu1  ;;  %8693 = vmatprep.mubr.msk.f32.mxu0 %vm9800_vm0, %v9799_v0 }
 0x359   :  { %v1955_v26 = vmax.f32 %v1885_v41, 0.0 }
 0x35a   :  { %v8629_v27 = vpop.f32.mrf.mxu1 }
 0x35b   :  { %8694 = vmatmul.mubr.msk.f32.gmra.mxu0 %vm622_vm1, %v1955_v26 }
 0x35c   :  { %v1890_v50 = vpop.f32.mrf.mxu1  ;;  %8696 = vmatprep.mubr.msk.f32.mxu0 %vm9800_vm0, %v9799_v0 }
 0x35d   :  { %v1956_v31 = vmax.f32 %v1890_v50, 0.0 }
 0x35e   :  { %v8632_v60 = vpop.f32.mrf.mxu1 }
 0x35f   :  { %8697 = vmatmul.mubr.msk.f32.gmra.mxu0 %vm622_vm1, %v1956_v31 }
 0x360   :  { %v1893_v23 = vpop.f32.mrf.mxu1  ;;  %8699 = vmatprep.mubr.msk.f32.mxu0 %vm9800_vm0, %v9799_v0 }
 0x361   :  { %v1957_v4 = vmax.f32 %v1893_v23, 0.0  ;;  %v9710_v23 = vld [vmem:[%s12383_s0 + $0x190] sm:$0xff]  }
 0x362   :  { %v8633_v61 = vpop.f32.mrf.mxu1 }
 0x363   :  { %8700 = vmatmul.mubr.msk.f32.gmra.mxu0 %vm622_vm1, %v1957_v4 }
 0x364   :  { %v1898_v5 = vpop.f32.mrf.mxu1  ;;  %8702 = vmatprep.mubr.msk.f32.mxu0 %vm9800_vm0, %v9799_v0 }
 0x365   :  { %v1958_v11 = vmax.f32 %v1898_v5, 0.0  ;;  %v9711_v5 = vld [vmem:[%s12383_s0 + $0x198] sm:$0xff]  }
 0x366   :  { %v8636_v37 = vpop.f32.mrf.mxu1 }
 0x367   :  { %8703 = vmatmul.mubr.msk.f32.gmra.mxu0 %vm622_vm1, %v1958_v11  ;;  %v9712_v11 = vld [vmem:[%s12383_s0 + $0x1a0] sm:$0xff]   ;;  %v9713_v37 = vld [vmem:[%s12383_s0 + $0x1a8] sm:$0xff]  }
 0x368   :  { %v1901_v13 = vpop.f32.mrf.mxu1  ;;  %8705 = vmatprep.mubr.msk.f32.mxu0 %vm9800_vm0, %v9799_v0 }
 0x369   :  { %v1959_v29 = vmax.f32 %v1901_v13, 0.0  ;;  %v9714_v13 = vld [vmem:[%s12383_s0 + $0x1b0] sm:$0xff]  }
 0x36a   :  { %v8637_v36 = vpop.f32.mrf.mxu1 }
 0x36b   :  { %8706 = vmatmul.mubr.msk.f32.gmra.mxu0 %vm622_vm1, %v1959_v29  ;;  %v9715_v29 = vld [vmem:[%s12383_s0 + $0x1b8] sm:$0xff]   ;;  %v9716_v36 = vld [vmem:[%s12383_s0 + $0x1c0] sm:$0xff]  }
 0x36c   :  { %v1906_v6 = vpop.f32.mrf.mxu1  ;;  %8708 = vmatprep.mubr.msk.f32.mxu0 %vm9800_vm0, %v9799_v0 }
 0x36d   :  { %v1960_v32 = vmax.f32 %v1906_v6, 0.0  ;;  %v9718_v6 = vld [vmem:[%s12383_s0 + $0x1d0] sm:$0xff]  }
 0x36e   :  { %v8640_v56 = vpop.f32.mrf.mxu1 }
 0x36f   :  { %8709 = vmatmul.mubr.msk.f32.gmra.mxu0 %vm622_vm1, %v1960_v32  ;;  %v9720_v32 = vld [vmem:[%s12383_s0 + $0x1e0] sm:$0xff]   ;;  %v9721_v56 = vld [vmem:[%s12383_s0 + $0x1e8] sm:$0xff]  }
 0x370   :  { %v1909_v48 = vpop.f32.mrf.mxu1  ;;  %8711 = vmatprep.mubr.msk.f32.mxu0 %vm9800_vm0, %v9799_v0 }
 0x371   :  { %v1961_v43 = vmax.f32 %v1909_v48, 0.0 }
 0x372   :  { %v8641_v57 = vpop.f32.mrf.mxu1 }
 0x373   :  { %8712 = vmatmul.mubr.msk.f32.gmra.mxu0 %vm622_vm1, %v1961_v43  ;;  %v9722_v43 = vld [vmem:[%s12383_s0 + $0x1f0] ss:$0 sps:$4 sm:$0xff]  }
 0x374   :  { %v1914_v53 = vpop.f32.mrf.mxu1  ;;  %8714 = vmatprep.mubr.msk.f32.mxu0 %vm9800_vm0, %v9799_v0 }
 0x375   :  { %v1962_v49 = vmax.f32 %v1914_v53, 0.0 }
 0x376   :  { %v8644_v12 = vpop.f32.mrf.mxu1 }
 0x377   :  { %8715 = vmatmul.mubr.msk.f32.gmra.mxu0 %vm622_vm1, %v1962_v49 }
 0x378   :  { %v1917_v17 = vpop.f32.mrf.mxu1  ;;  %8717 = vmatprep.mubr.msk.f32.mxu0 %vm9800_vm0, %v9799_v0 }
 0x379   :  { %v1963_v47 = vmax.f32 %v1917_v17, 0.0 }
 0x37a   :  { %v8645_v62 = vpop.f32.mrf.mxu1 }
 0x37b   :  { %8718 = vmatmul.mubr.msk.f32.gmra.mxu0 %vm622_vm1, %v1963_v47 }
 0x37c   :  { %v1922_v10 = vpop.f32.mrf.mxu1  ;;  %8720 = vmatprep.mubr.msk.f32.mxu0 %vm9800_vm0, %v9799_v0 }
 0x37d   :  { %v1964_v63 = vmax.f32 %v1922_v10, 0.0 }
 0x37e   :  { %v8648_v25 = vpop.f32.mrf.mxu1 }
 0x37f   :  { %8721 = vmatmul.mubr.msk.f32.gmra.mxu0 %vm622_vm1, %v1964_v63 }
 0x380   :  { %v1925_v14 = vpop.f32.mrf.mxu1  ;;  %8723 = vmatprep.mubr.msk.f32.mxu0 %vm9800_vm0, %v9799_v0 }
 0x381   :  { %v1965_v7 = vmax.f32 %v1925_v14, 0.0 }
 0x382   :  { %v8649_v15 = vpop.f32.mrf.mxu1 }
 0x383   :  { %8724 = vmatmul.mubr.msk.f32.gmra.mxu0 %vm622_vm1, %v1965_v7 }
 0x384   :  { %v1930_v20 = vpop.f32.mrf.mxu1  ;;  %8726 = vmatprep.mubr.msk.f32.mxu0 %vm9800_vm0, %v9799_v0 }
 0x385   :  { %v1966_v58 = vmax.f32 %v1930_v20, 0.0 }
 0x386   :  { %v8652_v9 = vpop.f32.mrf.mxu1 }
 0x387   :  { %8727 = vmatmul.mubr.msk.f32.gmra.mxu0 %vm622_vm1, %v1966_v58 }
 0x388   :  { %v1933_v41 = vpop.f32.mrf.mxu1  ;;  %8729 = vmatprep.mubr.msk.f32.mxu0 %vm9800_vm0, %v9799_v0 }
 0x389   :  { %v1967_v26 = vmax.f32 %v1933_v41, 0.0 }
 0x38a   :  { %v8653_v27 = vpop.f32.mrf.mxu1 }
 0x38b   :  { %8730 = vmatmul.mubr.msk.f32.gmra.mxu0 %vm622_vm1, %v1967_v26 }
 0x38c   :  { %v1938_v50 = vpop.f32.mrf.mxu1  ;;  %8732 = vmatprep.mubr.msk.f32.mxu0 %vm9800_vm0, %v9799_v0 }
 0x38d   :  { %v1968_v31 = vmax.f32 %v1938_v50, 0.0 }
 0x38e   :  { %v8656_v60 = vpop.f32.mrf.mxu1 }
 0x38f   :  { %8733 = vmatmul.mubr.msk.f32.gmra.mxu0 %vm622_vm1, %v1968_v31 }
 0x390   :  { %v1941_v4 = vpop.f32.mrf.mxu1  ;;  %8751 = vmatprep.mubr.msk.bf16.mxu0 %vm9800_vm0, %v9799_v0 }
 0x392   :  { %v8657_v61 = vpop.f32.mrf.mxu1 }
 0x393   :  { %8752 = vmatmul.mubr.bf16.vlgmr.msra.gmra.mxu0 %v9710_v23 }
 0x394   :  { %8755 = vmatprep.mubr.msk.bf16.mxu0 %vm9800_vm0, %v9799_v0 }
 0x39b   :  { %8756 = vmatmul.mubr.bf16.gmra.mxu0 %v9711_v5 }
 0x39c   :  { %8759 = vmatprep.mubr.msk.bf16.mxu0 %vm9800_vm0, %v9799_v0 }
 0x3a3   :  { %8760 = vmatmul.mubr.bf16.gmra.mxu0 %v9712_v11 }
 0x3a4   :  { %8763 = vmatprep.mubr.msk.bf16.mxu0 %vm9800_vm0, %v9799_v0 }
 0x3ab   :  { %8764 = vmatmul.mubr.bf16.gmra.mxu0 %v9713_v37 }
 0x3ac   :  { %8767 = vmatprep.mubr.msk.bf16.mxu0 %vm9800_vm0, %v9799_v0 }
 0x3b3   :  { %8768 = vmatmul.mubr.bf16.gmra.mxu0 %v9714_v13 }
 0x3b4   :  { %8771 = vmatprep.mubr.msk.bf16.mxu0 %vm9800_vm0, %v9799_v0 }
 0x3bb   :  { %8772 = vmatmul.mubr.bf16.gmra.mxu0 %v9715_v29 }
 0x3bc   :  { %8775 = vmatprep.mubr.msk.bf16.mxu0 %vm9800_vm0, %v9799_v0 }
 0x3c3   :  { %8776 = vmatmul.mubr.bf16.gmra.mxu0 %v9716_v36 }
 0x3c4   :  { %8779 = vmatprep.mubr.msk.bf16.mxu0 %vm9800_vm0, %v9799_v0 }
 0x3cb   :  { %8780 = vmatmul.mubr.bf16.gmra.mxu0 %v9717_v28 }
 0x3cc   :  { %8783 = vmatprep.mubr.msk.bf16.mxu0 %vm9800_vm0, %v9799_v0 }
 0x3d3   :  { %8784 = vmatmul.mubr.bf16.gmra.mxu0 %v9718_v6 }
 0x3d4   :  { %8787 = vmatprep.mubr.msk.bf16.mxu0 %vm9800_vm0, %v9799_v0 }
 0x3db   :  { %8788 = vmatmul.mubr.bf16.gmra.mxu0 %v9719_v45 }
 0x3dc   :  { %8791 = vmatprep.mubr.msk.bf16.mxu0 %vm9800_vm0, %v9799_v0 }
 0x3e3   :  { %8792 = vmatmul.mubr.bf16.gmra.mxu0 %v9720_v32 }
 0x3e4   :  { %8795 = vmatprep.mubr.msk.bf16.mxu0 %vm9800_vm0, %v9799_v0 }
 0x3eb   :  { %8796 = vmatmul.mubr.bf16.gmra.mxu0 %v9721_v56 }
 0x3ec   :  { %8799 = vmatprep.mubr.msk.bf16.mxu0 %vm9800_vm0, %v9799_v0 }
 0x3ef   :  { %v2112_v48 = vpop.f32.mrf.mxu0 }
 0x3f0   :  { %v10933_v57 = vadd.f32 %v2112_v48, %v10674_v35 }
 0x3f1   :  { %v8662_v53 = vpop.f32.mrf.mxu0 }
 0x3f3   :  { %v2117_v49 = vpop.f32.mrf.mxu0  ;;  %8800 = vmatmul.mubr.bf16.gmra.mxu0 %v9722_v43 }
 0x3f4   :  { %v10936_v12 = vadd.f32 %v2117_v49, %v10678_v55  ;;  %8950 = vmatprep.mubr.msk.f32.mxu0 %vm9800_vm0, %v9799_v0 }
 0x3f5   :  { %v8665_v17 = vpop.f32.mrf.mxu0 }
 0x3f7   :  { %v2122_v47 = vpop.f32.mrf.mxu0 }
 0x3f8   :  { %v10941_v62 = vadd.f32 %v2122_v47, %v10684_v1 }
 0x3f9   :  { %v8668_v10 = vpop.f32.mrf.mxu0 }
 0x3fb   :  { %v2127_v63 = vpop.f32.mrf.mxu0 }
 0x3fc   :  { %v10944_v25 = vadd.f32 %v2127_v63, %v10688_v34 }
 0x3fd   :  { %v8671_v35 = vpop.f32.mrf.mxu0 }
 0x3ff   :  { %v2132_v14 = vpop.f32.mrf.mxu0 }
 0x400   :  { %v10947_v7 = vadd.f32 %v2132_v14, %v10692_v33 }
 0x401   :  { %v8674_v55 = vpop.f32.mrf.mxu0 }
 0x403   :  { %v2137_v15 = vpop.f32.mrf.mxu0 }
 0x404   :  { %v10950_v20 = vadd.f32 %v2137_v15, %v10696_v30 }
 0x405   :  { %v8677_v58 = vpop.f32.mrf.mxu0 }
 0x407   :  { %v2142_v9 = vpop.f32.mrf.mxu0 }
 0x408   :  { %v10953_v1 = vadd.f32 %v2142_v9, %v10700_v19 }
 0x409   :  { %v8680_v41 = vpop.f32.mrf.mxu0 }
 0x40b   :  { %v2147_v26 = vpop.f32.mrf.mxu0 }
 0x40c   :  { %v10956_v34 = vadd.f32 %v2147_v26, %v10704_v54 }
 0x40d   :  { %v8683_v27 = vpop.f32.mrf.mxu0 }
 0x40f   :  { %v2152_v50 = vpop.f32.mrf.mxu0 }
 0x410   :  { %v10959_v33 = vadd.f32 %v2152_v50, %v10708_v3 }
 0x411   :  { %v8686_v31 = vpop.f32.mrf.mxu0 }
 0x413   :  { %v2157_v60 = vpop.f32.mrf.mxu0 }
 0x414   :  { %v10962_v30 = vadd.f32 %v2157_v60, %v10712_v16 }
 0x415   :  { %v8689_v23 = vpop.f32.mrf.mxu0 }
 0x417   :  { %v2162_v4 = vpop.f32.mrf.mxu0 }
 0x418   :  { %v10965_v19 = vadd.f32 %v2162_v4, %v10716_v39  ;;  %v11025_v4 = vld [vmem:[%s12382_s1 + $0x30] sm:$0xff]  }
 0x419   :  { %v8692_v61 = vpop.f32.mrf.mxu0 }
 0x41b   :  { %v2167_v5 = vpop.f32.mrf.mxu0 }
 0x41c   :  { %v10968_v54 = vadd.f32 %v2167_v5, %v10720_v40 }
 0x41d   :  { %v8695_v11 = vpop.f32.mrf.mxu0 }
 0x41f   :  { %v2172_v37 = vpop.f32.mrf.mxu0 }
 0x420   :  { %v10971_v3 = vadd.f32 %v2172_v37, %v10724_v42  ;;  %v11035_v37 = vld [vmem:[%s12382_s1 + $0x28] sm:$0xff]  }
 0x421   :  { %v8698_v13 = vpop.f32.mrf.mxu0 }
 0x423   :  { %v2177_v29 = vpop.f32.mrf.mxu0 }
 0x424   :  { %v10974_v16 = vadd.f32 %v2177_v29, %v10728_v38 }
 0x425   :  { %v8701_v36 = vpop.f32.mrf.mxu0 }
 0x427   :  { %v2182_v28 = vpop.f32.mrf.mxu0 }
 0x428   :  { %v10977_v39 = vadd.f32 %v2182_v28, %v10732_v46  ;;  %v11045_v28 = vld [vmem:[%s12382_s1 + $0x20] sm:$0xff]  }
 0x429   :  { %v8704_v6 = vpop.f32.mrf.mxu0 }
 0x42b   :  { %v2187_v45 = vpop.f32.mrf.mxu0 }
 0x42c   :  { %v10980_v40 = vadd.f32 %v2187_v45, %v10736_v21 }
 0x42d   :  { %v8707_v32 = vpop.f32.mrf.mxu0 }
 0x42f   :  { %v2192_v56 = vpop.f32.mrf.mxu0 }
 0x430   :  { %v10983_v42 = vadd.f32 %v2192_v56, %v10740_v24  ;;  %v11055_v56 = vld [vmem:[%s12382_s1 + $0x18] sm:$0xff]  }
 0x431   :  { %v8710_v48 = vpop.f32.mrf.mxu0 }
 0x433   :  { %v2197_v43 = vpop.f32.mrf.mxu0 }
 0x434   :  { %v10986_v38 = vadd.f32 %v2197_v43, %v10744_v52 }
 0x435   :  { %v8713_v53 = vpop.f32.mrf.mxu0 }
 0x437   :  { %v2202_v49 = vpop.f32.mrf.mxu0 }
 0x438   :  { %v10989_v46 = vadd.f32 %v2202_v49, %v10748_v8  ;;  %v11065_v49 = vld [vmem:[%s12382_s1 + $0x10] sm:$0xff]  }
 0x439   :  { %v8716_v17 = vpop.f32.mrf.mxu0 }
 0x43b   :  { %v2207_v47 = vpop.f32.mrf.mxu0 }
 0x43c   :  { %v10992_v21 = vadd.f32 %v2207_v47, %v10752_v51 }
 0x43d   :  { %v8719_v10 = vpop.f32.mrf.mxu0 }
 0x43f   :  { %v2212_v63 = vpop.f32.mrf.mxu0 }
 0x440   :  { %v10995_v24 = vadd.f32 %v2212_v63, %v10756_v59  ;;  %v11075_v63 = vld [vmem:[%s12382_s1 + $0x8] sm:$0xff]  }
 0x441   :  { %v8722_v35 = vpop.f32.mrf.mxu0 }
 0x443   :  { %v2217_v14 = vpop.f32.mrf.mxu0 }
 0x444   :  { %v10998_v52 = vadd.f32 %v2217_v14, %v10760_v44 }
 0x445   :  { %v8725_v55 = vpop.f32.mrf.mxu0 }
 0x447   :  { %v2222_v15 = vpop.f32.mrf.mxu0 }
 0x448   :  { %v11001_v8 = vadd.f32 %v2222_v15, %v10764_v22  ;;  %v11013_v22 = vld [vmem:[%s12382_s1 + $0x38] sm:$0xff]   ;;  %v11085_v15 = vld [vmem:[%s12382_s1] sm:$0xff]  }
 0x449   :  { %v8728_v58 = vpop.f32.mrf.mxu0 }
 0x44b   :  { %v2227_v9 = vpop.f32.mrf.mxu0 }
 0x44c   :  { %v11004_v51 = vadd.f32 %v2227_v9, %v10768_v2 }
 0x44d   :  { %v8731_v41 = vpop.f32.mrf.mxu0 }
 0x44f   :  { %v2232_v26 = vpop.f32.mrf.mxu0 }
 0x450   :  { %v11007_v59 = vadd.f32 %v2232_v26, %v10772_v18 }
 0x451   :  { %v8734_v27 = vpop.f32.mrf.mxu0 }
 0x453   :  { %v2396_v50 = vpop.f32.mrf.mxu0 }
 0x454   :  { %v2498_v31 = vmax.f32 %v2396_v50, 0.0 }
 0x455   :  { %v8753_v44 = vpop.f32.mrf.mxu0 }
 0x456   :  { %8806 = vmatmul.mubr.msk.f32.vlgmr.msra.gmra.mxu1 %vm622_vm1, %v2498_v31 }
 0x457   :  { %8881 = vmatpush3.bf16.msra.mxu1 %v11013_v22  ;;  %v2399_v2 = vpop.f32.mrf.mxu0  ;;  %8808 = vmatprep.mubr.msk.f32.mxu1 %vm9800_vm0, %v9799_v0 }
 0x458   :  { %v2499_v60 = vmax.f32 %v2399_v2, 0.0  ;;  %8882 = vmatprep.subr.bf16.mxu1 %v9799_v0 }
 0x459   :  { %v8754_v18 = vpop.f32.mrf.mxu0 }
 0x45a   :  { %8809 = vmatmul.mubr.msk.f32.gmra.mxu1 %vm622_vm1, %v2499_v60 }
 0x45b   :  { %v2404_v23 = vpop.f32.mrf.mxu0  ;;  %8811 = vmatprep.mubr.msk.f32.mxu1 %vm9800_vm0, %v9799_v0  ;;  %8883 = vmatpush3.bf16.msra.mxu1 %v11025_v4 }
 0x45c   :  { %v2500_v61 = vmax.f32 %v2404_v23, 0.0  ;;  %8884 = vmatprep.subr.bf16.mxu1 %v9799_v0 }
 0x45d   :  { %v8757_v5 = vpop.f32.mrf.mxu0 }
 0x45e   :  { %8812 = vmatmul.mubr.msk.f32.gmra.mxu1 %vm622_vm1, %v2500_v61 }
 0x45f   :  { %v2407_v11 = vpop.f32.mrf.mxu0  ;;  %8814 = vmatprep.mubr.msk.f32.mxu1 %vm9800_vm0, %v9799_v0  ;;  %8885 = vmatpush3.bf16.msra.mxu1 %v11035_v37 }
 0x460   :  { %v2501_v13 = vmax.f32 %v2407_v11, 0.0  ;;  %8886 = vmatprep.subr.bf16.mxu1 %v9799_v0 }
 0x461   :  { %v8758_v29 = vpop.f32.mrf.mxu0 }
 0x462   :  { %8815 = vmatmul.mubr.msk.f32.gmra.mxu1 %vm622_vm1, %v2501_v13 }
 0x463   :  { %v2412_v36 = vpop.f32.mrf.mxu0  ;;  %8817 = vmatprep.mubr.msk.f32.mxu1 %vm9800_vm0, %v9799_v0  ;;  %8887 = vmatpush3.bf16.msra.mxu1 %v11045_v28 }
 0x464   :  { %v2502_v6 = vmax.f32 %v2412_v36, 0.0  ;;  %8888 = vmatprep.subr.bf16.mxu1 %v9799_v0 }
 0x465   :  { %v8761_v45 = vpop.f32.mrf.mxu0 }
 0x466   :  { %8818 = vmatmul.mubr.msk.f32.gmra.mxu1 %vm622_vm1, %v2502_v6 }
 0x467   :  { %v2415_v32 = vpop.f32.mrf.mxu0  ;;  %8820 = vmatprep.mubr.msk.f32.mxu1 %vm9800_vm0, %v9799_v0  ;;  %8889 = vmatpush3.bf16.msra.mxu1 %v11055_v56 }
 0x468   :  { %v2503_v48 = vmax.f32 %v2415_v32, 0.0  ;;  %8890 = vmatprep.subr.bf16.mxu1 %v9799_v0 }
 0x469   :  { %v8762_v43 = vpop.f32.mrf.mxu0 }
 0x46a   :  { %8821 = vmatmul.mubr.msk.f32.gmra.mxu1 %vm622_vm1, %v2503_v48 }
 0x46b   :  { %v2420_v53 = vpop.f32.mrf.mxu0  ;;  %8823 = vmatprep.mubr.msk.f32.mxu1 %vm9800_vm0, %v9799_v0  ;;  %8891 = vmatpush3.bf16.msra.mxu1 %v11065_v49 }
 0x46c   :  { %v2504_v17 = vmax.f32 %v2420_v53, 0.0  ;;  %8892 = vmatprep.subr.bf16.mxu1 %v9799_v0  ;;  %v3077_v53 = vld [vmem:[%s12384_s2 + $0x14] sm:$0xf] }
 0x46d   :  { %v8765_v47 = vpop.f32.mrf.mxu0 }
 0x46e   :  { %8824 = vmatmul.mubr.msk.f32.gmra.mxu1 %vm622_vm1, %v2504_v17  ;;  %v3078_v47 = vunpack.c.l.bf16 %v3077_v53 }
 0x46f   :  { %v2423_v10 = vpop.f32.mrf.mxu0  ;;  %8826 = vmatprep.mubr.msk.f32.mxu1 %vm9800_vm0, %v9799_v0  ;;  %8893 = vmatpush3.bf16.msra.mxu1 %v11075_v63 }
 0x470   :  { %v2505_v35 = vmax.f32 %v2423_v10, 0.0  ;;  %8894 = vmatprep.subr.bf16.mxu1 %v9799_v0  ;;  %8949 = vmatpush3.msra.mxu0 %v3078_v47  ;;  %v9724_v47 = vld [vmem:[%s12383_s0 + $0x1fc] sm:$0xff]  }
 0x471   :  { %v8766_v14 = vpop.f32.mrf.mxu0  ;;  %9025 = vmatprep.subr.bf16.mxu0 %v9799_v0 }
 0x472   :  { %8827 = vmatmul.mubr.msk.f32.gmra.mxu1 %vm622_vm1, %v2505_v35 }
 0x473   :  { %v2428_v55 = vpop.f32.mrf.mxu0  ;;  %8829 = vmatprep.mubr.msk.f32.mxu1 %vm9800_vm0, %v9799_v0  ;;  %8895 = vmatpush3.bf16.msra.mxu1 %v11085_v15 }
 0x474   :  { %v2506_v58 = vmax.f32 %v2428_v55, 0.0  ;;  %9093 = vmatprep.subr.mxu1 %v9799_v0 }
 0x475   :  { %v8769_v9 = vpop.f32.mrf.mxu0 }
 0x476   :  { %8830 = vmatmul.mubr.msk.f32.gmra.mxu1 %vm622_vm1, %v2506_v58 }
 0x477   :  { %v2431_v41 = vpop.f32.mrf.mxu0  ;;  %8832 = vmatprep.mubr.msk.f32.mxu1 %vm9800_vm0, %v9799_v0 }
 0x478   :  { %v2507_v26 = vmax.f32 %v2431_v41, 0.0 }
 0x479   :  { %v8770_v27 = vpop.f32.mrf.mxu0 }
 0x47a   :  { %8833 = vmatmul.mubr.msk.f32.gmra.mxu1 %vm622_vm1, %v2507_v26 }
 0x47b   :  { %v2436_v50 = vpop.f32.mrf.mxu0  ;;  %8835 = vmatprep.mubr.msk.f32.mxu1 %vm9800_vm0, %v9799_v0 }
 0x47c   :  { %v2508_v31 = vmax.f32 %v2436_v50, 0.0 }
 0x47d   :  { %v8773_v44 = vpop.f32.mrf.mxu0 }
 0x47e   :  { %8836 = vmatmul.mubr.msk.f32.gmra.mxu1 %vm622_vm1, %v2508_v31 }
 0x47f   :  { %v2439_v2 = vpop.f32.mrf.mxu0  ;;  %8838 = vmatprep.mubr.msk.f32.mxu1 %vm9800_vm0, %v9799_v0 }
 0x480   :  { %v2509_v60 = vmax.f32 %v2439_v2, 0.0 }
 0x481   :  { %v8774_v18 = vpop.f32.mrf.mxu0 }
 0x482   :  { %8839 = vmatmul.mubr.msk.f32.gmra.mxu1 %vm622_vm1, %v2509_v60 }
 0x483   :  { %v2444_v23 = vpop.f32.mrf.mxu0  ;;  %8841 = vmatprep.mubr.msk.f32.mxu1 %vm9800_vm0, %v9799_v0 }
 0x484   :  { %v2510_v61 = vmax.f32 %v2444_v23, 0.0 }
 0x485   :  { %v8777_v5 = vpop.f32.mrf.mxu0 }
 0x486   :  { %8842 = vmatmul.mubr.msk.f32.gmra.mxu1 %vm622_vm1, %v2510_v61 }
 0x487   :  { %v2447_v11 = vpop.f32.mrf.mxu0  ;;  %8844 = vmatprep.mubr.msk.f32.mxu1 %vm9800_vm0, %v9799_v0 }
 0x488   :  { %v2511_v13 = vmax.f32 %v2447_v11, 0.0 }
 0x489   :  { %v8778_v29 = vpop.f32.mrf.mxu0 }
 0x48a   :  { %8845 = vmatmul.mubr.msk.f32.gmra.mxu1 %vm622_vm1, %v2511_v13 }
 0x48b   :  { %v2452_v36 = vpop.f32.mrf.mxu0  ;;  %8847 = vmatprep.mubr.msk.f32.mxu1 %vm9800_vm0, %v9799_v0 }
 0x48c   :  { %v2512_v6 = vmax.f32 %v2452_v36, 0.0 }
 0x48d   :  { %v8781_v45 = vpop.f32.mrf.mxu0 }
 0x48e   :  { %8848 = vmatmul.mubr.msk.f32.gmra.mxu1 %vm622_vm1, %v2512_v6 }
 0x48f   :  { %v2455_v32 = vpop.f32.mrf.mxu0  ;;  %8850 = vmatprep.mubr.msk.f32.mxu1 %vm9800_vm0, %v9799_v0 }
 0x490   :  { %v2513_v48 = vmax.f32 %v2455_v32, 0.0 }
 0x491   :  { %v8782_v43 = vpop.f32.mrf.mxu0 }
 0x492   :  { %8851 = vmatmul.mubr.msk.f32.gmra.mxu1 %vm622_vm1, %v2513_v48  ;;  %v9723_v43 = vld [vmem:[%s12383_s0 + $0x1f4] sm:$0xff]  }
 0x493   :  { %v2460_v17 = vpop.f32.mrf.mxu0  ;;  %8853 = vmatprep.mubr.msk.f32.mxu1 %vm9800_vm0, %v9799_v0 }
 0x494   :  { %v2514_v10 = vmax.f32 %v2460_v17, 0.0 }
 0x495   :  { %v8785_v35 = vpop.f32.mrf.mxu0 }
 0x496   :  { %8854 = vmatmul.mubr.msk.f32.gmra.mxu1 %vm622_vm1, %v2514_v10  ;;  %v9725_v10 = vld [vmem:[%s12383_s0 + $0x204] sm:$0xff]   ;;  %v9726_v35 = vld [vmem:[%s12383_s0 + $0x20c] sm:$0xff]  }
 0x497   :  { %v2463_v14 = vpop.f32.mrf.mxu0  ;;  %8856 = vmatprep.mubr.msk.f32.mxu1 %vm9800_vm0, %v9799_v0 }
 0x498   :  { %v2515_v55 = vmax.f32 %v2463_v14, 0.0  ;;  %v9727_v14 = vld [vmem:[%s12383_s0 + $0x214] sm:$0xff]  }
 0x499   :  { %v8786_v58 = vpop.f32.mrf.mxu0 }
 0x49a   :  { %8857 = vmatmul.mubr.msk.f32.gmra.mxu1 %vm622_vm1, %v2515_v55  ;;  %v9728_v55 = vld [vmem:[%s12383_s0 + $0x21c] sm:$0xff]   ;;  %v9729_v58 = vld [vmem:[%s12383_s0 + $0x224] sm:$0xff]  }
 0x49b   :  { %v2468_v9 = vpop.f32.mrf.mxu0  ;;  %8859 = vmatprep.mubr.msk.f32.mxu1 %vm9800_vm0, %v9799_v0 }
 0x49c   :  { %v2516_v41 = vmax.f32 %v2468_v9, 0.0  ;;  %v9730_v9 = vld [vmem:[%s12383_s0 + $0x22c] sm:$0xff]  }
 0x49d   :  { %v8789_v26 = vpop.f32.mrf.mxu0 }
 0x49e   :  { %8860 = vmatmul.mubr.msk.f32.gmra.mxu1 %vm622_vm1, %v2516_v41  ;;  %v9731_v41 = vld [vmem:[%s12383_s0 + $0x234] sm:$0xff]   ;;  %v9732_v26 = vld [vmem:[%s12383_s0 + $0x23c] sm:$0xff]  }
 0x49f   :  { %v2471_v27 = vpop.f32.mrf.mxu0  ;;  %8862 = vmatprep.mubr.msk.f32.mxu1 %vm9800_vm0, %v9799_v0 }
 0x4a0   :  { %v2517_v50 = vmax.f32 %v2471_v27, 0.0  ;;  %v9733_v27 = vld [vmem:[%s12383_s0 + $0x244] sm:$0xff]  }
 0x4a1   :  { %v8790_v31 = vpop.f32.mrf.mxu0 }
 0x4a2   :  { %8863 = vmatmul.mubr.msk.f32.gmra.mxu1 %vm622_vm1, %v2517_v50  ;;  %v9734_v50 = vld [vmem:[%s12383_s0 + $0x24c] sm:$0xff]  }
 0x4a3   :  { %v2476_v44 = vpop.f32.mrf.mxu0  ;;  %8865 = vmatprep.mubr.msk.f32.mxu1 %vm9800_vm0, %v9799_v0 }
 0x4a4   :  { %v2518_v2 = vmax.f32 %v2476_v44, 0.0  ;;  %v9735_v44 = vld [vmem:[%s12383_s0 + $0x254] ss:$0 sps:$4 sm:$0xff]  }
 0x4a5   :  { %v8793_v60 = vpop.f32.mrf.mxu0 }
 0x4a6   :  { %8866 = vmatmul.mubr.msk.f32.gmra.mxu1 %vm622_vm1, %v2518_v2 }
 0x4a7   :  { %v2479_v18 = vpop.f32.mrf.mxu0  ;;  %8868 = vmatprep.mubr.msk.f32.mxu1 %vm9800_vm0, %v9799_v0 }
 0x4a8   :  { %v2519_v23 = vmax.f32 %v2479_v18, 0.0 }
 0x4a9   :  { %v8794_v61 = vpop.f32.mrf.mxu0 }
 0x4aa   :  { %8869 = vmatmul.mubr.msk.f32.gmra.mxu1 %vm622_vm1, %v2519_v23 }
 0x4ab   :  { %v2484_v5 = vpop.f32.mrf.mxu0  ;;  %8871 = vmatprep.mubr.msk.f32.mxu1 %vm9800_vm0, %v9799_v0 }
 0x4ac   :  { %v2520_v11 = vmax.f32 %v2484_v5, 0.0 }
 0x4ad   :  { %v8797_v13 = vpop.f32.mrf.mxu0 }
 0x4ae   :  { %8872 = vmatmul.mubr.msk.f32.gmra.mxu1 %vm622_vm1, %v2520_v11 }
 0x4af   :  { %v2487_v29 = vpop.f32.mrf.mxu0  ;;  %8874 = vmatprep.mubr.msk.f32.mxu1 %vm9800_vm0, %v9799_v0 }
 0x4b0   :  { %v2521_v36 = vmax.f32 %v2487_v29, 0.0 }
 0x4b1   :  { %v8798_v6 = vpop.f32.mrf.mxu0 }
 0x4b2   :  { %8875 = vmatmul.mubr.msk.f32.gmra.mxu1 %vm622_vm1, %v2521_v36 }
 0x4b3   :  { %v2492_v45 = vpop.f32.mrf.mxu0  ;;  %8877 = vmatprep.mubr.msk.f32.mxu1 %vm9800_vm0, %v9799_v0 }
 0x4b4   :  { %v2522_v32 = vmax.f32 %v2492_v45, 0.0 }
 0x4b5   :  { %v8801_v48 = vpop.f32.mrf.mxu0 }
 0x4b6   :  { %8878 = vmatmul.mubr.msk.f32.gmra.mxu1 %vm622_vm1, %v2522_v32 }
 0x4b7   :  { %v2495_v53 = vpop.f32.mrf.mxu0  ;;  %8896 = vmatprep.mubr.msk.bf16.mxu1 %vm9800_vm0, %v9799_v0 }
 0x4b9   :  { %v8802_v17 = vpop.f32.mrf.mxu0 }
 0x4ba   :  { %8897 = vmatmul.mubr.bf16.vlgmr.msra.gmra.mxu1 %v9723_v43 }
 0x4bb   :  { %8900 = vmatprep.mubr.msk.bf16.mxu1 %vm9800_vm0, %v9799_v0 }
 0x4c2   :  { %8901 = vmatmul.mubr.bf16.gmra.mxu1 %v9724_v47 }
 0x4c3   :  { %8904 = vmatprep.mubr.msk.bf16.mxu1 %vm9800_vm0, %v9799_v0 }
 0x4ca   :  { %8905 = vmatmul.mubr.bf16.gmra.mxu1 %v9725_v10 }
 0x4cb   :  { %8908 = vmatprep.mubr.msk.bf16.mxu1 %vm9800_vm0, %v9799_v0 }
 0x4d2   :  { %8909 = vmatmul.mubr.bf16.gmra.mxu1 %v9726_v35 }
 0x4d3   :  { %8912 = vmatprep.mubr.msk.bf16.mxu1 %vm9800_vm0, %v9799_v0 }
 0x4da   :  { %8913 = vmatmul.mubr.bf16.gmra.mxu1 %v9727_v14 }
 0x4db   :  { %8916 = vmatprep.mubr.msk.bf16.mxu1 %vm9800_vm0, %v9799_v0 }
 0x4e2   :  { %8917 = vmatmul.mubr.bf16.gmra.mxu1 %v9728_v55 }
 0x4e3   :  { %8920 = vmatprep.mubr.msk.bf16.mxu1 %vm9800_vm0, %v9799_v0 }
 0x4ea   :  { %8921 = vmatmul.mubr.bf16.gmra.mxu1 %v9729_v58 }
 0x4eb   :  { %8924 = vmatprep.mubr.msk.bf16.mxu1 %vm9800_vm0, %v9799_v0 }
 0x4f2   :  { %8925 = vmatmul.mubr.bf16.gmra.mxu1 %v9730_v9 }
 0x4f3   :  { %8928 = vmatprep.mubr.msk.bf16.mxu1 %vm9800_vm0, %v9799_v0 }
 0x4fa   :  { %8929 = vmatmul.mubr.bf16.gmra.mxu1 %v9731_v41 }
 0x4fb   :  { %8932 = vmatprep.mubr.msk.bf16.mxu1 %vm9800_vm0, %v9799_v0 }
 0x502   :  { %8933 = vmatmul.mubr.bf16.gmra.mxu1 %v9732_v26 }
 0x503   :  { %8936 = vmatprep.mubr.msk.bf16.mxu1 %vm9800_vm0, %v9799_v0 }
 0x50a   :  { %8937 = vmatmul.mubr.bf16.gmra.mxu1 %v9733_v27 }
 0x50b   :  { %8940 = vmatprep.mubr.msk.bf16.mxu1 %vm9800_vm0, %v9799_v0 }
 0x512   :  { %8941 = vmatmul.mubr.bf16.gmra.mxu1 %v9734_v50 }
 0x513   :  { %8944 = vmatprep.mubr.msk.bf16.mxu1 %vm9800_vm0, %v9799_v0 }
 0x516   :  { %v2666_v31 = vpop.f32.mrf.mxu1 }
 0x517   :  { %v11208_v2 = vadd.f32 %v2666_v31, %v10933_v57 }
 0x518   :  { %v8807_v60 = vpop.f32.mrf.mxu1 }
 0x51a   :  { %v2671_v18 = vpop.f32.mrf.mxu1  ;;  %8945 = vmatmul.mubr.bf16.gmra.mxu1 %v9735_v44 }
 0x51b   :  { %v11211_v23 = vadd.f32 %v2671_v18, %v10936_v12  ;;  %9095 = vmatprep.mubr.msk.f32.mxu1 %vm9800_vm0, %v9799_v0 }
 0x51c   :  { %v8810_v61 = vpop.f32.mrf.mxu1 }
 0x51e   :  { %v2676_v5 = vpop.f32.mrf.mxu1 }
 0x51f   :  { %v11216_v11 = vadd.f32 %v2676_v5, %v10941_v62 }
 0x520   :  { %v8813_v13 = vpop.f32.mrf.mxu1 }
 0x522   :  { %v2681_v29 = vpop.f32.mrf.mxu1 }
 0x523   :  { %v11219_v36 = vadd.f32 %v2681_v29, %v10944_v25 }
 0x524   :  { %v8816_v57 = vpop.f32.mrf.mxu1 }
 0x526   :  { %v2686_v6 = vpop.f32.mrf.mxu1 }
 0x527   :  { %v11222_v45 = vadd.f32 %v2686_v6, %v10947_v7 }
 0x528   :  { %v8819_v12 = vpop.f32.mrf.mxu1 }
 0x52a   :  { %v2691_v32 = vpop.f32.mrf.mxu1 }
 0x52b   :  { %v11225_v48 = vadd.f32 %v2691_v32, %v10950_v20 }
 0x52c   :  { %v8822_v43 = vpop.f32.mrf.mxu1 }
 0x52e   :  { %v2696_v53 = vpop.f32.mrf.mxu1 }
 0x52f   :  { %v11228_v62 = vadd.f32 %v2696_v53, %v10953_v1 }
 0x530   :  { %v8825_v17 = vpop.f32.mrf.mxu1 }
 0x532   :  { %v2701_v47 = vpop.f32.mrf.mxu1 }
 0x533   :  { %v11231_v25 = vadd.f32 %v2701_v47, %v10956_v34 }
 0x534   :  { %v8828_v10 = vpop.f32.mrf.mxu1 }
 0x536   :  { %v2706_v35 = vpop.f32.mrf.mxu1 }
 0x537   :  { %v11234_v7 = vadd.f32 %v2706_v35, %v10959_v33 }
 0x538   :  { %v8831_v14 = vpop.f32.mrf.mxu1 }
 0x53a   :  { %v2711_v55 = vpop.f32.mrf.mxu1 }
 0x53b   :  { %v11237_v20 = vadd.f32 %v2711_v55, %v10962_v30 }
 0x53c   :  { %v8834_v58 = vpop.f32.mrf.mxu1 }
 0x53e   :  { %v2716_v9 = vpop.f32.mrf.mxu1 }
 0x53f   :  { %v11240_v1 = vadd.f32 %v2716_v9, %v10965_v19 }
 0x540   :  { %v8837_v41 = vpop.f32.mrf.mxu1 }
 0x542   :  { %v2721_v26 = vpop.f32.mrf.mxu1 }
 0x543   :  { %v11243_v34 = vadd.f32 %v2721_v26, %v10968_v54 }
 0x544   :  { %v8840_v27 = vpop.f32.mrf.mxu1 }
 0x546   :  { %v2726_v50 = vpop.f32.mrf.mxu1 }
 0x547   :  { %v11246_v33 = vadd.f32 %v2726_v50, %v10971_v3 }
 0x548   :  { %v8843_v31 = vpop.f32.mrf.mxu1 }
 0x54a   :  { %v2731_v44 = vpop.f32.mrf.mxu1 }
 0x54b   :  { %v11249_v30 = vadd.f32 %v2731_v44, %v10974_v16 }
 0x54c   :  { %v8846_v60 = vpop.f32.mrf.mxu1 }
 0x54e   :  { %v2736_v18 = vpop.f32.mrf.mxu1 }
 0x54f   :  { %v11252_v19 = vadd.f32 %v2736_v18, %v10977_v39 }
 0x550   :  { %v8849_v61 = vpop.f32.mrf.mxu1 }
 0x552   :  { %v2741_v5 = vpop.f32.mrf.mxu1 }
 0x553   :  { %v11255_v54 = vadd.f32 %v2741_v5, %v10980_v40 }
 0x554   :  { %v8852_v13 = vpop.f32.mrf.mxu1 }
 0x556   :  { %v2746_v29 = vpop.f32.mrf.mxu1 }
 0x557   :  { %v11258_v3 = vadd.f32 %v2746_v29, %v10983_v42 }
 0x558   :  { %v8855_v57 = vpop.f32.mrf.mxu1 }
 0x55a   :  { %v2751_v6 = vpop.f32.mrf.mxu1 }
 0x55b   :  { %v11261_v16 = vadd.f32 %v2751_v6, %v10986_v38 }
 0x55c   :  { %v8858_v12 = vpop.f32.mrf.mxu1 }
 0x55e   :  { %v2756_v32 = vpop.f32.mrf.mxu1 }
 0x55f   :  { %v11264_v39 = vadd.f32 %v2756_v32, %v10989_v46 }
 0x560   :  { %v8861_v43 = vpop.f32.mrf.mxu1 }
 0x562   :  { %v2761_v53 = vpop.f32.mrf.mxu1 }
 0x563   :  { %v11267_v40 = vadd.f32 %v2761_v53, %v10992_v21 }
 0x564   :  { %v8864_v17 = vpop.f32.mrf.mxu1 }
 0x566   :  { %v2766_v47 = vpop.f32.mrf.mxu1 }
 0x567   :  { %v11270_v42 = vadd.f32 %v2766_v47, %v10995_v24 }
 0x568   :  { %v8867_v10 = vpop.f32.mrf.mxu1 }
 0x56a   :  { %v2771_v35 = vpop.f32.mrf.mxu1 }
 0x56b   :  { %v11273_v38 = vadd.f32 %v2771_v35, %v10998_v52 }
 0x56c   :  { %v8870_v14 = vpop.f32.mrf.mxu1 }
 0x56e   :  { %v2776_v55 = vpop.f32.mrf.mxu1 }
 0x56f   :  { %v11276_v46 = vadd.f32 %v2776_v55, %v11001_v8 }
 0x570   :  { %v8873_v58 = vpop.f32.mrf.mxu1 }
 0x572   :  { %v2781_v9 = vpop.f32.mrf.mxu1 }
 0x573   :  { %v11279_v21 = vadd.f32 %v2781_v9, %v11004_v51 }
 0x574   :  { %v8876_v41 = vpop.f32.mrf.mxu1 }
 0x576   :  { %v2786_v26 = vpop.f32.mrf.mxu1 }
 0x577   :  { %v11282_v24 = vadd.f32 %v2786_v26, %v11007_v59 }
 0x578   :  { %v8879_v27 = vpop.f32.mrf.mxu1 }
 0x57a   :  { %v2950_v50 = vpop.f32.mrf.mxu1 }
 0x57b   :  { %v3052_v31 = vmax.f32 %v2950_v50, 0.0 }
 0x57c   :  { %v8898_v52 = vpop.f32.mrf.mxu1 }
 0x57d   :  { %8951 = vmatmul.mubr.msk.f32.vlgmr.msra.gmra.mxu0 %vm622_vm1, %v3052_v31 }
 0x57e   :  { %9026 = vmatpush3.bf16.msra.mxu0 %v11013_v22  ;;  %v2953_v8 = vpop.f32.mrf.mxu1  ;;  %8953 = vmatprep.mubr.msk.f32.mxu0 %vm9800_vm0, %v9799_v0 }
 0x57f   :  { %v3053_v44 = vmax.f32 %v2953_v8, 0.0  ;;  %9027 = vmatprep.subr.bf16.mxu0 %v9799_v0 }
 0x580   :  { %v8899_v51 = vpop.f32.mrf.mxu1 }
 0x581   :  { %8954 = vmatmul.mubr.msk.f32.gmra.mxu0 %vm622_vm1, %v3053_v44 }
 0x582   :  { %v2958_v59 = vpop.f32.mrf.mxu1  ;;  %8956 = vmatprep.mubr.msk.f32.mxu0 %vm9800_vm0, %v9799_v0  ;;  %9028 = vmatpush3.bf16.msra.mxu0 %v11025_v4 }
 0x583   :  { %v3054_v60 = vmax.f32 %v2958_v59, 0.0  ;;  %9029 = vmatprep.subr.bf16.mxu0 %v9799_v0 }
 0x584   :  { %v8902_v22 = vpop.f32.mrf.mxu1 }
 0x585   :  { %8957 = vmatmul.mubr.msk.f32.gmra.mxu0 %vm622_vm1, %v3054_v60 }
 0x586   :  { %v2961_v18 = vpop.f32.mrf.mxu1  ;;  %8959 = vmatprep.mubr.msk.f32.mxu0 %vm9800_vm0, %v9799_v0  ;;  %9030 = vmatpush3.bf16.msra.mxu0 %v11035_v37 }
 0x587   :  { %v3055_v61 = vmax.f32 %v2961_v18, 0.0  ;;  %9031 = vmatprep.subr.bf16.mxu0 %v9799_v0 }
 0x588   :  { %v8903_v5 = vpop.f32.mrf.mxu1 }
 0x589   :  { %8960 = vmatmul.mubr.msk.f32.gmra.mxu0 %vm622_vm1, %v3055_v61  ;;  %v3631_v61 = vld [vmem:[%s12384_s2 + $0x18] sm:$0xf] }
 0x58a   :  { %v2966_v13 = vpop.f32.mrf.mxu1  ;;  %8962 = vmatprep.mubr.msk.f32.mxu0 %vm9800_vm0, %v9799_v0  ;;  %9032 = vmatpush3.bf16.msra.mxu0 %v11045_v28 }
 0x58b   :  { %v3056_v4 = vmax.f32 %v2966_v13, 0.0  ;;  %9033 = vmatprep.subr.bf16.mxu0 %v9799_v0  ;;  %v3632_v13 = vunpack.c.l.bf16 %v3631_v61  ;;  %v9743_v61 = vld [vmem:[%s12383_s0 + $0x290] sm:$0xff]  }
 0x58c   :  { %v8906_v29 = vpop.f32.mrf.mxu1 }
 0x58d   :  { %8963 = vmatmul.mubr.msk.f32.gmra.mxu0 %vm622_vm1, %v3056_v4  ;;  %9094 = vmatpush3.msra.mxu1 %v3632_v13  ;;  %v9745_v13 = vld [vmem:[%s12383_s0 + $0x2a0] sm:$0xff]  }
 0x58e   :  { %v2969_v57 = vpop.f32.mrf.mxu1  ;;  %8965 = vmatprep.mubr.msk.f32.mxu0 %vm9800_vm0, %v9799_v0  ;;  %9034 = vmatpush3.bf16.msra.mxu0 %v11055_v56 }
 0x58f   :  { %v3057_v37 = vmax.f32 %v2969_v57, 0.0  ;;  %9035 = vmatprep.subr.bf16.mxu0 %v9799_v0  ;;  %9170 = vmatprep.subr.bf16.mxu1 %v9799_v0 }
 0x590   :  { %v8907_v6 = vpop.f32.mrf.mxu1 }
 0x591   :  { %8966 = vmatmul.mubr.msk.f32.gmra.mxu0 %vm622_vm1, %v3057_v37 }
 0x592   :  { %v2974_v12 = vpop.f32.mrf.mxu1  ;;  %8968 = vmatprep.mubr.msk.f32.mxu0 %vm9800_vm0, %v9799_v0  ;;  %9036 = vmatpush3.bf16.msra.mxu0 %v11065_v49 }
 0x593   :  { %v3058_v28 = vmax.f32 %v2974_v12, 0.0  ;;  %9037 = vmatprep.subr.bf16.mxu0 %v9799_v0 }
 0x594   :  { %v8910_v32 = vpop.f32.mrf.mxu1 }
 0x595   :  { %8969 = vmatmul.mubr.msk.f32.gmra.mxu0 %vm622_vm1, %v3058_v28 }
 0x596   :  { %v2977_v43 = vpop.f32.mrf.mxu1  ;;  %8971 = vmatprep.mubr.msk.f32.mxu0 %vm9800_vm0, %v9799_v0  ;;  %9038 = vmatpush3.bf16.msra.mxu0 %v11075_v63 }
 0x597   :  { %v3059_v56 = vmax.f32 %v2977_v43, 0.0  ;;  %9039 = vmatprep.subr.bf16.mxu0 %v9799_v0 }
 0x598   :  { %v8911_v53 = vpop.f32.mrf.mxu1 }
 0x599   :  { %8972 = vmatmul.mubr.msk.f32.gmra.mxu0 %vm622_vm1, %v3059_v56 }
 0x59a   :  { %v2982_v17 = vpop.f32.mrf.mxu1  ;;  %8974 = vmatprep.mubr.msk.f32.mxu0 %vm9800_vm0, %v9799_v0  ;;  %9040 = vmatpush3.bf16.msra.mxu0 %v11085_v15 }
 0x59b   :  { %v3060_v49 = vmax.f32 %v2982_v17, 0.0  ;;  %9238 = vmatprep.subr.mxu0 %v9799_v0 }
 0x59c   :  { %v8914_v47 = vpop.f32.mrf.mxu1 }
 0x59d   :  { %8975 = vmatmul.mubr.msk.f32.gmra.mxu0 %vm622_vm1, %v3060_v49 }
 0x59e   :  { %v2985_v10 = vpop.f32.mrf.mxu1  ;;  %8977 = vmatprep.mubr.msk.f32.mxu0 %vm9800_vm0, %v9799_v0 }
 0x59f   :  { %v3061_v63 = vmax.f32 %v2985_v10, 0.0 }
 0x5a0   :  { %v8915_v35 = vpop.f32.mrf.mxu1 }
 0x5a1   :  { %8978 = vmatmul.mubr.msk.f32.gmra.mxu0 %vm622_vm1, %v3061_v63 }
 0x5a2   :  { %v2990_v14 = vpop.f32.mrf.mxu1  ;;  %8980 = vmatprep.mubr.msk.f32.mxu0 %vm9800_vm0, %v9799_v0 }
 0x5a3   :  { %v3062_v55 = vmax.f32 %v2990_v14, 0.0 }
 0x5a4   :  { %v8918_v15 = vpop.f32.mrf.mxu1 }
 0x5a5   :  { %8981 = vmatmul.mubr.msk.f32.gmra.mxu0 %vm622_vm1, %v3062_v55 }
 0x5a6   :  { %v2993_v58 = vpop.f32.mrf.mxu1  ;;  %8983 = vmatprep.mubr.msk.f32.mxu0 %vm9800_vm0, %v9799_v0 }
 0x5a7   :  { %v3063_v9 = vmax.f32 %v2993_v58, 0.0 }
 0x5a8   :  { %v8919_v41 = vpop.f32.mrf.mxu1 }
 0x5a9   :  { %8984 = vmatmul.mubr.msk.f32.gmra.mxu0 %vm622_vm1, %v3063_v9 }
 0x5aa   :  { %v2998_v26 = vpop.f32.mrf.mxu1  ;;  %8986 = vmatprep.mubr.msk.f32.mxu0 %vm9800_vm0, %v9799_v0 }
 0x5ab   :  { %v3064_v27 = vmax.f32 %v2998_v26, 0.0 }
 0x5ac   :  { %v8922_v50 = vpop.f32.mrf.mxu1 }
 0x5ad   :  { %8987 = vmatmul.mubr.msk.f32.gmra.mxu0 %vm622_vm1, %v3064_v27 }
 0x5ae   :  { %v3001_v31 = vpop.f32.mrf.mxu1  ;;  %8989 = vmatprep.mubr.msk.f32.mxu0 %vm9800_vm0, %v9799_v0 }
 0x5af   :  { %v3065_v52 = vmax.f32 %v3001_v31, 0.0  ;;  %v9736_v31 = vld [vmem:[%s12383_s0 + $0x258] sm:$0xff]  }
 0x5b0   :  { %v8923_v8 = vpop.f32.mrf.mxu1 }
 0x5b1   :  { %8990 = vmatmul.mubr.msk.f32.gmra.mxu0 %vm622_vm1, %v3065_v52 }
 0x5b2   :  { %v3006_v44 = vpop.f32.mrf.mxu1  ;;  %8992 = vmatprep.mubr.msk.f32.mxu0 %vm9800_vm0, %v9799_v0 }
 0x5b3   :  { %v3066_v51 = vmax.f32 %v3006_v44, 0.0  ;;  %v9737_v44 = vld [vmem:[%s12383_s0 + $0x260] sm:$0xff]  }
 0x5b4   :  { %v8926_v59 = vpop.f32.mrf.mxu1 }
 0x5b5   :  { %8993 = vmatmul.mubr.msk.f32.gmra.mxu0 %vm622_vm1, %v3066_v51  ;;  %v9738_v51 = vld [vmem:[%s12383_s0 + $0x268] sm:$0xff]   ;;  %v9739_v59 = vld [vmem:[%s12383_s0 + $0x270] sm:$0xff]  }
 0x5b6   :  { %v3009_v60 = vpop.f32.mrf.mxu1  ;;  %8995 = vmatprep.mubr.msk.f32.mxu0 %vm9800_vm0, %v9799_v0 }
 0x5b7   :  { %v3067_v22 = vmax.f32 %v3009_v60, 0.0  ;;  %v9740_v60 = vld [vmem:[%s12383_s0 + $0x278] sm:$0xff]  }
 0x5b8   :  { %v8927_v18 = vpop.f32.mrf.mxu1 }
 0x5b9   :  { %8996 = vmatmul.mubr.msk.f32.gmra.mxu0 %vm622_vm1, %v3067_v22  ;;  %v9741_v22 = vld [vmem:[%s12383_s0 + $0x280] sm:$0xff]   ;;  %v9742_v18 = vld [vmem:[%s12383_s0 + $0x288] sm:$0xff]  }
 0x5ba   :  { %v3014_v5 = vpop.f32.mrf.mxu1  ;;  %8998 = vmatprep.mubr.msk.f32.mxu0 %vm9800_vm0, %v9799_v0 }
 0x5bb   :  { %v3068_v4 = vmax.f32 %v3014_v5, 0.0  ;;  %v9744_v5 = vld [vmem:[%s12383_s0 + $0x298] sm:$0xff]  }
 0x5bc   :  { %v8930_v29 = vpop.f32.mrf.mxu1 }
 0x5bd   :  { %8999 = vmatmul.mubr.msk.f32.gmra.mxu0 %vm622_vm1, %v3068_v4  ;;  %v9746_v4 = vld [vmem:[%s12383_s0 + $0x2a8] sm:$0xff]   ;;  %v9747_v29 = vld [vmem:[%s12383_s0 + $0x2b0] sm:$0xff]  }
 0x5be   :  { %v3017_v57 = vpop.f32.mrf.mxu1  ;;  %9001 = vmatprep.mubr.msk.f32.mxu0 %vm9800_vm0, %v9799_v0 }
 0x5bf   :  { %v3069_v37 = vmax.f32 %v3017_v57, 0.0 }
 0x5c0   :  { %v8931_v6 = vpop.f32.mrf.mxu1 }
 0x5c1   :  { %9002 = vmatmul.mubr.msk.f32.gmra.mxu0 %vm622_vm1, %v3069_v37  ;;  %v9748_v37 = vld [vmem:[%s12383_s0 + $0x2b8] ss:$0 sps:$4 sm:$0xff]  }
 0x5c2   :  { %v3022_v12 = vpop.f32.mrf.mxu1  ;;  %9004 = vmatprep.mubr.msk.f32.mxu0 %vm9800_vm0, %v9799_v0 }
 0x5c3   :  { %v3070_v28 = vmax.f32 %v3022_v12, 0.0 }
 0x5c4   :  { %v8934_v32 = vpop.f32.mrf.mxu1 }
 0x5c5   :  { %9005 = vmatmul.mubr.msk.f32.gmra.mxu0 %vm622_vm1, %v3070_v28 }
 0x5c6   :  { %v3025_v43 = vpop.f32.mrf.mxu1  ;;  %9007 = vmatprep.mubr.msk.f32.mxu0 %vm9800_vm0, %v9799_v0 }
 0x5c7   :  { %v3071_v56 = vmax.f32 %v3025_v43, 0.0 }
 0x5c8   :  { %v8935_v53 = vpop.f32.mrf.mxu1 }
 0x5c9   :  { %9008 = vmatmul.mubr.msk.f32.gmra.mxu0 %vm622_vm1, %v3071_v56 }
 0x5ca   :  { %v3030_v17 = vpop.f32.mrf.mxu1  ;;  %9010 = vmatprep.mubr.msk.f32.mxu0 %vm9800_vm0, %v9799_v0 }
 0x5cb   :  { %v3072_v49 = vmax.f32 %v3030_v17, 0.0 }
 0x5cc   :  { %v8938_v47 = vpop.f32.mrf.mxu1 }
 0x5cd   :  { %9011 = vmatmul.mubr.msk.f32.gmra.mxu0 %vm622_vm1, %v3072_v49 }
 0x5ce   :  { %v3033_v10 = vpop.f32.mrf.mxu1  ;;  %9013 = vmatprep.mubr.msk.f32.mxu0 %vm9800_vm0, %v9799_v0 }
 0x5cf   :  { %v3073_v63 = vmax.f32 %v3033_v10, 0.0 }
 0x5d0   :  { %v8939_v35 = vpop.f32.mrf.mxu1 }
 0x5d1   :  { %9014 = vmatmul.mubr.msk.f32.gmra.mxu0 %vm622_vm1, %v3073_v63 }
 0x5d2   :  { %v3038_v14 = vpop.f32.mrf.mxu1  ;;  %9016 = vmatprep.mubr.msk.f32.mxu0 %vm9800_vm0, %v9799_v0 }
 0x5d3   :  { %v3074_v55 = vmax.f32 %v3038_v14, 0.0 }
 0x5d4   :  { %v8942_v15 = vpop.f32.mrf.mxu1 }
 0x5d5   :  { %9017 = vmatmul.mubr.msk.f32.gmra.mxu0 %vm622_vm1, %v3074_v55 }
 0x5d6   :  { %v3041_v58 = vpop.f32.mrf.mxu1  ;;  %9019 = vmatprep.mubr.msk.f32.mxu0 %vm9800_vm0, %v9799_v0 }
 0x5d7   :  { %v3075_v9 = vmax.f32 %v3041_v58, 0.0 }
 0x5d8   :  { %v8943_v41 = vpop.f32.mrf.mxu1 }
 0x5d9   :  { %9020 = vmatmul.mubr.msk.f32.gmra.mxu0 %vm622_vm1, %v3075_v9 }
 0x5da   :  { %v3046_v26 = vpop.f32.mrf.mxu1  ;;  %9022 = vmatprep.mubr.msk.f32.mxu0 %vm9800_vm0, %v9799_v0 }
 0x5db   :  { %v3076_v27 = vmax.f32 %v3046_v26, 0.0 }
 0x5dc   :  { %v8946_v50 = vpop.f32.mrf.mxu1 }
 0x5dd   :  { %9023 = vmatmul.mubr.msk.f32.gmra.mxu0 %vm622_vm1, %v3076_v27 }
 0x5de   :  { %v3049_v52 = vpop.f32.mrf.mxu1  ;;  %9041 = vmatprep.mubr.msk.bf16.mxu0 %vm9800_vm0, %v9799_v0 }
 0x5e0   :  { %v8947_v8 = vpop.f32.mrf.mxu1 }
 0x5e1   :  { %9042 = vmatmul.mubr.bf16.vlgmr.msra.gmra.mxu0 %v9736_v31 }
 0x5e2   :  { %9045 = vmatprep.mubr.msk.bf16.mxu0 %vm9800_vm0, %v9799_v0 }
 0x5e9   :  { %9046 = vmatmul.mubr.bf16.gmra.mxu0 %v9737_v44 }
 0x5ea   :  { %9049 = vmatprep.mubr.msk.bf16.mxu0 %vm9800_vm0, %v9799_v0 }
 0x5f1   :  { %9050 = vmatmul.mubr.bf16.gmra.mxu0 %v9738_v51 }
 0x5f2   :  { %9053 = vmatprep.mubr.msk.bf16.mxu0 %vm9800_vm0, %v9799_v0 }
 0x5f9   :  { %9054 = vmatmul.mubr.bf16.gmra.mxu0 %v9739_v59 }
 0x5fa   :  { %9057 = vmatprep.mubr.msk.bf16.mxu0 %vm9800_vm0, %v9799_v0 }
 0x601   :  { %9058 = vmatmul.mubr.bf16.gmra.mxu0 %v9740_v60 }
 0x602   :  { %9061 = vmatprep.mubr.msk.bf16.mxu0 %vm9800_vm0, %v9799_v0 }
 0x609   :  { %9062 = vmatmul.mubr.bf16.gmra.mxu0 %v9741_v22 }
 0x60a   :  { %9065 = vmatprep.mubr.msk.bf16.mxu0 %vm9800_vm0, %v9799_v0 }
 0x611   :  { %9066 = vmatmul.mubr.bf16.gmra.mxu0 %v9742_v18 }
 0x612   :  { %9069 = vmatprep.mubr.msk.bf16.mxu0 %vm9800_vm0, %v9799_v0 }
 0x619   :  { %9070 = vmatmul.mubr.bf16.gmra.mxu0 %v9743_v61 }
 0x61a   :  { %9073 = vmatprep.mubr.msk.bf16.mxu0 %vm9800_vm0, %v9799_v0 }
 0x621   :  { %9074 = vmatmul.mubr.bf16.gmra.mxu0 %v9744_v5 }
 0x622   :  { %9077 = vmatprep.mubr.msk.bf16.mxu0 %vm9800_vm0, %v9799_v0 }
 0x629   :  { %9078 = vmatmul.mubr.bf16.gmra.mxu0 %v9745_v13 }
 0x62a   :  { %9081 = vmatprep.mubr.msk.bf16.mxu0 %vm9800_vm0, %v9799_v0 }
 0x631   :  { %9082 = vmatmul.mubr.bf16.gmra.mxu0 %v9746_v4 }
 0x632   :  { %9085 = vmatprep.mubr.msk.bf16.mxu0 %vm9800_vm0, %v9799_v0 }
 0x639   :  { %9086 = vmatmul.mubr.bf16.gmra.mxu0 %v9747_v29 }
 0x63a   :  { %9089 = vmatprep.mubr.msk.bf16.mxu0 %vm9800_vm0, %v9799_v0 }
 0x63d   :  { %v3220_v57 = vpop.f32.mrf.mxu0 }
 0x63e   :  { %v11443_v6 = vadd.f32 %v3220_v57, %v11208_v2 }
 0x63f   :  { %v8952_v12 = vpop.f32.mrf.mxu0 }
 0x641   :  { %v3225_v28 = vpop.f32.mrf.mxu0  ;;  %9090 = vmatmul.mubr.bf16.gmra.mxu0 %v9748_v37 }
 0x642   :  { %v11446_v32 = vadd.f32 %v3225_v28, %v11211_v23  ;;  %9240 = vmatprep.mubr.msk.f32.mxu0 %vm9800_vm0, %v9799_v0 }
 0x643   :  { %v8955_v43 = vpop.f32.mrf.mxu0 }
 0x645   :  { %v3230_v56 = vpop.f32.mrf.mxu0 }
 0x646   :  { %v11451_v53 = vadd.f32 %v3230_v56, %v11216_v11 }
 0x647   :  { %v8958_v17 = vpop.f32.mrf.mxu0 }
 0x649   :  { %v3235_v49 = vpop.f32.mrf.mxu0 }
 0x64a   :  { %v11454_v47 = vadd.f32 %v3235_v49, %v11219_v36 }
 0x64b   :  { %v8961_v2 = vpop.f32.mrf.mxu0 }
 0x64d   :  { %v3240_v10 = vpop.f32.mrf.mxu0 }
 0x64e   :  { %v11457_v63 = vadd.f32 %v3240_v10, %v11222_v45 }
 0x64f   :  { %v8964_v23 = vpop.f32.mrf.mxu0 }
 0x651   :  { %v3245_v35 = vpop.f32.mrf.mxu0 }
 0x652   :  { %v11460_v14 = vadd.f32 %v3245_v35, %v11225_v48 }
 0x653   :  { %v8967_v55 = vpop.f32.mrf.mxu0 }
 0x655   :  { %v3250_v15 = vpop.f32.mrf.mxu0 }
 0x656   :  { %v11463_v11 = vadd.f32 %v3250_v15, %v11228_v62 }
 0x657   :  { %v8970_v58 = vpop.f32.mrf.mxu0 }
 0x659   :  { %v3255_v9 = vpop.f32.mrf.mxu0 }
 0x65a   :  { %v11466_v36 = vadd.f32 %v3255_v9, %v11231_v25 }
 0x65b   :  { %v8973_v41 = vpop.f32.mrf.mxu0 }
 0x65d   :  { %v3260_v26 = vpop.f32.mrf.mxu0 }
 0x65e   :  { %v11469_v45 = vadd.f32 %v3260_v26, %v11234_v7 }
 0x65f   :  { %v8976_v27 = vpop.f32.mrf.mxu0 }
 0x661   :  { %v3265_v50 = vpop.f32.mrf.mxu0 }
 0x662   :  { %v11472_v48 = vadd.f32 %v3265_v50, %v11237_v20 }
 0x663   :  { %v8979_v31 = vpop.f32.mrf.mxu0 }
 0x665   :  { %v3270_v52 = vpop.f32.mrf.mxu0 }
 0x666   :  { %v11475_v62 = vadd.f32 %v3270_v52, %v11240_v1  ;;  %v11535_v52 = vld [vmem:[%s12382_s1 + $0x30] sm:$0xff]  }
 0x667   :  { %v8982_v8 = vpop.f32.mrf.mxu0 }
 0x669   :  { %v3275_v44 = vpop.f32.mrf.mxu0 }
 0x66a   :  { %v11478_v25 = vadd.f32 %v3275_v44, %v11243_v34 }
 0x66b   :  { %v8985_v51 = vpop.f32.mrf.mxu0 }
 0x66d   :  { %v3280_v59 = vpop.f32.mrf.mxu0 }
 0x66e   :  { %v11481_v7 = vadd.f32 %v3280_v59, %v11246_v33  ;;  %v11545_v59 = vld [vmem:[%s12382_s1 + $0x28] sm:$0xff]  }
 0x66f   :  { %v8988_v60 = vpop.f32.mrf.mxu0 }
 0x671   :  { %v3285_v22 = vpop.f32.mrf.mxu0 }
 0x672   :  { %v11484_v20 = vadd.f32 %v3285_v22, %v11249_v30 }
 0x673   :  { %v8991_v18 = vpop.f32.mrf.mxu0 }
 0x675   :  { %v3290_v61 = vpop.f32.mrf.mxu0 }
 0x676   :  { %v11487_v1 = vadd.f32 %v3290_v61, %v11252_v19  ;;  %v11555_v61 = vld [vmem:[%s12382_s1 + $0x20] sm:$0xff]  }
 0x677   :  { %v8994_v5 = vpop.f32.mrf.mxu0 }
 0x679   :  { %v3295_v13 = vpop.f32.mrf.mxu0 }
 0x67a   :  { %v11490_v34 = vadd.f32 %v3295_v13, %v11255_v54 }
 0x67b   :  { %v8997_v4 = vpop.f32.mrf.mxu0 }
 0x67d   :  { %v3300_v29 = vpop.f32.mrf.mxu0 }
 0x67e   :  { %v11493_v33 = vadd.f32 %v3300_v29, %v11258_v3  ;;  %v11565_v29 = vld [vmem:[%s12382_s1 + $0x18] sm:$0xff]  }
 0x67f   :  { %v9000_v57 = vpop.f32.mrf.mxu0 }
 0x681   :  { %v3305_v37 = vpop.f32.mrf.mxu0 }
 0x682   :  { %v11496_v30 = vadd.f32 %v3305_v37, %v11261_v16 }
 0x683   :  { %v9003_v12 = vpop.f32.mrf.mxu0 }
 0x685   :  { %v3310_v28 = vpop.f32.mrf.mxu0 }
 0x686   :  { %v11499_v19 = vadd.f32 %v3310_v28, %v11264_v39  ;;  %v11575_v28 = vld [vmem:[%s12382_s1 + $0x10] sm:$0xff]  }
 0x687   :  { %v9006_v43 = vpop.f32.mrf.mxu0 }
 0x689   :  { %v3315_v56 = vpop.f32.mrf.mxu0 }
 0x68a   :  { %v11502_v54 = vadd.f32 %v3315_v56, %v11267_v40 }
 0x68b   :  { %v9009_v17 = vpop.f32.mrf.mxu0 }
 0x68d   :  { %v3320_v49 = vpop.f32.mrf.mxu0 }
 0x68e   :  { %v11505_v3 = vadd.f32 %v3320_v49, %v11270_v42  ;;  %v11585_v49 = vld [vmem:[%s12382_s1 + $0x8] sm:$0xff]  }
 0x68f   :  { %v9012_v2 = vpop.f32.mrf.mxu0 }
 0x691   :  { %v3325_v10 = vpop.f32.mrf.mxu0 }
 0x692   :  { %v11508_v16 = vadd.f32 %v3325_v10, %v11273_v38 }
 0x693   :  { %v9015_v23 = vpop.f32.mrf.mxu0 }
 0x695   :  { %v3330_v35 = vpop.f32.mrf.mxu0 }
 0x696   :  { %v11511_v39 = vadd.f32 %v3330_v35, %v11276_v46  ;;  %v11523_v46 = vld [vmem:[%s12382_s1 + $0x38] sm:$0xff]   ;;  %v11595_v35 = vld [vmem:[%s12382_s1] sm:$0xff]  }
 0x697   :  { %v9018_v55 = vpop.f32.mrf.mxu0 }
 0x699   :  { %v3335_v15 = vpop.f32.mrf.mxu0 }
 0x69a   :  { %v11514_v40 = vadd.f32 %v3335_v15, %v11279_v21 }
 0x69b   :  { %v9021_v58 = vpop.f32.mrf.mxu0 }
 0x69d   :  { %v3340_v9 = vpop.f32.mrf.mxu0 }
 0x69e   :  { %v11517_v42 = vadd.f32 %v3340_v9, %v11282_v24 }
 0x69f   :  { %v9024_v41 = vpop.f32.mrf.mxu0 }
 0x6a1   :  { %v3504_v26 = vpop.f32.mrf.mxu0 }
 0x6a2   :  { %v3606_v27 = vmax.f32 %v3504_v26, 0.0 }
 0x6a3   :  { %v9043_v38 = vpop.f32.mrf.mxu0 }
 0x6a4   :  { %9096 = vmatmul.mubr.msk.f32.vlgmr.msra.gmra.mxu1 %vm622_vm1, %v3606_v27 }
 0x6a5   :  { %9171 = vmatpush3.bf16.msra.mxu1 %v11523_v46  ;;  %v3507_v21 = vpop.f32.mrf.mxu0  ;;  %9098 = vmatprep.mubr.msk.f32.mxu1 %vm9800_vm0, %v9799_v0 }
 0x6a6   :  { %v3607_v50 = vmax.f32 %v3507_v21, 0.0  ;;  %9172 = vmatprep.subr.bf16.mxu1 %v9799_v0 }
 0x6a7   :  { %v9044_v24 = vpop.f32.mrf.mxu0 }
 0x6a8   :  { %9099 = vmatmul.mubr.msk.f32.gmra.mxu1 %vm622_vm1, %v3607_v50 }
 0x6a9   :  { %v3512_v31 = vpop.f32.mrf.mxu0  ;;  %9101 = vmatprep.mubr.msk.f32.mxu1 %vm9800_vm0, %v9799_v0  ;;  %9173 = vmatpush3.bf16.msra.mxu1 %v11535_v52 }
 0x6aa   :  { %v3608_v8 = vmax.f32 %v3512_v31, 0.0  ;;  %9174 = vmatprep.subr.bf16.mxu1 %v9799_v0 }
 0x6ab   :  { %v9047_v44 = vpop.f32.mrf.mxu0 }
 0x6ac   :  { %9102 = vmatmul.mubr.msk.f32.gmra.mxu1 %vm622_vm1, %v3608_v8 }
 0x6ad   :  { %v3515_v51 = vpop.f32.mrf.mxu0  ;;  %9104 = vmatprep.mubr.msk.f32.mxu1 %vm9800_vm0, %v9799_v0  ;;  %9175 = vmatpush3.bf16.msra.mxu1 %v11545_v59 }
 0x6ae   :  { %v3609_v60 = vmax.f32 %v3515_v51, 0.0  ;;  %9176 = vmatprep.subr.bf16.mxu1 %v9799_v0 }
 0x6af   :  { %v9048_v22 = vpop.f32.mrf.mxu0 }
 0x6b0   :  { %9105 = vmatmul.mubr.msk.f32.gmra.mxu1 %vm622_vm1, %v3609_v60 }
 0x6b1   :  { %v3520_v18 = vpop.f32.mrf.mxu0  ;;  %9107 = vmatprep.mubr.msk.f32.mxu1 %vm9800_vm0, %v9799_v0  ;;  %9177 = vmatpush3.bf16.msra.mxu1 %v11555_v61 }
 0x6b2   :  { %v3610_v5 = vmax.f32 %v3520_v18, 0.0  ;;  %9178 = vmatprep.subr.bf16.mxu1 %v9799_v0 }
 0x6b3   :  { %v9051_v13 = vpop.f32.mrf.mxu0 }
 0x6b4   :  { %9108 = vmatmul.mubr.msk.f32.gmra.mxu1 %vm622_vm1, %v3610_v5 }
 0x6b5   :  { %v3523_v4 = vpop.f32.mrf.mxu0  ;;  %9110 = vmatprep.mubr.msk.f32.mxu1 %vm9800_vm0, %v9799_v0  ;;  %9179 = vmatpush3.bf16.msra.mxu1 %v11565_v29 }
 0x6b6   :  { %v3611_v57 = vmax.f32 %v3523_v4, 0.0  ;;  %9180 = vmatprep.subr.bf16.mxu1 %v9799_v0 }
 0x6b7   :  { %v9052_v37 = vpop.f32.mrf.mxu0 }
 0x6b8   :  { %9111 = vmatmul.mubr.msk.f32.gmra.mxu1 %vm622_vm1, %v3611_v57 }
 0x6b9   :  { %v3528_v12 = vpop.f32.mrf.mxu0  ;;  %9113 = vmatprep.mubr.msk.f32.mxu1 %vm9800_vm0, %v9799_v0  ;;  %9181 = vmatpush3.bf16.msra.mxu1 %v11575_v28 }
 0x6ba   :  { %v3612_v43 = vmax.f32 %v3528_v12, 0.0  ;;  %9182 = vmatprep.subr.bf16.mxu1 %v9799_v0  ;;  %v4185_v12 = vld [vmem:[%s12384_s2 + $0x1c] sm:$0xf] }
 0x6bb   :  { %v9055_v56 = vpop.f32.mrf.mxu0 }
 0x6bc   :  { %9114 = vmatmul.mubr.msk.f32.gmra.mxu1 %vm622_vm1, %v3612_v43  ;;  %v4186_v56 = vunpack.c.l.bf16 %v4185_v12 }
 0x6bd   :  { %v3531_v17 = vpop.f32.mrf.mxu0  ;;  %9116 = vmatprep.mubr.msk.f32.mxu1 %vm9800_vm0, %v9799_v0  ;;  %9183 = vmatpush3.bf16.msra.mxu1 %v11585_v49 }
 0x6be   :  { %v3613_v2 = vmax.f32 %v3531_v17, 0.0  ;;  %9184 = vmatprep.subr.bf16.mxu1 %v9799_v0  ;;  %9239 = vmatpush3.msra.mxu0 %v4186_v56  ;;  %v9750_v56 = vld [vmem:[%s12383_s0 + $0x2c4] sm:$0xff]  }
 0x6bf   :  { %v9056_v10 = vpop.f32.mrf.mxu0  ;;  %9315 = vmatprep.subr.bf16.mxu0 %v9799_v0 }
 0x6c0   :  { %9117 = vmatmul.mubr.msk.f32.gmra.mxu1 %vm622_vm1, %v3613_v2 }
 0x6c1   :  { %v3536_v23 = vpop.f32.mrf.mxu0  ;;  %9119 = vmatprep.mubr.msk.f32.mxu1 %vm9800_vm0, %v9799_v0  ;;  %9185 = vmatpush3.bf16.msra.mxu1 %v11595_v35 }
 0x6c2   :  { %v3614_v55 = vmax.f32 %v3536_v23, 0.0  ;;  %9383 = vmatprep.subr.mxu1 %v9799_v0 }
 0x6c3   :  { %v9059_v15 = vpop.f32.mrf.mxu0 }
 0x6c4   :  { %9120 = vmatmul.mubr.msk.f32.gmra.mxu1 %vm622_vm1, %v3614_v55 }
 0x6c5   :  { %v3539_v58 = vpop.f32.mrf.mxu0  ;;  %9122 = vmatprep.mubr.msk.f32.mxu1 %vm9800_vm0, %v9799_v0 }
 0x6c6   :  { %v3615_v9 = vmax.f32 %v3539_v58, 0.0 }
 0x6c7   :  { %v9060_v41 = vpop.f32.mrf.mxu0 }
 0x6c8   :  { %9123 = vmatmul.mubr.msk.f32.gmra.mxu1 %vm622_vm1, %v3615_v9 }
 0x6c9   :  { %v3544_v26 = vpop.f32.mrf.mxu0  ;;  %9125 = vmatprep.mubr.msk.f32.mxu1 %vm9800_vm0, %v9799_v0 }
 0x6ca   :  { %v3616_v27 = vmax.f32 %v3544_v26, 0.0 }
 0x6cb   :  { %v9063_v38 = vpop.f32.mrf.mxu0 }
 0x6cc   :  { %9126 = vmatmul.mubr.msk.f32.gmra.mxu1 %vm622_vm1, %v3616_v27 }
 0x6cd   :  { %v3547_v21 = vpop.f32.mrf.mxu0  ;;  %9128 = vmatprep.mubr.msk.f32.mxu1 %vm9800_vm0, %v9799_v0 }
 0x6ce   :  { %v3617_v50 = vmax.f32 %v3547_v21, 0.0 }
 0x6cf   :  { %v9064_v24 = vpop.f32.mrf.mxu0 }
 0x6d0   :  { %9129 = vmatmul.mubr.msk.f32.gmra.mxu1 %vm622_vm1, %v3617_v50 }
 0x6d1   :  { %v3552_v31 = vpop.f32.mrf.mxu0  ;;  %9131 = vmatprep.mubr.msk.f32.mxu1 %vm9800_vm0, %v9799_v0 }
 0x6d2   :  { %v3618_v8 = vmax.f32 %v3552_v31, 0.0 }
 0x6d3   :  { %v9067_v44 = vpop.f32.mrf.mxu0 }
 0x6d4   :  { %9132 = vmatmul.mubr.msk.f32.gmra.mxu1 %vm622_vm1, %v3618_v8 }
 0x6d5   :  { %v3555_v51 = vpop.f32.mrf.mxu0  ;;  %9134 = vmatprep.mubr.msk.f32.mxu1 %vm9800_vm0, %v9799_v0 }
 0x6d6   :  { %v3619_v60 = vmax.f32 %v3555_v51, 0.0 }
 0x6d7   :  { %v9068_v22 = vpop.f32.mrf.mxu0 }
 0x6d8   :  { %9135 = vmatmul.mubr.msk.f32.gmra.mxu1 %vm622_vm1, %v3619_v60 }
 0x6d9   :  { %v3560_v18 = vpop.f32.mrf.mxu0  ;;  %9137 = vmatprep.mubr.msk.f32.mxu1 %vm9800_vm0, %v9799_v0 }
 0x6da   :  { %v3620_v5 = vmax.f32 %v3560_v18, 0.0 }
 0x6db   :  { %v9071_v13 = vpop.f32.mrf.mxu0 }
 0x6dc   :  { %9138 = vmatmul.mubr.msk.f32.gmra.mxu1 %vm622_vm1, %v3620_v5 }
 0x6dd   :  { %v3563_v4 = vpop.f32.mrf.mxu0  ;;  %9140 = vmatprep.mubr.msk.f32.mxu1 %vm9800_vm0, %v9799_v0 }
 0x6de   :  { %v3621_v57 = vmax.f32 %v3563_v4, 0.0 }
 0x6df   :  { %v9072_v37 = vpop.f32.mrf.mxu0 }
 0x6e0   :  { %9141 = vmatmul.mubr.msk.f32.gmra.mxu1 %vm622_vm1, %v3621_v57  ;;  %v9749_v37 = vld [vmem:[%s12383_s0 + $0x2bc] sm:$0xff]  }
 0x6e1   :  { %v3568_v43 = vpop.f32.mrf.mxu0  ;;  %9143 = vmatprep.mubr.msk.f32.mxu1 %vm9800_vm0, %v9799_v0 }
 0x6e2   :  { %v3622_v17 = vmax.f32 %v3568_v43, 0.0 }
 0x6e3   :  { %v9075_v2 = vpop.f32.mrf.mxu0 }
 0x6e4   :  { %9144 = vmatmul.mubr.msk.f32.gmra.mxu1 %vm622_vm1, %v3622_v17  ;;  %v9751_v17 = vld [vmem:[%s12383_s0 + $0x2cc] sm:$0xff]   ;;  %v9752_v2 = vld [vmem:[%s12383_s0 + $0x2d4] sm:$0xff]  }
 0x6e5   :  { %v3571_v10 = vpop.f32.mrf.mxu0  ;;  %9146 = vmatprep.mubr.msk.f32.mxu1 %vm9800_vm0, %v9799_v0 }
 0x6e6   :  { %v3623_v23 = vmax.f32 %v3571_v10, 0.0  ;;  %v9753_v10 = vld [vmem:[%s12383_s0 + $0x2dc] sm:$0xff]  }
 0x6e7   :  { %v9076_v55 = vpop.f32.mrf.mxu0 }
 0x6e8   :  { %9147 = vmatmul.mubr.msk.f32.gmra.mxu1 %vm622_vm1, %v3623_v23  ;;  %v9754_v23 = vld [vmem:[%s12383_s0 + $0x2e4] sm:$0xff]   ;;  %v9755_v55 = vld [vmem:[%s12383_s0 + $0x2ec] sm:$0xff]  }
 0x6e9   :  { %v3576_v15 = vpop.f32.mrf.mxu0  ;;  %9149 = vmatprep.mubr.msk.f32.mxu1 %vm9800_vm0, %v9799_v0 }
 0x6ea   :  { %v3624_v58 = vmax.f32 %v3576_v15, 0.0  ;;  %v9756_v15 = vld [vmem:[%s12383_s0 + $0x2f4] sm:$0xff]  }
 0x6eb   :  { %v9079_v9 = vpop.f32.mrf.mxu0 }
 0x6ec   :  { %9150 = vmatmul.mubr.msk.f32.gmra.mxu1 %vm622_vm1, %v3624_v58  ;;  %v9757_v58 = vld [vmem:[%s12383_s0 + $0x2fc] sm:$0xff]   ;;  %v9758_v9 = vld [vmem:[%s12383_s0 + $0x304] sm:$0xff]  }
 0x6ed   :  { %v3579_v41 = vpop.f32.mrf.mxu0  ;;  %9152 = vmatprep.mubr.msk.f32.mxu1 %vm9800_vm0, %v9799_v0 }
 0x6ee   :  { %v3625_v26 = vmax.f32 %v3579_v41, 0.0  ;;  %v9759_v41 = vld [vmem:[%s12383_s0 + $0x30c] sm:$0xff]  }
 0x6ef   :  { %v9080_v27 = vpop.f32.mrf.mxu0 }
 0x6f0   :  { %9153 = vmatmul.mubr.msk.f32.gmra.mxu1 %vm622_vm1, %v3625_v26  ;;  %v9760_v26 = vld [vmem:[%s12383_s0 + $0x314] sm:$0xff]  }
 0x6f1   :  { %v3584_v38 = vpop.f32.mrf.mxu0  ;;  %9155 = vmatprep.mubr.msk.f32.mxu1 %vm9800_vm0, %v9799_v0 }
 0x6f2   :  { %v3626_v21 = vmax.f32 %v3584_v38, 0.0  ;;  %v9761_v38 = vld [vmem:[%s12383_s0 + $0x31c] ss:$0 sps:$4 sm:$0xff]  }
 0x6f3   :  { %v9083_v50 = vpop.f32.mrf.mxu0 }
 0x6f4   :  { %9156 = vmatmul.mubr.msk.f32.gmra.mxu1 %vm622_vm1, %v3626_v21 }
 0x6f5   :  { %v3587_v24 = vpop.f32.mrf.mxu0  ;;  %9158 = vmatprep.mubr.msk.f32.mxu1 %vm9800_vm0, %v9799_v0 }
 0x6f6   :  { %v3627_v31 = vmax.f32 %v3587_v24, 0.0 }
 0x6f7   :  { %v9084_v8 = vpop.f32.mrf.mxu0 }
 0x6f8   :  { %9159 = vmatmul.mubr.msk.f32.gmra.mxu1 %vm622_vm1, %v3627_v31 }
 0x6f9   :  { %v3592_v44 = vpop.f32.mrf.mxu0  ;;  %9161 = vmatprep.mubr.msk.f32.mxu1 %vm9800_vm0, %v9799_v0 }
 0x6fa   :  { %v3628_v51 = vmax.f32 %v3592_v44, 0.0 }
 0x6fb   :  { %v9087_v60 = vpop.f32.mrf.mxu0 }
 0x6fc   :  { %9162 = vmatmul.mubr.msk.f32.gmra.mxu1 %vm622_vm1, %v3628_v51 }
 0x6fd   :  { %v3595_v22 = vpop.f32.mrf.mxu0  ;;  %9164 = vmatprep.mubr.msk.f32.mxu1 %vm9800_vm0, %v9799_v0 }
 0x6fe   :  { %v3629_v18 = vmax.f32 %v3595_v22, 0.0 }
 0x6ff   :  { %v9088_v5 = vpop.f32.mrf.mxu0 }
 0x700   :  { %9165 = vmatmul.mubr.msk.f32.gmra.mxu1 %vm622_vm1, %v3629_v18 }
 0x701   :  { %v3600_v13 = vpop.f32.mrf.mxu0  ;;  %9167 = vmatprep.mubr.msk.f32.mxu1 %vm9800_vm0, %v9799_v0 }
 0x702   :  { %v3630_v4 = vmax.f32 %v3600_v13, 0.0 }
 0x703   :  { %v9091_v57 = vpop.f32.mrf.mxu0 }
 0x704   :  { %9168 = vmatmul.mubr.msk.f32.gmra.mxu1 %vm622_vm1, %v3630_v4 }
 0x705   :  { %v3603_v12 = vpop.f32.mrf.mxu0  ;;  %9186 = vmatprep.mubr.msk.bf16.mxu1 %vm9800_vm0, %v9799_v0 }
 0x707   :  { %v9092_v43 = vpop.f32.mrf.mxu0 }
 0x708   :  { %9187 = vmatmul.mubr.bf16.vlgmr.msra.gmra.mxu1 %v9749_v37 }
 0x709   :  { %9190 = vmatprep.mubr.msk.bf16.mxu1 %vm9800_vm0, %v9799_v0 }
 0x710   :  { %9191 = vmatmul.mubr.bf16.gmra.mxu1 %v9750_v56 }
 0x711   :  { %9194 = vmatprep.mubr.msk.bf16.mxu1 %vm9800_vm0, %v9799_v0 }
 0x718   :  { %9195 = vmatmul.mubr.bf16.gmra.mxu1 %v9751_v17 }
 0x719   :  { %9198 = vmatprep.mubr.msk.bf16.mxu1 %vm9800_vm0, %v9799_v0 }
 0x720   :  { %9199 = vmatmul.mubr.bf16.gmra.mxu1 %v9752_v2 }
 0x721   :  { %9202 = vmatprep.mubr.msk.bf16.mxu1 %vm9800_vm0, %v9799_v0 }
 0x728   :  { %9203 = vmatmul.mubr.bf16.gmra.mxu1 %v9753_v10 }
 0x729   :  { %9206 = vmatprep.mubr.msk.bf16.mxu1 %vm9800_vm0, %v9799_v0 }
 0x730   :  { %9207 = vmatmul.mubr.bf16.gmra.mxu1 %v9754_v23 }
 0x731   :  { %9210 = vmatprep.mubr.msk.bf16.mxu1 %vm9800_vm0, %v9799_v0 }
 0x738   :  { %9211 = vmatmul.mubr.bf16.gmra.mxu1 %v9755_v55 }
 0x739   :  { %9214 = vmatprep.mubr.msk.bf16.mxu1 %vm9800_vm0, %v9799_v0 }
 0x740   :  { %9215 = vmatmul.mubr.bf16.gmra.mxu1 %v9756_v15 }
 0x741   :  { %9218 = vmatprep.mubr.msk.bf16.mxu1 %vm9800_vm0, %v9799_v0 }
 0x748   :  { %9219 = vmatmul.mubr.bf16.gmra.mxu1 %v9757_v58 }
 0x749   :  { %9222 = vmatprep.mubr.msk.bf16.mxu1 %vm9800_vm0, %v9799_v0 }
 0x750   :  { %9223 = vmatmul.mubr.bf16.gmra.mxu1 %v9758_v9 }
 0x751   :  { %9226 = vmatprep.mubr.msk.bf16.mxu1 %vm9800_vm0, %v9799_v0 }
 0x758   :  { %9227 = vmatmul.mubr.bf16.gmra.mxu1 %v9759_v41 }
 0x759   :  { %9230 = vmatprep.mubr.msk.bf16.mxu1 %vm9800_vm0, %v9799_v0 }
 0x760   :  { %9231 = vmatmul.mubr.bf16.gmra.mxu1 %v9760_v26 }
 0x761   :  { %9234 = vmatprep.mubr.msk.bf16.mxu1 %vm9800_vm0, %v9799_v0 }
 0x764   :  { %v3774_v27 = vpop.f32.mrf.mxu1 }
 0x765   :  { %v11718_v21 = vadd.f32 %v3774_v27, %v11443_v6 }
 0x766   :  { %v9097_v50 = vpop.f32.mrf.mxu1 }
 0x768   :  { %v3779_v24 = vpop.f32.mrf.mxu1  ;;  %9235 = vmatmul.mubr.bf16.gmra.mxu1 %v9761_v38 }
 0x769   :  { %v11721_v31 = vadd.f32 %v3779_v24, %v11446_v32  ;;  %9385 = vmatprep.mubr.msk.f32.mxu1 %vm9800_vm0, %v9799_v0 }
 0x76a   :  { %v9100_v8 = vpop.f32.mrf.mxu1 }
 0x76c   :  { %v3784_v44 = vpop.f32.mrf.mxu1 }
 0x76d   :  { %v11726_v51 = vadd.f32 %v3784_v44, %v11451_v53 }
 0x76e   :  { %v9103_v60 = vpop.f32.mrf.mxu1 }
 0x770   :  { %v3789_v22 = vpop.f32.mrf.mxu1 }
 0x771   :  { %v11729_v18 = vadd.f32 %v3789_v22, %v11454_v47 }
 0x772   :  { %v9106_v6 = vpop.f32.mrf.mxu1 }
 0x774   :  { %v3794_v5 = vpop.f32.mrf.mxu1 }
 0x775   :  { %v11732_v13 = vadd.f32 %v3794_v5, %v11457_v63 }
 0x776   :  { %v9109_v32 = vpop.f32.mrf.mxu1 }
 0x778   :  { %v3799_v4 = vpop.f32.mrf.mxu1 }
 0x779   :  { %v11735_v57 = vadd.f32 %v3799_v4, %v11460_v14 }
 0x77a   :  { %v9112_v37 = vpop.f32.mrf.mxu1 }
 0x77c   :  { %v3804_v12 = vpop.f32.mrf.mxu1 }
 0x77d   :  { %v11738_v53 = vadd.f32 %v3804_v12, %v11463_v11 }
 0x77e   :  { %v9115_v43 = vpop.f32.mrf.mxu1 }
 0x780   :  { %v3809_v56 = vpop.f32.mrf.mxu1 }
 0x781   :  { %v11741_v47 = vadd.f32 %v3809_v56, %v11466_v36 }
 0x782   :  { %v9118_v17 = vpop.f32.mrf.mxu1 }
 0x784   :  { %v3814_v2 = vpop.f32.mrf.mxu1 }
 0x785   :  { %v11744_v63 = vadd.f32 %v3814_v2, %v11469_v45 }
 0x786   :  { %v9121_v10 = vpop.f32.mrf.mxu1 }
 0x788   :  { %v3819_v23 = vpop.f32.mrf.mxu1 }
 0x789   :  { %v11747_v14 = vadd.f32 %v3819_v23, %v11472_v48 }
 0x78a   :  { %v9124_v55 = vpop.f32.mrf.mxu1 }
 0x78c   :  { %v3824_v15 = vpop.f32.mrf.mxu1 }
 0x78d   :  { %v11750_v11 = vadd.f32 %v3824_v15, %v11475_v62 }
 0x78e   :  { %v9127_v58 = vpop.f32.mrf.mxu1 }
 0x790   :  { %v3829_v9 = vpop.f32.mrf.mxu1 }
 0x791   :  { %v11753_v36 = vadd.f32 %v3829_v9, %v11478_v25 }
 0x792   :  { %v9130_v41 = vpop.f32.mrf.mxu1 }
 0x794   :  { %v3834_v26 = vpop.f32.mrf.mxu1 }
 0x795   :  { %v11756_v45 = vadd.f32 %v3834_v26, %v11481_v7 }
 0x796   :  { %v9133_v27 = vpop.f32.mrf.mxu1 }
 0x798   :  { %v3839_v38 = vpop.f32.mrf.mxu1 }
 0x799   :  { %v11759_v48 = vadd.f32 %v3839_v38, %v11484_v20 }
 0x79a   :  { %v9136_v50 = vpop.f32.mrf.mxu1 }
 0x79c   :  { %v3844_v24 = vpop.f32.mrf.mxu1 }
 0x79d   :  { %v11762_v62 = vadd.f32 %v3844_v24, %v11487_v1 }
 0x79e   :  { %v9139_v8 = vpop.f32.mrf.mxu1 }
 0x7a0   :  { %v3849_v44 = vpop.f32.mrf.mxu1 }
 0x7a1   :  { %v11765_v25 = vadd.f32 %v3849_v44, %v11490_v34 }
 0x7a2   :  { %v9142_v60 = vpop.f32.mrf.mxu1 }
 0x7a4   :  { %v3854_v22 = vpop.f32.mrf.mxu1 }
 0x7a5   :  { %v11768_v7 = vadd.f32 %v3854_v22, %v11493_v33 }
 0x7a6   :  { %v9145_v6 = vpop.f32.mrf.mxu1 }
 0x7a8   :  { %v3859_v5 = vpop.f32.mrf.mxu1 }
 0x7a9   :  { %v11771_v20 = vadd.f32 %v3859_v5, %v11496_v30 }
 0x7aa   :  { %v9148_v32 = vpop.f32.mrf.mxu1 }
 0x7ac   :  { %v3864_v4 = vpop.f32.mrf.mxu1 }
 0x7ad   :  { %v11774_v1 = vadd.f32 %v3864_v4, %v11499_v19 }
 0x7ae   :  { %v9151_v37 = vpop.f32.mrf.mxu1 }
 0x7b0   :  { %v3869_v12 = vpop.f32.mrf.mxu1 }
 0x7b1   :  { %v11777_v34 = vadd.f32 %v3869_v12, %v11502_v54 }
 0x7b2   :  { %v9154_v43 = vpop.f32.mrf.mxu1 }
 0x7b4   :  { %v3874_v56 = vpop.f32.mrf.mxu1 }
 0x7b5   :  { %v11780_v33 = vadd.f32 %v3874_v56, %v11505_v3 }
 0x7b6   :  { %v9157_v17 = vpop.f32.mrf.mxu1 }
 0x7b8   :  { %v3879_v2 = vpop.f32.mrf.mxu1 }
 0x7b9   :  { %v11783_v30 = vadd.f32 %v3879_v2, %v11508_v16 }
 0x7ba   :  { %v9160_v10 = vpop.f32.mrf.mxu1 }
 0x7bc   :  { %v3884_v23 = vpop.f32.mrf.mxu1 }
 0x7bd   :  { %v11786_v19 = vadd.f32 %v3884_v23, %v11511_v39 }
 0x7be   :  { %v9163_v55 = vpop.f32.mrf.mxu1 }
 0x7c0   :  { %v3889_v15 = vpop.f32.mrf.mxu1 }
 0x7c1   :  { %v11789_v54 = vadd.f32 %v3889_v15, %v11514_v40 }
 0x7c2   :  { %v9166_v58 = vpop.f32.mrf.mxu1 }
 0x7c4   :  { %v3894_v9 = vpop.f32.mrf.mxu1 }
 0x7c5   :  { %v11792_v3 = vadd.f32 %v3894_v9, %v11517_v42 }
 0x7c6   :  { %v9169_v41 = vpop.f32.mrf.mxu1 }
 0x7c8   :  { %v4058_v26 = vpop.f32.mrf.mxu1 }
 0x7c9   :  { %v4160_v27 = vmax.f32 %v4058_v26, 0.0 }
 0x7ca   :  { %v9188_v16 = vpop.f32.mrf.mxu1 }
 0x7cb   :  { %9241 = vmatmul.mubr.msk.f32.vlgmr.msra.gmra.mxu0 %vm622_vm1, %v4160_v27 }
 0x7cc   :  { %9316 = vmatpush3.bf16.msra.mxu0 %v11523_v46  ;;  %v4061_v39 = vpop.f32.mrf.mxu1  ;;  %9243 = vmatprep.mubr.msk.f32.mxu0 %vm9800_vm0, %v9799_v0 }
 0x7cd   :  { %v4161_v38 = vmax.f32 %v4061_v39, 0.0  ;;  %9317 = vmatprep.subr.bf16.mxu0 %v9799_v0 }
 0x7ce   :  { %v9189_v40 = vpop.f32.mrf.mxu1 }
 0x7cf   :  { %9244 = vmatmul.mubr.msk.f32.gmra.mxu0 %vm622_vm1, %v4161_v38 }
 0x7d0   :  { %v4066_v42 = vpop.f32.mrf.mxu1  ;;  %9246 = vmatprep.mubr.msk.f32.mxu0 %vm9800_vm0, %v9799_v0  ;;  %9318 = vmatpush3.bf16.msra.mxu0 %v11535_v52 }
 0x7d1   :  { %v4162_v50 = vmax.f32 %v4066_v42, 0.0  ;;  %9319 = vmatprep.subr.bf16.mxu0 %v9799_v0 }
 0x7d2   :  { %v9192_v46 = vpop.f32.mrf.mxu1 }
 0x7d3   :  { %9247 = vmatmul.mubr.msk.f32.gmra.mxu0 %vm622_vm1, %v4162_v50 }
 0x7d4   :  { %v4069_v24 = vpop.f32.mrf.mxu1  ;;  %9249 = vmatprep.mubr.msk.f32.mxu0 %vm9800_vm0, %v9799_v0  ;;  %9320 = vmatpush3.bf16.msra.mxu0 %v11545_v59 }
 0x7d5   :  { %v4163_v8 = vmax.f32 %v4069_v24, 0.0  ;;  %9321 = vmatprep.subr.bf16.mxu0 %v9799_v0 }
 0x7d6   :  { %v9193_v44 = vpop.f32.mrf.mxu1 }
 0x7d7   :  { %9250 = vmatmul.mubr.msk.f32.gmra.mxu0 %vm622_vm1, %v4163_v8  ;;  %v4739_v8 = vld [vmem:[%s12384_s2 + $0x20] sm:$0xf] }
 0x7d8   :  { %v4074_v60 = vpop.f32.mrf.mxu1  ;;  %9252 = vmatprep.mubr.msk.f32.mxu0 %vm9800_vm0, %v9799_v0  ;;  %9322 = vmatpush3.bf16.msra.mxu0 %v11555_v61 }
 0x7d9   :  { %v4164_v52 = vmax.f32 %v4074_v60, 0.0  ;;  %9323 = vmatprep.subr.bf16.mxu0 %v9799_v0  ;;  %v4740_v60 = vunpack.c.l.bf16 %v4739_v8  ;;  %v9769_v8 = vld [vmem:[%s12383_s0 + $0x358] sm:$0xff]  }
 0x7da   :  { %v9196_v22 = vpop.f32.mrf.mxu1 }
 0x7db   :  { %9253 = vmatmul.mubr.msk.f32.gmra.mxu0 %vm622_vm1, %v4164_v52  ;;  %9384 = vmatpush3.msra.mxu1 %v4740_v60  ;;  %v9771_v60 = vld [vmem:[%s12383_s0 + $0x368] sm:$0xff]  }
 0x7dc   :  { %v4077_v6 = vpop.f32.mrf.mxu1  ;;  %9255 = vmatprep.mubr.msk.f32.mxu0 %vm9800_vm0, %v9799_v0  ;;  %9324 = vmatpush3.bf16.msra.mxu0 %v11565_v29 }
 0x7dd   :  { %v4165_v59 = vmax.f32 %v4077_v6, 0.0  ;;  %9325 = vmatprep.subr.bf16.mxu0 %v9799_v0  ;;  %9460 = vmatprep.subr.mxu1 %v9799_v0 }
 0x7de   :  { %v9197_v5 = vpop.f32.mrf.mxu1 }
 0x7df   :  { %9256 = vmatmul.mubr.msk.f32.gmra.mxu0 %vm622_vm1, %v4165_v59 }
 0x7e0   :  { %v4082_v32 = vpop.f32.mrf.mxu1  ;;  %9258 = vmatprep.mubr.msk.f32.mxu0 %vm9800_vm0, %v9799_v0  ;;  %9326 = vmatpush3.bf16.msra.mxu0 %v11575_v28 }
 0x7e1   :  { %v4166_v61 = vmax.f32 %v4082_v32, 0.0  ;;  %9327 = vmatprep.subr.bf16.mxu0 %v9799_v0 }
 0x7e2   :  { %v9200_v4 = vpop.f32.mrf.mxu1 }
 0x7e3   :  { %9259 = vmatmul.mubr.msk.f32.gmra.mxu0 %vm622_vm1, %v4166_v61 }
 0x7e4   :  { %v4085_v37 = vpop.f32.mrf.mxu1  ;;  %9261 = vmatprep.mubr.msk.f32.mxu0 %vm9800_vm0, %v9799_v0  ;;  %9328 = vmatpush3.bf16.msra.mxu0 %v11585_v49 }
 0x7e5   :  { %v4167_v29 = vmax.f32 %v4085_v37, 0.0  ;;  %9329 = vmatprep.subr.bf16.mxu0 %v9799_v0 }
 0x7e6   :  { %v9201_v12 = vpop.f32.mrf.mxu1 }
 0x7e7   :  { %9262 = vmatmul.mubr.msk.f32.gmra.mxu0 %vm622_vm1, %v4167_v29 }
 0x7e8   :  { %v4090_v43 = vpop.f32.mrf.mxu1  ;;  %9264 = vmatprep.mubr.msk.f32.mxu0 %vm9800_vm0, %v9799_v0  ;;  %9330 = vmatpush3.bf16.msra.mxu0 %v11595_v35 }
 0x7e9   :  { %v4168_v28 = vmax.f32 %v4090_v43, 0.0  ;;  %9467 = vmatprep.subr.mxu0 %v9799_v0 }
 0x7ea   :  { %v9204_v56 = vpop.f32.mrf.mxu1 }
 0x7eb   :  { %9265 = vmatmul.mubr.msk.f32.gmra.mxu0 %vm622_vm1, %v4168_v28 }
 0x7ec   :  { %v4093_v17 = vpop.f32.mrf.mxu1  ;;  %9267 = vmatprep.mubr.msk.f32.mxu0 %vm9800_vm0, %v9799_v0 }
 0x7ed   :  { %v4169_v49 = vmax.f32 %v4093_v17, 0.0 }
 0x7ee   :  { %v9205_v2 = vpop.f32.mrf.mxu1 }
 0x7ef   :  { %9268 = vmatmul.mubr.msk.f32.gmra.mxu0 %vm622_vm1, %v4169_v49 }
 0x7f0   :  { %v4098_v10 = vpop.f32.mrf.mxu1  ;;  %9270 = vmatprep.mubr.msk.f32.mxu0 %vm9800_vm0, %v9799_v0 }
 0x7f1   :  { %v4170_v23 = vmax.f32 %v4098_v10, 0.0 }
 0x7f2   :  { %v9208_v35 = vpop.f32.mrf.mxu1 }
 0x7f3   :  { %9271 = vmatmul.mubr.msk.f32.gmra.mxu0 %vm622_vm1, %v4170_v23 }
 0x7f4   :  { %v4101_v55 = vpop.f32.mrf.mxu1  ;;  %9273 = vmatprep.mubr.msk.f32.mxu0 %vm9800_vm0, %v9799_v0 }
 0x7f5   :  { %v4171_v15 = vmax.f32 %v4101_v55, 0.0 }
 0x7f6   :  { %v9209_v58 = vpop.f32.mrf.mxu1 }
 0x7f7   :  { %9274 = vmatmul.mubr.msk.f32.gmra.mxu0 %vm622_vm1, %v4171_v15 }
 0x7f8   :  { %v4106_v9 = vpop.f32.mrf.mxu1  ;;  %9276 = vmatprep.mubr.msk.f32.mxu0 %vm9800_vm0, %v9799_v0 }
 0x7f9   :  { %v4172_v41 = vmax.f32 %v4106_v9, 0.0 }
 0x7fa   :  { %v9212_v26 = vpop.f32.mrf.mxu1 }
 0x7fb   :  { %9277 = vmatmul.mubr.msk.f32.gmra.mxu0 %vm622_vm1, %v4172_v41 }
 0x7fc   :  { %v4109_v27 = vpop.f32.mrf.mxu1  ;;  %9279 = vmatprep.mubr.msk.f32.mxu0 %vm9800_vm0, %v9799_v0 }
 0x7fd   :  { %v4173_v16 = vmax.f32 %v4109_v27, 0.0  ;;  %v9762_v27 = vld [vmem:[%s12383_s0 + $0x320] sm:$0xff]  }
 0x7fe   :  { %v9213_v39 = vpop.f32.mrf.mxu1 }
 0x7ff   :  { %9280 = vmatmul.mubr.msk.f32.gmra.mxu0 %vm622_vm1, %v4173_v16 }
 0x800   :  { %v4114_v38 = vpop.f32.mrf.mxu1  ;;  %9282 = vmatprep.mubr.msk.f32.mxu0 %vm9800_vm0, %v9799_v0 }
 0x801   :  { %v4174_v40 = vmax.f32 %v4114_v38, 0.0  ;;  %v9763_v38 = vld [vmem:[%s12383_s0 + $0x328] sm:$0xff]  }
 0x802   :  { %v9216_v42 = vpop.f32.mrf.mxu1 }
 0x803   :  { %9283 = vmatmul.mubr.msk.f32.gmra.mxu0 %vm622_vm1, %v4174_v40  ;;  %v9764_v40 = vld [vmem:[%s12383_s0 + $0x330] sm:$0xff]   ;;  %v9765_v42 = vld [vmem:[%s12383_s0 + $0x338] sm:$0xff]  }
 0x804   :  { %v4117_v50 = vpop.f32.mrf.mxu1  ;;  %9285 = vmatprep.mubr.msk.f32.mxu0 %vm9800_vm0, %v9799_v0 }
 0x805   :  { %v4175_v46 = vmax.f32 %v4117_v50, 0.0  ;;  %v9766_v50 = vld [vmem:[%s12383_s0 + $0x340] sm:$0xff]  }
 0x806   :  { %v9217_v24 = vpop.f32.mrf.mxu1 }
 0x807   :  { %9286 = vmatmul.mubr.msk.f32.gmra.mxu0 %vm622_vm1, %v4175_v46  ;;  %v9767_v46 = vld [vmem:[%s12383_s0 + $0x348] sm:$0xff]   ;;  %v9768_v24 = vld [vmem:[%s12383_s0 + $0x350] sm:$0xff]  }
 0x808   :  { %v4122_v44 = vpop.f32.mrf.mxu1  ;;  %9288 = vmatprep.mubr.msk.f32.mxu0 %vm9800_vm0, %v9799_v0 }
 0x809   :  { %v4176_v52 = vmax.f32 %v4122_v44, 0.0  ;;  %v9770_v44 = vld [vmem:[%s12383_s0 + $0x360] sm:$0xff]  }
 0x80a   :  { %v9220_v22 = vpop.f32.mrf.mxu1 }
 0x80b   :  { %9289 = vmatmul.mubr.msk.f32.gmra.mxu0 %vm622_vm1, %v4176_v52  ;;  %v9772_v52 = vld [vmem:[%s12383_s0 + $0x370] sm:$0xff]   ;;  %v9773_v22 = vld [vmem:[%s12383_s0 + $0x378] sm:$0xff]  }
 0x80c   :  { %v4125_v6 = vpop.f32.mrf.mxu1  ;;  %9291 = vmatprep.mubr.msk.f32.mxu0 %vm9800_vm0, %v9799_v0 }
 0x80d   :  { %v4177_v59 = vmax.f32 %v4125_v6, 0.0 }
 0x80e   :  { %v9221_v5 = vpop.f32.mrf.mxu1 }
 0x80f   :  { %9292 = vmatmul.mubr.msk.f32.gmra.mxu0 %vm622_vm1, %v4177_v59  ;;  %v9774_v59 = vld [vmem:[%s12383_s0 + $0x380] ss:$0 sps:$4 sm:$0xff]  }
 0x810   :  { %v4130_v32 = vpop.f32.mrf.mxu1  ;;  %9294 = vmatprep.mubr.msk.f32.mxu0 %vm9800_vm0, %v9799_v0 }
 0x811   :  { %v4178_v61 = vmax.f32 %v4130_v32, 0.0 }
 0x812   :  { %v9224_v4 = vpop.f32.mrf.mxu1 }
 0x813   :  { %9295 = vmatmul.mubr.msk.f32.gmra.mxu0 %vm622_vm1, %v4178_v61 }
 0x814   :  { %v4133_v37 = vpop.f32.mrf.mxu1  ;;  %9297 = vmatprep.mubr.msk.f32.mxu0 %vm9800_vm0, %v9799_v0 }
 0x815   :  { %v4179_v29 = vmax.f32 %v4133_v37, 0.0 }
 0x816   :  { %v9225_v12 = vpop.f32.mrf.mxu1 }
 0x817   :  { %9298 = vmatmul.mubr.msk.f32.gmra.mxu0 %vm622_vm1, %v4179_v29 }
 0x818   :  { %v4138_v43 = vpop.f32.mrf.mxu1  ;;  %9300 = vmatprep.mubr.msk.f32.mxu0 %vm9800_vm0, %v9799_v0 }
 0x819   :  { %v4180_v28 = vmax.f32 %v4138_v43, 0.0 }
 0x81a   :  { %v9228_v56 = vpop.f32.mrf.mxu1 }
 0x81b   :  { %9301 = vmatmul.mubr.msk.f32.gmra.mxu0 %vm622_vm1, %v4180_v28 }
 0x81c   :  { %v4141_v17 = vpop.f32.mrf.mxu1  ;;  %9303 = vmatprep.mubr.msk.f32.mxu0 %vm9800_vm0, %v9799_v0 }
 0x81d   :  { %v4181_v49 = vmax.f32 %v4141_v17, 0.0 }
 0x81e   :  { %v9229_v2 = vpop.f32.mrf.mxu1 }
 0x81f   :  { %9304 = vmatmul.mubr.msk.f32.gmra.mxu0 %vm622_vm1, %v4181_v49 }
 0x820   :  { %v4146_v10 = vpop.f32.mrf.mxu1  ;;  %9306 = vmatprep.mubr.msk.f32.mxu0 %vm9800_vm0, %v9799_v0 }
 0x821   :  { %v4182_v23 = vmax.f32 %v4146_v10, 0.0 }
 0x822   :  { %v9232_v35 = vpop.f32.mrf.mxu1 }
 0x823   :  { %9307 = vmatmul.mubr.msk.f32.gmra.mxu0 %vm622_vm1, %v4182_v23 }
 0x824   :  { %v4149_v55 = vpop.f32.mrf.mxu1  ;;  %9309 = vmatprep.mubr.msk.f32.mxu0 %vm9800_vm0, %v9799_v0 }
 0x825   :  { %v4183_v15 = vmax.f32 %v4149_v55, 0.0 }
 0x826   :  { %v9233_v58 = vpop.f32.mrf.mxu1 }
 0x827   :  { %9310 = vmatmul.mubr.msk.f32.gmra.mxu0 %vm622_vm1, %v4183_v15 }
 0x828   :  { %v4154_v9 = vpop.f32.mrf.mxu1  ;;  %9312 = vmatprep.mubr.msk.f32.mxu0 %vm9800_vm0, %v9799_v0 }
 0x829   :  { %v4184_v41 = vmax.f32 %v4154_v9, 0.0 }
 0x82a   :  { %v9236_v26 = vpop.f32.mrf.mxu1 }
 0x82b   :  { %9313 = vmatmul.mubr.msk.f32.gmra.mxu0 %vm622_vm1, %v4184_v41 }
 0x82c   :  { %v4157_v16 = vpop.f32.mrf.mxu1  ;;  %9331 = vmatprep.mubr.msk.bf16.mxu0 %vm9800_vm0, %v9799_v0 }
 0x82e   :  { %v9237_v39 = vpop.f32.mrf.mxu1 }
 0x82f   :  { %9332 = vmatmul.mubr.bf16.vlgmr.msra.gmra.mxu0 %v9762_v27 }
 0x830   :  { %9335 = vmatprep.mubr.msk.bf16.mxu0 %vm9800_vm0, %v9799_v0 }
 0x837   :  { %9336 = vmatmul.mubr.bf16.gmra.mxu0 %v9763_v38 }
 0x838   :  { %9339 = vmatprep.mubr.msk.bf16.mxu0 %vm9800_vm0, %v9799_v0 }
 0x83f   :  { %9340 = vmatmul.mubr.bf16.gmra.mxu0 %v9764_v40 }
 0x840   :  { %9343 = vmatprep.mubr.msk.bf16.mxu0 %vm9800_vm0, %v9799_v0 }
 0x847   :  { %9344 = vmatmul.mubr.bf16.gmra.mxu0 %v9765_v42 }
 0x848   :  { %9347 = vmatprep.mubr.msk.bf16.mxu0 %vm9800_vm0, %v9799_v0 }
 0x84f   :  { %9348 = vmatmul.mubr.bf16.gmra.mxu0 %v9766_v50 }
 0x850   :  { %9351 = vmatprep.mubr.msk.bf16.mxu0 %vm9800_vm0, %v9799_v0 }
 0x857   :  { %9352 = vmatmul.mubr.bf16.gmra.mxu0 %v9767_v46 }
 0x858   :  { %9355 = vmatprep.mubr.msk.bf16.mxu0 %vm9800_vm0, %v9799_v0 }
 0x85f   :  { %9356 = vmatmul.mubr.bf16.gmra.mxu0 %v9768_v24 }
 0x860   :  { %9359 = vmatprep.mubr.msk.bf16.mxu0 %vm9800_vm0, %v9799_v0 }
 0x867   :  { %9360 = vmatmul.mubr.bf16.gmra.mxu0 %v9769_v8 }
 0x868   :  { %9363 = vmatprep.mubr.msk.bf16.mxu0 %vm9800_vm0, %v9799_v0 }
 0x86f   :  { %9364 = vmatmul.mubr.bf16.gmra.mxu0 %v9770_v44 }
 0x870   :  { %9367 = vmatprep.mubr.msk.bf16.mxu0 %vm9800_vm0, %v9799_v0 }
 0x877   :  { %9368 = vmatmul.mubr.bf16.gmra.mxu0 %v9771_v60 }
 0x878   :  { %9371 = vmatprep.mubr.msk.bf16.mxu0 %vm9800_vm0, %v9799_v0 }
 0x87f   :  { %9372 = vmatmul.mubr.bf16.gmra.mxu0 %v9772_v52 }
 0x880   :  { %9375 = vmatprep.mubr.msk.bf16.mxu0 %vm9800_vm0, %v9799_v0 }
 0x887   :  { %9376 = vmatmul.mubr.bf16.gmra.mxu0 %v9773_v22 }
 0x888   :  { %9379 = vmatprep.mubr.msk.bf16.mxu0 %vm9800_vm0, %v9799_v0 }
 0x88b   :  { %v4328_v6 = vpop.f32.mrf.mxu0 }
 0x88c   :  { %v11953_v5 = vadd.f32 %v4328_v6, %v11718_v21 }
 0x88d   :  { %v9242_v32 = vpop.f32.mrf.mxu0 }
 0x88f   :  { %v4333_v61 = vpop.f32.mrf.mxu0  ;;  %9380 = vmatmul.mubr.bf16.gmra.mxu0 %v9774_v59 }
 0x890   :  { %v11956_v4 = vadd.f32 %v4333_v61, %v11721_v31  ;;  %9471 = vmatprep.mubr.msk.f32.mxu0 %vm9800_vm0, %v9799_v0 }
 0x891   :  { %v9245_v37 = vpop.f32.mrf.mxu0 }
 0x893   :  { %v4338_v29 = vpop.f32.mrf.mxu0 }
 0x894   :  { %v11961_v12 = vadd.f32 %v4338_v29, %v11726_v51 }
 0x895   :  { %v9248_v43 = vpop.f32.mrf.mxu0 }
 0x897   :  { %v4343_v28 = vpop.f32.mrf.mxu0 }
 0x898   :  { %v11964_v56 = vadd.f32 %v4343_v28, %v11729_v18 }
 0x899   :  { %v9251_v21 = vpop.f32.mrf.mxu0 }
 0x89b   :  { %v4348_v17 = vpop.f32.mrf.mxu0 }
 0x89c   :  { %v11967_v49 = vadd.f32 %v4348_v17, %v11732_v13 }
 0x89d   :  { %v9254_v31 = vpop.f32.mrf.mxu0 }
 0x89f   :  { %v4353_v2 = vpop.f32.mrf.mxu0 }
 0x8a0   :  { %v11970_v10 = vadd.f32 %v4353_v2, %v11735_v57 }
 0x8a1   :  { %v9257_v23 = vpop.f32.mrf.mxu0 }
 0x8a3   :  { %v4358_v35 = vpop.f32.mrf.mxu0 }
 0x8a4   :  { %v11973_v51 = vadd.f32 %v4358_v35, %v11738_v53 }
 0x8a5   :  { %v9260_v55 = vpop.f32.mrf.mxu0 }
 0x8a7   :  { %v4363_v15 = vpop.f32.mrf.mxu0 }
 0x8a8   :  { %v11976_v18 = vadd.f32 %v4363_v15, %v11741_v47 }
 0x8a9   :  { %v9263_v58 = vpop.f32.mrf.mxu0 }
 0x8ab   :  { %v4368_v9 = vpop.f32.mrf.mxu0 }
 0x8ac   :  { %v11979_v13 = vadd.f32 %v4368_v9, %v11744_v63 }
 0x8ad   :  { %v9266_v41 = vpop.f32.mrf.mxu0 }
 0x8af   :  { %v4373_v26 = vpop.f32.mrf.mxu0 }
 0x8b0   :  { %v11982_v57 = vadd.f32 %v4373_v26, %v11747_v14 }
 0x8b1   :  { %v9269_v27 = vpop.f32.mrf.mxu0 }
 0x8b3   :  { %v4378_v16 = vpop.f32.mrf.mxu0 }
 0x8b4   :  { %v11985_v53 = vadd.f32 %v4378_v16, %v11750_v11 }
 0x8b5   :  { %v9272_v39 = vpop.f32.mrf.mxu0 }
 0x8b7   :  { %v4383_v38 = vpop.f32.mrf.mxu0 }
 0x8b8   :  { %v11988_v47 = vadd.f32 %v4383_v38, %v11753_v36 }
 0x8b9   :  { %v9275_v40 = vpop.f32.mrf.mxu0 }
 0x8bb   :  { %v4388_v42 = vpop.f32.mrf.mxu0 }
 0x8bc   :  { %v11991_v63 = vadd.f32 %v4388_v42, %v11756_v45 }
 0x8bd   :  { %v9278_v50 = vpop.f32.mrf.mxu0 }
 0x8bf   :  { %v4393_v46 = vpop.f32.mrf.mxu0 }
 0x8c0   :  { %v11994_v14 = vadd.f32 %v4393_v46, %v11759_v48 }
 0x8c1   :  { %v9281_v24 = vpop.f32.mrf.mxu0 }
 0x8c3   :  { %v4398_v8 = vpop.f32.mrf.mxu0 }
 0x8c4   :  { %v11997_v11 = vadd.f32 %v4398_v8, %v11762_v62 }
 0x8c5   :  { %v9284_v44 = vpop.f32.mrf.mxu0 }
 0x8c7   :  { %v4403_v60 = vpop.f32.mrf.mxu0 }
 0x8c8   :  { %v12000_v36 = vadd.f32 %v4403_v60, %v11765_v25  ;;  %v12014_v25 = vld [vmem:[%s12385_s4] sm:$0xff]  }
 0x8c9   :  { %v9287_v52 = vpop.f32.mrf.mxu0 }
 0x8cb   :  { %v4408_v22 = vpop.f32.mrf.mxu0 }
 0x8cc   :  { %v12003_v45 = vadd.f32 %v4408_v22, %v11768_v7  ;;  %v7522_v7 = vunpack.c.h.bf16 %v12014_v25 }
 0x8cd   :  { %v9290_v6 = vpop.f32.mrf.mxu0 }
 0x8ce   :  { %9468 = vmatpush3.msra.mxu0 %v7522_v7 }
 0x8cf   :  { %v4413_v59 = vpop.f32.mrf.mxu0  ;;  %9469 = vmatprep.subr.mxu0 %v9799_v0 }
 0x8d0   :  { %v12006_v48 = vadd.f32 %v4413_v59, %v11771_v20 }
 0x8d1   :  { %v9293_v32 = vpop.f32.mrf.mxu0 }
 0x8d3   :  { %v4418_v61 = vpop.f32.mrf.mxu0 }
 0x8d4   :  { %v12009_v62 = vadd.f32 %v4418_v61, %v11774_v1 }
 0x8d5   :  { %v9296_v37 = vpop.f32.mrf.mxu0 }
 0x8d7   :  { %v4423_v29 = vpop.f32.mrf.mxu0 }
 0x8d8   :  { %v12018_v43 = vadd.f32 %v4423_v29, %v11777_v34 }
 0x8d9   :  { %v9299_v28 = vpop.f32.mrf.mxu0 }
 0x8db   :  { %v4428_v20 = vpop.f32.mrf.mxu0 }
 0x8dc   :  { %v12022_v1 = vadd.f32 %v4428_v20, %v11780_v33 }
 0x8dd   :  { %v9302_v21 = vpop.f32.mrf.mxu0 }
 0x8df   :  { %v4433_v17 = vpop.f32.mrf.mxu0 }
 0x8e0   :  { %v12025_v31 = vadd.f32 %v4433_v17, %v11783_v30  ;;  %v12039_v30 = vld [vmem:[%s12385_s4 + $0x8] sm:$0xff]  }
 0x8e1   :  { %v9305_v2 = vpop.f32.mrf.mxu0 }
 0x8e3   :  { %v4438_v23 = vpop.f32.mrf.mxu0 }
 0x8e4   :  { %v12028_v35 = vadd.f32 %v4438_v23, %v11786_v19  ;;  %v7526_v19 = vunpack.c.h.bf16 %v12039_v30 }
 0x8e5   :  { %v9308_v34 = vpop.f32.mrf.mxu0 }
 0x8e7   :  { %v4443_v55 = vpop.f32.mrf.mxu0 }
 0x8e8   :  { %v12031_v15 = vadd.f32 %v4443_v55, %v11789_v54 }
 0x8e9   :  { %v9311_v58 = vpop.f32.mrf.mxu0 }
 0x8eb   :  { %v4448_v9 = vpop.f32.mrf.mxu0 }
 0x8ec   :  { %v12034_v33 = vadd.f32 %v4448_v9, %v11792_v3 }
 0x8ed   :  { %v9314_v41 = vpop.f32.mrf.mxu0 }
 0x8ef   :  { %v4612_v26 = vpop.f32.mrf.mxu0 }
 0x8f0   :  { %v4714_v27 = vmax.f32 %v4612_v26, 0.0 }
 0x8f1   :  { %v9333_v16 = vpop.f32.mrf.mxu0 }
 0x8f2   :  { %9386 = vmatmul.mubr.msk.f32.vlgmr.msra.gmra.mxu1 %vm622_vm1, %v4714_v27 }
 0x8f3   :  { %v4615_v54 = vpop.f32.mrf.mxu0  ;;  %9388 = vmatprep.mubr.msk.f32.mxu1 %vm9800_vm0, %v9799_v0  ;;  %9461 = vmatpush3.msra.mxu1 %v7526_v19 }
 0x8f4   :  { %v4715_v3 = vmax.f32 %v4615_v54, 0.0  ;;  %9462 = vmatprep.subr.mxu1 %v9799_v0 }
 0x8f5   :  { %v9334_v39 = vpop.f32.mrf.mxu0 }
 0x8f6   :  { %9389 = vmatmul.mubr.msk.f32.gmra.mxu1 %vm622_vm1, %v4715_v3 }
 0x8f7   :  { %v4620_v38 = vpop.f32.mrf.mxu0  ;;  %9391 = vmatprep.mubr.msk.f32.mxu1 %vm9800_vm0, %v9799_v0 }
 0x8f8   :  { %v4716_v40 = vmax.f32 %v4620_v38, 0.0 }
 0x8f9   :  { %v9337_v42 = vpop.f32.mrf.mxu0 }
 0x8fa   :  { %9392 = vmatmul.mubr.msk.f32.gmra.mxu1 %vm622_vm1, %v4716_v40 }
 0x8fb   :  { %v4623_v50 = vpop.f32.mrf.mxu0  ;;  %9394 = vmatprep.mubr.msk.f32.mxu1 %vm9800_vm0, %v9799_v0 }
 0x8fc   :  { %v4717_v46 = vmax.f32 %v4623_v50, 0.0 }
 0x8fd   :  { %v9338_v24 = vpop.f32.mrf.mxu0 }
 0x8fe   :  { %9395 = vmatmul.mubr.msk.f32.gmra.mxu1 %vm622_vm1, %v4717_v46 }
 0x8ff   :  { %v4628_v8 = vpop.f32.mrf.mxu0  ;;  %9397 = vmatprep.mubr.msk.f32.mxu1 %vm9800_vm0, %v9799_v0 }
 0x900   :  { %v4718_v44 = vmax.f32 %v4628_v8, 0.0 }
 0x901   :  { %v9341_v60 = vpop.f32.mrf.mxu0 }
 0x902   :  { %9398 = vmatmul.mubr.msk.f32.gmra.mxu1 %vm622_vm1, %v4718_v44 }
 0x903   :  { %v4631_v52 = vpop.f32.mrf.mxu0  ;;  %9400 = vmatprep.mubr.msk.f32.mxu1 %vm9800_vm0, %v9799_v0 }
 0x904   :  { %v4719_v22 = vmax.f32 %v4631_v52, 0.0 }
 0x905   :  { %v9342_v6 = vpop.f32.mrf.mxu0 }
 0x906   :  { %9401 = vmatmul.mubr.msk.f32.gmra.mxu1 %vm622_vm1, %v4719_v22 }
 0x907   :  { %v4636_v59 = vpop.f32.mrf.mxu0  ;;  %9403 = vmatprep.mubr.msk.f32.mxu1 %vm9800_vm0, %v9799_v0 }
 0x908   :  { %v4720_v32 = vmax.f32 %v4636_v59, 0.0  ;;  %v7521_v59 = vunpack.c.l.bf16 %v12014_v25 }
 0x909   :  { %v9345_v61 = vpop.f32.mrf.mxu0 }
 0x90a   :  { %9404 = vmatmul.mubr.msk.f32.gmra.mxu1 %vm622_vm1, %v4720_v32  ;;  %9470 = vmatpush3.msra.mxu0 %v7521_v59 }
 0x90b   :  { %v4639_v37 = vpop.f32.mrf.mxu0  ;;  %9406 = vmatprep.mubr.msk.f32.mxu1 %vm9800_vm0, %v9799_v0  ;;  %9481 = vmatprep.subr.mxu0 %v9799_v0 }
 0x90c   :  { %v4721_v29 = vmax.f32 %v4639_v37, 0.0 }
 0x90d   :  { %v9346_v7 = vpop.f32.mrf.mxu0 }
 0x90e   :  { %9407 = vmatmul.mubr.msk.f32.gmra.mxu1 %vm622_vm1, %v4721_v29  ;;  %v7525_v29 = vunpack.c.l.bf16 %v12039_v30 }
 0x90f   :  { %v4644_v28 = vpop.f32.mrf.mxu0  ;;  %9409 = vmatprep.mubr.msk.f32.mxu1 %vm9800_vm0, %v9799_v0 }
 0x910   :  { %v4722_v20 = vmax.f32 %v4644_v28, 0.0  ;;  %9463 = vmatpush3.msra.mxu1 %v7525_v29 }
 0x911   :  { %v9349_v21 = vpop.f32.mrf.mxu0  ;;  %9474 = vmatprep.subr.mxu1 %v9799_v0 }
 0x912   :  { %9410 = vmatmul.mubr.msk.f32.gmra.mxu1 %vm622_vm1, %v4722_v20 }
 0x913   :  { %v4647_v17 = vpop.f32.mrf.mxu0  ;;  %9412 = vmatprep.mubr.msk.f32.mxu1 %vm9800_vm0, %v9799_v0 }
 0x914   :  { %v4723_v2 = vmax.f32 %v4647_v17, 0.0 }
 0x915   :  { %v9350_v23 = vpop.f32.mrf.mxu0 }
 0x916   :  { %9413 = vmatmul.mubr.msk.f32.gmra.mxu1 %vm622_vm1, %v4723_v2 }
 0x917   :  { %v4652_v34 = vpop.f32.mrf.mxu0  ;;  %9415 = vmatprep.mubr.msk.f32.mxu1 %vm9800_vm0, %v9799_v0 }
 0x918   :  { %v4724_v55 = vmax.f32 %v4652_v34, 0.0 }
 0x919   :  { %v9353_v58 = vpop.f32.mrf.mxu0 }
 0x91a   :  { %9416 = vmatmul.mubr.msk.f32.gmra.mxu1 %vm622_vm1, %v4724_v55 }
 0x91b   :  { %v4655_v9 = vpop.f32.mrf.mxu0  ;;  %9418 = vmatprep.mubr.msk.f32.mxu1 %vm9800_vm0, %v9799_v0 }
 0x91c   :  { %v4725_v41 = vmax.f32 %v4655_v9, 0.0 }
 0x91d   :  { %v9354_v26 = vpop.f32.mrf.mxu0 }
 0x91e   :  { %9419 = vmatmul.mubr.msk.f32.gmra.mxu1 %vm622_vm1, %v4725_v41 }
 0x91f   :  { %v4660_v19 = vpop.f32.mrf.mxu0  ;;  %9421 = vmatprep.mubr.msk.f32.mxu1 %vm9800_vm0, %v9799_v0 }
 0x920   :  { %v4726_v27 = vmax.f32 %v4660_v19, 0.0 }
 0x921   :  { %v9357_v16 = vpop.f32.mrf.mxu0 }
 0x922   :  { %9422 = vmatmul.mubr.msk.f32.gmra.mxu1 %vm622_vm1, %v4726_v27 }
 0x923   :  { %v4663_v54 = vpop.f32.mrf.mxu0  ;;  %9424 = vmatprep.mubr.msk.f32.mxu1 %vm9800_vm0, %v9799_v0 }
 0x924   :  { %v4727_v3 = vmax.f32 %v4663_v54, 0.0 }
 0x925   :  { %v9358_v39 = vpop.f32.mrf.mxu0 }
 0x926   :  { %9425 = vmatmul.mubr.msk.f32.gmra.mxu1 %vm622_vm1, %v4727_v3 }
 0x927   :  { %v4668_v38 = vpop.f32.mrf.mxu0  ;;  %9427 = vmatprep.mubr.msk.f32.mxu1 %vm9800_vm0, %v9799_v0 }
 0x928   :  { %v4728_v40 = vmax.f32 %v4668_v38, 0.0  ;;  %v12125_v38 = vld [vmem:[%s12386_s3] ss:$0 sm:$0xff] }
 0x929   :  { %v9361_v42 = vpop.f32.mrf.mxu0 }
 0x92a   :  { %9428 = vmatmul.mubr.msk.f32.gmra.mxu1 %vm622_vm1, %v4728_v40  ;;  %v7629_v42 = vld [vmem:[%s12385_s4 + $0x18] sm:$0xff]  }
 0x92b   :  { %v4671_v50 = vpop.f32.mrf.mxu0  ;;  %9430 = vmatprep.mubr.msk.f32.mxu1 %vm9800_vm0, %v9799_v0 }
 0x92c   :  { %v4729_v46 = vmax.f32 %v4671_v50, 0.0 }
 0x92d   :  { %v9362_v24 = vpop.f32.mrf.mxu0 }
 0x92e   :  { %9431 = vmatmul.mubr.msk.f32.gmra.mxu1 %vm622_vm1, %v4729_v46 }
 0x92f   :  { %v4676_v8 = vpop.f32.mrf.mxu0  ;;  %9433 = vmatprep.mubr.msk.f32.mxu1 %vm9800_vm0, %v9799_v0 }
 0x930   :  { %v4730_v44 = vmax.f32 %v4676_v8, 0.0  ;;  %v7534_v8 = vunpack.c.h.bf16 %v7629_v42 }
 0x931   :  { %v9365_v60 = vpop.f32.mrf.mxu0 }
 0x932   :  { %9434 = vmatmul.mubr.msk.f32.gmra.mxu1 %vm622_vm1, %v4730_v44 }
 0x933   :  { %v4679_v52 = vpop.f32.mrf.mxu0  ;;  %9436 = vmatprep.mubr.msk.f32.mxu1 %vm9800_vm0, %v9799_v0 }
 0x934   :  { %v4731_v22 = vmax.f32 %v4679_v52, 0.0  ;;  %v7628_v52 = vld [vmem:[%s12385_s4 + $0x10] sm:$0xff]  }
 0x935   :  { %v9366_v6 = vpop.f32.mrf.mxu0 }
 0x936   :  { %9437 = vmatmul.mubr.msk.f32.gmra.mxu1 %vm622_vm1, %v4731_v22  ;;  %v7533_v6 = vunpack.c.l.bf16 %v7629_v42 }
 0x937   :  { %v4684_v32 = vpop.f32.mrf.mxu0  ;;  %9439 = vmatprep.mubr.msk.f32.mxu1 %vm9800_vm0, %v9799_v0 }
 0x938   :  { %v4732_v61 = vmax.f32 %v4684_v32, 0.0  ;;  %v7530_v32 = vunpack.c.h.bf16 %v7628_v52 }
 0x939   :  { %v9369_v37 = vpop.f32.mrf.mxu0 }
 0x93a   :  { %9440 = vmatmul.mubr.msk.f32.gmra.mxu1 %vm622_vm1, %v4732_v61 }
 0x93b   :  { %v4687_v7 = vpop.f32.mrf.mxu0  ;;  %9442 = vmatprep.mubr.msk.f32.mxu1 %vm9800_vm0, %v9799_v0 }
 0x93c   :  { %v4733_v28 = vmax.f32 %v4687_v7, 0.0  ;;  %v7529_v7 = vunpack.c.l.bf16 %v7628_v52 }
 0x93d   :  { %v9370_v25 = vpop.f32.mrf.mxu0 }
 0x93e   :  { %9443 = vmatmul.mubr.msk.f32.gmra.mxu1 %vm622_vm1, %v4733_v28 }
 0x93f   :  { %v4692_v20 = vpop.f32.mrf.mxu0  ;;  %9445 = vmatprep.mubr.msk.f32.mxu1 %vm9800_vm0, %v9799_v0 }
 0x940   :  { %v4734_v21 = vmax.f32 %v4692_v20, 0.0 }
 0x941   :  { %v9373_v17 = vpop.f32.mrf.mxu0 }
 0x942   :  { %9446 = vmatmul.mubr.msk.f32.gmra.mxu1 %vm622_vm1, %v4734_v21  ;;  %v7631_v17 = vld [vmem:[%s12385_s4 + $0x28] sm:$0xff]  }
 0x943   :  { %v4695_v30 = vpop.f32.mrf.mxu0  ;;  %9448 = vmatprep.mubr.msk.f32.mxu1 %vm9800_vm0, %v9799_v0 }
 0x944   :  { %v4735_v2 = vmax.f32 %v4695_v30, 0.0 }
 0x945   :  { %v9374_v23 = vpop.f32.mrf.mxu0 }
 0x946   :  { %9449 = vmatmul.mubr.msk.f32.gmra.mxu1 %vm622_vm1, %v4735_v2 }
 0x947   :  { %v4700_v34 = vpop.f32.mrf.mxu0  ;;  %9451 = vmatprep.mubr.msk.f32.mxu1 %vm9800_vm0, %v9799_v0 }
 0x948   :  { %v4736_v55 = vmax.f32 %v4700_v34, 0.0 }
 0x949   :  { %v9377_v58 = vpop.f32.mrf.mxu0 }
 0x94a   :  { %9452 = vmatmul.mubr.msk.f32.gmra.mxu1 %vm622_vm1, %v4736_v55 }
 0x94b   :  { %v4703_v9 = vpop.f32.mrf.mxu0  ;;  %9454 = vmatprep.mubr.msk.f32.mxu1 %vm9800_vm0, %v9799_v0 }
 0x94c   :  { %v4737_v41 = vmax.f32 %v4703_v9, 0.0  ;;  %v7632_v9 = vld [vmem:[%s12385_s4 + $0x30] sm:$0xff]  }
 0x94d   :  { %v9378_v26 = vpop.f32.mrf.mxu0 }
 0x94e   :  { %9455 = vmatmul.mubr.msk.f32.gmra.mxu1 %vm622_vm1, %v4737_v41  ;;  %v7541_v26 = vunpack.c.l.bf16 %v7631_v17 }
 0x94f   :  { %v4708_v19 = vpop.f32.mrf.mxu0  ;;  %9457 = vmatprep.mubr.msk.f32.mxu1 %vm9800_vm0, %v9799_v0 }
 0x950   :  { %v4738_v27 = vmax.f32 %v4708_v19, 0.0 }
 0x951   :  { %v9381_v16 = vpop.f32.mrf.mxu0 }
 0x952   :  { %9458 = vmatmul.mubr.msk.f32.gmra.mxu1 %vm622_vm1, %v4738_v27 }
 0x953   :  { %v4711_v54 = vpop.f32.mrf.mxu0  ;;  %9464 = vmatprep.mubr.msk.f32.mxu1 %vm9800_vm0, %v9799_v0 }
 0x955   :  { %v9382_v3 = vpop.f32.mrf.mxu0 }
 0x956   :  { %v7633_v3 = vld [vmem:[%s12385_s4 + $0x38] sm:$0xff]  }
 0x9b2   :  { %v4882_v39 = vpop.f32.mrf.mxu1 }
 0x9b3   :  { %v5006_v40 = vadd.f32 %v4882_v39, %v11953_v5 }
 0x9b4   :  { %v9387_v50 = vpop.f32.mrf.mxu1 }
 0x9b5   :  { %v5038_v46 = vadd.f32 %v12125_v38, %v5006_v40  ;;  %v7545_v40 = vunpack.c.l.bf16 %v7632_v9 }
 0x9b6   :  { %v4887_v24 = vpop.f32.mrf.mxu1 }
 0x9b7   :  { %v5063_v44 = vmax.f32 %v5038_v46, 0.0  ;;  %v5007_v60 = vadd.f32 %v4887_v24, %v11956_v4  ;;  %v7630_v4 = vld [vmem:[%s12385_s4 + $0x20] sm:$0xff]  }
 0x9b8   :  { %v9390_v22 = vpop.f32.mrf.mxu1  ;;  %v7537_v2 = vunpack.c.l.bf16 %v7630_v4 }
 0x9b9   :  { %v5039_v5 = vadd.f32 %v12125_v38, %v5007_v60  ;;  %9472 = vmatmul.mubr.msk.f32.vlgmr.msra.gmra.mxu0 %vm5096_vm2, %v5063_v44  ;;  %v7549_v60 = vunpack.c.l.bf16 %v7633_v3 }
 0x9ba   :  { %v4892_v59 = vpop.f32.mrf.mxu1  ;;  %9482 = vmatpush3.msra.mxu0 %v7534_v8  ;;  %9485 = vmatprep.mubr.msk.f32.mxu0 %vm9800_vm0, %v9799_v0  ;;  %v7634_v8 = vld [vmem:[%s12385_s4 + $0x40] sm:$0xff]  }
 0x9bb   :  { %v5064_v61 = vmax.f32 %v5039_v5, 0.0  ;;  %v5008_v37 = vadd.f32 %v4892_v59, %v11961_v12  ;;  %9483 = vmatprep.subr.mxu0 %v9799_v0  ;;  %v7538_v12 = vunpack.c.h.bf16 %v7630_v4  ;;  %v7635_v59 = vld [vmem:[%s12385_s4 + $0x48] sm:$0xff]  }
 0x9bc   :  { %v9393_v29 = vpop.f32.mrf.mxu1  ;;  %9484 = vmatpush3.msra.mxu0 %v7533_v6 }
 0x9bd   :  { %v5040_v28 = vadd.f32 %v12125_v38, %v5008_v37  ;;  %9465 = vmatmul.mubr.msk.f32.vlgmr.msra.gmra.mxu1 %vm5096_vm2, %v5064_v61  ;;  %9495 = vmatprep.subr.mxu0 %v9799_v0  ;;  %v7553_v61 = vunpack.c.l.bf16 %v7634_v8 }
 0x9be   :  { %v4897_v25 = vpop.f32.mrf.mxu1  ;;  %9475 = vmatpush3.msra.mxu1 %v7530_v32  ;;  %9478 = vmatprep.mubr.msk.f32.mxu1 %vm9800_vm0, %v9799_v0 }
 0x9bf   :  { %v5065_v20 = vmax.f32 %v5040_v28, 0.0  ;;  %v5009_v21 = vadd.f32 %v4897_v25, %v11964_v56  ;;  %9476 = vmatprep.subr.mxu1 %v9799_v0  ;;  %v7542_v56 = vunpack.c.h.bf16 %v7631_v17  ;;  %v7636_v28 = vld [vmem:[%s12385_s4 + $0x50] sm:$0xff]  }
 0x9c0   :  { %v9396_v30 = vpop.f32.mrf.mxu1  ;;  %9477 = vmatpush3.msra.mxu1 %v7529_v7 }
 0x9c1   :  { %v5041_v23 = vadd.f32 %v12125_v38, %v5009_v21  ;;  %9479 = vmatmul.mubr.msk.f32.vlgmr.msra.gmra.mxu1 %vm5096_vm2, %v5065_v20  ;;  %9488 = vmatprep.subr.mxu1 %v9799_v0 }
 0x9c2   :  { %v4902_v34 = vpop.f32.mrf.mxu1  ;;  %9489 = vmatpush3.msra.mxu1 %v7538_v12  ;;  %9492 = vmatprep.mubr.msk.f32.mxu1 %vm9800_vm0, %v9799_v0  ;;  %v7557_v12 = vunpack.c.l.bf16 %v7635_v59 }
 0x9c3   :  { %v5066_v55 = vmax.f32 %v5041_v23, 0.0  ;;  %v5010_v58 = vadd.f32 %v4902_v34, %v11967_v49  ;;  %9490 = vmatprep.subr.mxu1 %v9799_v0  ;;  %v7546_v49 = vunpack.c.h.bf16 %v7632_v9  ;;  %v7561_v34 = vunpack.c.l.bf16 %v7636_v28 }
 0x9c4   :  { %v9399_v41 = vpop.f32.mrf.mxu1  ;;  %9491 = vmatpush3.msra.mxu1 %v7537_v2  ;;  %v7637_v2 = vld [vmem:[%s12385_s4 + $0x58] sm:$0xff]  }
 0x9c5   :  { %v5042_v19 = vadd.f32 %v12125_v38, %v5010_v58  ;;  %9486 = vmatmul.mubr.msk.f32.vlgmr.msra.gmra.mxu0 %vm5096_vm2, %v5066_v55  ;;  %9502 = vmatprep.subr.mxu1 %v9799_v0  ;;  %v7638_v41 = vld [vmem:[%s12385_s4 + $0x60] sm:$0xff]  }
 0x9c6   :  { %v4907_v27 = vpop.f32.mrf.mxu1  ;;  %9496 = vmatpush3.msra.mxu0 %v7542_v56  ;;  %9499 = vmatprep.mubr.msk.f32.mxu0 %vm9800_vm0, %v9799_v0 }
 0x9c7   :  { %v5067_v16 = vmax.f32 %v5042_v19, 0.0  ;;  %v5011_v54 = vadd.f32 %v4907_v27, %v11970_v10  ;;  %9497 = vmatprep.subr.mxu0 %v9799_v0  ;;  %v7550_v10 = vunpack.c.h.bf16 %v7633_v3  ;;  %v7565_v19 = vunpack.c.l.bf16 %v7637_v2  ;;  %v7639_v3 = vld [vmem:[%s12385_s4 + $0x68] sm:$0xff]  }
 0x9c8   :  { %v9402_v39 = vpop.f32.mrf.mxu1  ;;  %9498 = vmatpush3.msra.mxu0 %v7541_v26 }
 0x9c9   :  { %v5043_v42 = vadd.f32 %v12125_v38, %v5011_v54  ;;  %9493 = vmatmul.mubr.msk.f32.vlgmr.msra.gmra.mxu1 %vm5096_vm2, %v5067_v16  ;;  %9509 = vmatprep.subr.mxu0 %v9799_v0 }
 0x9ca   :  { %v4912_v50 = vpop.f32.mrf.mxu1  ;;  %9503 = vmatpush3.msra.mxu1 %v7546_v49  ;;  %9506 = vmatprep.mubr.msk.f32.mxu1 %vm9800_vm0, %v9799_v0 }
 0x9cb   :  { %v5068_v46 = vmax.f32 %v5043_v42, 0.0  ;;  %v5012_v24 = vadd.f32 %v4912_v50, %v11973_v51  ;;  %9504 = vmatprep.subr.mxu1 %v9799_v0  ;;  %v7554_v51 = vunpack.c.h.bf16 %v7634_v8 }
 0x9cc   :  { %v9405_v44 = vpop.f32.mrf.mxu1  ;;  %9505 = vmatpush3.msra.mxu1 %v7545_v40  ;;  %v7569_v40 = vunpack.c.l.bf16 %v7638_v41 }
 0x9cd   :  { %v5044_v52 = vadd.f32 %v12125_v38, %v5012_v24  ;;  %9500 = vmatmul.mubr.msk.f32.vlgmr.msra.gmra.mxu0 %vm5096_vm2, %v5068_v46  ;;  %9516 = vmatprep.subr.mxu1 %v9799_v0  ;;  %v7640_v24 = vld [vmem:[%s12385_s4 + $0x70] sm:$0xff]   ;;  %v7573_v44 = vunpack.c.l.bf16 %v7639_v3 }
 0x9ce   :  { %v4917_v22 = vpop.f32.mrf.mxu1  ;;  %9510 = vmatpush3.msra.mxu0 %v7550_v10  ;;  %9513 = vmatprep.mubr.msk.f32.mxu0 %vm9800_vm0, %v9799_v0 }
 0x9cf   :  { %v5069_v6 = vmax.f32 %v5044_v52, 0.0  ;;  %v5013_v5 = vadd.f32 %v4917_v22, %v11976_v18  ;;  %9511 = vmatprep.subr.mxu0 %v9799_v0  ;;  %v7558_v18 = vunpack.c.h.bf16 %v7635_v59  ;;  %v7577_v59 = vunpack.c.l.bf16 %v7640_v24 }
 0x9d0   :  { %v9408_v32 = vpop.f32.mrf.mxu1  ;;  %9512 = vmatpush3.msra.mxu0 %v7549_v60 }
 0x9d1   :  { %v5045_v37 = vadd.f32 %v12125_v38, %v5013_v5  ;;  %9507 = vmatmul.mubr.msk.f32.vlgmr.msra.gmra.mxu1 %vm5096_vm2, %v5069_v6  ;;  %9523 = vmatprep.subr.mxu0 %v9799_v0  ;;  %v7641_v6 = vld [vmem:[%s12385_s4 + $0x78] sm:$0xff]  }
 0x9d2   :  { %v4922_v4 = vpop.f32.mrf.mxu1  ;;  %9517 = vmatpush3.msra.mxu1 %v7554_v51  ;;  %9520 = vmatprep.mubr.msk.f32.mxu1 %vm9800_vm0, %v9799_v0 }
 0x9d3   :  { %v5070_v29 = vmax.f32 %v5045_v37, 0.0  ;;  %v5014_v7 = vadd.f32 %v4922_v4, %v11979_v13  ;;  %9518 = vmatprep.subr.mxu1 %v9799_v0  ;;  %v7562_v13 = vunpack.c.h.bf16 %v7636_v28 }
 0x9d4   :  { %v9411_v25 = vpop.f32.mrf.mxu1  ;;  %9519 = vmatpush3.msra.mxu1 %v7553_v61 }
 0x9d5   :  { %v5046_v20 = vadd.f32 %v12125_v38, %v5014_v7  ;;  %9514 = vmatmul.mubr.msk.f32.vlgmr.msra.gmra.mxu0 %vm5096_vm2, %v5070_v29  ;;  %9530 = vmatprep.subr.mxu1 %v9799_v0  ;;  %v7581_v7 = vunpack.c.l.bf16 %v7641_v6 }
 0x9d6   :  { %v4927_v21 = vpop.f32.mrf.mxu1  ;;  %9524 = vmatpush3.msra.mxu0 %v7558_v18  ;;  %9527 = vmatprep.mubr.msk.f32.mxu0 %vm9800_vm0, %v9799_v0  ;;  %v7642_v18 = vld [vmem:[%s12385_s4 + $0x80] sm:$0xff]  }
 0x9d7   :  { %v5071_v17 = vmax.f32 %v5046_v20, 0.0  ;;  %v5015_v30 = vadd.f32 %v4927_v21, %v11982_v57  ;;  %9525 = vmatprep.subr.mxu0 %v9799_v0  ;;  %v7566_v57 = vunpack.c.h.bf16 %v7637_v2  ;;  %v7643_v21 = vld [vmem:[%s12385_s4 + $0x88] sm:$0xff]  }
 0x9d8   :  { %v9414_v23 = vpop.f32.mrf.mxu1  ;;  %9526 = vmatpush3.msra.mxu0 %v7557_v12 }
 0x9d9   :  { %v5047_v56 = vadd.f32 %v12125_v38, %v5015_v30  ;;  %9521 = vmatmul.mubr.msk.f32.vlgmr.msra.gmra.mxu1 %vm5096_vm2, %v5071_v17  ;;  %9537 = vmatprep.subr.mxu0 %v9799_v0  ;;  %v7585_v17 = vunpack.c.l.bf16 %v7642_v18 }
 0x9da   :  { %v4932_v55 = vpop.f32.mrf.mxu1  ;;  %9531 = vmatpush3.msra.mxu1 %v7562_v13  ;;  %9534 = vmatprep.mubr.msk.f32.mxu1 %vm9800_vm0, %v9799_v0 }
 0x9db   :  { %v5072_v58 = vmax.f32 %v5047_v56, 0.0  ;;  %v5016_v9 = vadd.f32 %v4932_v55, %v11985_v53  ;;  %9532 = vmatprep.subr.mxu1 %v9799_v0  ;;  %v7570_v53 = vunpack.c.h.bf16 %v7638_v41  ;;  %v7644_v56 = vld [vmem:[%s12385_s4 + $0x90] sm:$0xff]  }
 0x9dc   :  { %v9417_v26 = vpop.f32.mrf.mxu1  ;;  %9533 = vmatpush3.msra.mxu1 %v7561_v34 }
 0x9dd   :  { %v5048_v27 = vadd.f32 %v12125_v38, %v5016_v9  ;;  %9528 = vmatmul.mubr.msk.f32.vlgmr.msra.gmra.mxu0 %vm5096_vm2, %v5072_v58  ;;  %9544 = vmatprep.subr.mxu1 %v9799_v0 }
 0x9de   :  { %v4937_v49 = vpop.f32.mrf.mxu1  ;;  %9538 = vmatpush3.msra.mxu0 %v7566_v57  ;;  %9541 = vmatprep.mubr.msk.f32.mxu0 %vm9800_vm0, %v9799_v0  ;;  %v7589_v57 = vunpack.c.l.bf16 %v7643_v21 }
 0x9df   :  { %v5073_v16 = vmax.f32 %v5048_v27, 0.0  ;;  %v5017_v54 = vadd.f32 %v4937_v49, %v11988_v47  ;;  %9539 = vmatprep.subr.mxu0 %v9799_v0  ;;  %v7574_v47 = vunpack.c.h.bf16 %v7639_v3  ;;  %v7593_v49 = vunpack.c.l.bf16 %v7644_v56 }
 0x9e0   :  { %v9420_v39 = vpop.f32.mrf.mxu1  ;;  %9540 = vmatpush3.msra.mxu0 %v7565_v19  ;;  %v7645_v19 = vld [vmem:[%s12385_s4 + $0x98] sm:$0xff]  }
 0x9e1   :  { %v5049_v42 = vadd.f32 %v12125_v38, %v5017_v54  ;;  %9535 = vmatmul.mubr.msk.f32.vlgmr.msra.gmra.mxu1 %vm5096_vm2, %v5073_v16  ;;  %9551 = vmatprep.subr.mxu0 %v9799_v0  ;;  %v7646_v39 = vld [vmem:[%s12385_s4 + $0xa0] sm:$0xff]  }
 0x9e2   :  { %v4942_v50 = vpop.f32.mrf.mxu1  ;;  %9545 = vmatpush3.msra.mxu1 %v7570_v53  ;;  %9548 = vmatprep.mubr.msk.f32.mxu1 %vm9800_vm0, %v9799_v0 }
 0x9e3   :  { %v5074_v10 = vmax.f32 %v5049_v42, 0.0  ;;  %v5018_v46 = vadd.f32 %v4942_v50, %v11991_v63  ;;  %9546 = vmatprep.subr.mxu1 %v9799_v0  ;;  %v7578_v63 = vunpack.c.h.bf16 %v7640_v24  ;;  %v7597_v42 = vunpack.c.l.bf16 %v7645_v19  ;;  %v7647_v24 = vld [vmem:[%s12385_s4 + $0xa8] sm:$0xff]  }
 0x9e4   :  { %v9423_v8 = vpop.f32.mrf.mxu1  ;;  %9547 = vmatpush3.msra.mxu1 %v7569_v40 }
 0x9e5   :  { %v5050_v60 = vadd.f32 %v12125_v38, %v5018_v46  ;;  %9542 = vmatmul.mubr.msk.f32.vlgmr.msra.gmra.mxu0 %vm5096_vm2, %v5074_v10  ;;  %9558 = vmatprep.subr.mxu1 %v9799_v0 }
 0x9e6   :  { %v4947_v52 = vpop.f32.mrf.mxu1  ;;  %9552 = vmatpush3.msra.mxu0 %v7574_v47  ;;  %9555 = vmatprep.mubr.msk.f32.mxu0 %vm9800_vm0, %v9799_v0 }
 0x9e7   :  { %v5075_v22 = vmax.f32 %v5050_v60, 0.0  ;;  %v5019_v51 = vadd.f32 %v4947_v52, %v11994_v14  ;;  %9553 = vmatprep.subr.mxu0 %v9799_v0  ;;  %v7582_v14 = vunpack.c.h.bf16 %v7641_v6 }
 0x9e8   :  { %v9426_v5 = vpop.f32.mrf.mxu1  ;;  %9554 = vmatpush3.msra.mxu0 %v7573_v44  ;;  %v7601_v44 = vunpack.c.l.bf16 %v7646_v39 }
 0x9e9   :  { %v5051_v32 = vadd.f32 %v12125_v38, %v5019_v51  ;;  %9549 = vmatmul.mubr.msk.f32.vlgmr.msra.gmra.mxu1 %vm5096_vm2, %v5075_v22  ;;  %9565 = vmatprep.subr.mxu0 %v9799_v0  ;;  %v7648_v51 = vld [vmem:[%s12385_s4 + $0xb0] sm:$0xff]   ;;  %v7605_v5 = vunpack.c.l.bf16 %v7647_v24 }
 0x9ea   :  { %v4952_v61 = vpop.f32.mrf.mxu1  ;;  %9559 = vmatpush3.msra.mxu1 %v7578_v63  ;;  %9562 = vmatprep.mubr.msk.f32.mxu1 %vm9800_vm0, %v9799_v0 }
 0x9eb   :  { %v5076_v37 = vmax.f32 %v5051_v32, 0.0  ;;  %v5020_v4 = vadd.f32 %v4952_v61, %v11997_v11  ;;  %9560 = vmatprep.subr.mxu1 %v9799_v0  ;;  %v7586_v11 = vunpack.c.h.bf16 %v7642_v18  ;;  %v7609_v18 = vunpack.c.l.bf16 %v7648_v51 }
 0x9ec   :  { %v9429_v29 = vpop.f32.mrf.mxu1  ;;  %9561 = vmatpush3.msra.mxu1 %v7577_v59 }
 0x9ed   :  { %v5052_v28 = vadd.f32 %v12125_v38, %v5020_v4  ;;  %9556 = vmatmul.mubr.msk.f32.vlgmr.msra.gmra.mxu0 %vm5096_vm2, %v5076_v37  ;;  %9572 = vmatprep.subr.mxu1 %v9799_v0  ;;  %v7649_v37 = vld [vmem:[%s12385_s4 + $0xb8] sm:$0xff]  }
 0x9ee   :  { %v4957_v25 = vpop.f32.mrf.mxu1  ;;  %9566 = vmatpush3.msra.mxu0 %v7582_v14  ;;  %9569 = vmatprep.mubr.msk.f32.mxu0 %vm9800_vm0, %v9799_v0 }
 0x9ef   :  { %v5077_v12 = vmax.f32 %v5052_v28, 0.0  ;;  %v5021_v20 = vadd.f32 %v4957_v25, %v12000_v36  ;;  %9567 = vmatprep.subr.mxu0 %v9799_v0  ;;  %v7590_v36 = vunpack.c.h.bf16 %v7643_v21 }
 0x9f0   :  { %v9432_v13 = vpop.f32.mrf.mxu1  ;;  %9568 = vmatpush3.msra.mxu0 %v7581_v7 }
 0x9f1   :  { %v5053_v30 = vadd.f32 %v12125_v38, %v5021_v20  ;;  %9563 = vmatmul.mubr.msk.f32.vlgmr.msra.gmra.mxu1 %vm5096_vm2, %v5077_v12  ;;  %9579 = vmatprep.subr.mxu0 %v9799_v0  ;;  %v7613_v20 = vunpack.c.l.bf16 %v7649_v37 }
 0x9f2   :  { %v4962_v2 = vpop.f32.mrf.mxu1  ;;  %9573 = vmatpush3.msra.mxu1 %v7586_v11  ;;  %9576 = vmatprep.mubr.msk.f32.mxu1 %vm9800_vm0, %v9799_v0  ;;  %v7650_v11 = vld [vmem:[%s12385_s4 + $0xc0] sm:$0xff]  }
 0x9f3   :  { %v5078_v23 = vmax.f32 %v5053_v30, 0.0  ;;  %v5022_v34 = vadd.f32 %v4962_v2, %v12003_v45  ;;  %9574 = vmatprep.subr.mxu1 %v9799_v0  ;;  %v7594_v45 = vunpack.c.h.bf16 %v7644_v56 }
 0x9f4   :  { %v9435_v55 = vpop.f32.mrf.mxu1  ;;  %9575 = vmatpush3.msra.mxu1 %v7585_v17 }
 0x9f5   :  { %v5054_v58 = vadd.f32 %v12125_v38, %v5022_v34  ;;  %9570 = vmatmul.mubr.msk.f32.vlgmr.msra.gmra.mxu0 %vm5096_vm2, %v5078_v23  ;;  %9586 = vmatprep.subr.mxu1 %v9799_v0 }
 0x9f6   :  { %v4967_v9 = vpop.f32.mrf.mxu1  ;;  %9580 = vmatpush3.msra.mxu0 %v7590_v36  ;;  %9583 = vmatprep.mubr.msk.f32.mxu0 %vm9800_vm0, %v9799_v0  ;;  %v7617_v36 = vunpack.c.l.bf16 %v7650_v11 }
 0x9f7   :  { %v5079_v41 = vmax.f32 %v5054_v58, 0.0  ;;  %v5023_v26 = vadd.f32 %v4967_v9, %v12006_v48  ;;  %9581 = vmatprep.subr.mxu0 %v9799_v0  ;;  %v7598_v48 = vunpack.c.h.bf16 %v7645_v19  ;;  %v7651_v9 = vld [vmem:[%s12387_s6 + $0x8] sm:$0xff]  }
 0x9f8   :  { %v9438_v27 = vpop.f32.mrf.mxu1  ;;  %9582 = vmatpush3.msra.mxu0 %v7589_v57 }
 0x9f9   :  { %v5055_v53 = vadd.f32 %v12125_v38, %v5023_v26  ;;  %9577 = vmatmul.mubr.msk.f32.vlgmr.msra.gmra.mxu1 %vm5096_vm2, %v5079_v41  ;;  %9593 = vmatprep.subr.mxu0 %v9799_v0 }
 0x9fa   :  { %v4972_v16 = vpop.f32.mrf.mxu1  ;;  %9587 = vmatpush3.msra.mxu1 %v7594_v45  ;;  %9590 = vmatprep.mubr.msk.f32.mxu1 %vm9800_vm0, %v9799_v0  ;;  %v7626_v45 = vunpack.c.h.bf16 %v7651_v9 }
 0x9fb   :  { %v5080_v54 = vmax.f32 %v5055_v53, 0.0  ;;  %v5024_v3 = vadd.f32 %v4972_v16, %v12009_v62  ;;  %9588 = vmatprep.subr.mxu1 %v9799_v0  ;;  %v7602_v62 = vunpack.c.h.bf16 %v7646_v39 }
 0x9fc   :  { %v9441_v40 = vpop.f32.mrf.mxu1  ;;  %9589 = vmatpush3.msra.mxu1 %v7593_v49 }
 0x9fd   :  { %v5056_v50 = vadd.f32 %v12125_v38, %v5024_v3  ;;  %9584 = vmatmul.mubr.msk.f32.vlgmr.msra.gmra.mxu0 %vm5096_vm2, %v5080_v54  ;;  %9600 = vmatprep.subr.mxu1 %v9799_v0 }
 0x9fe   :  { %v4977_v47 = vpop.f32.mrf.mxu1  ;;  %9594 = vmatpush3.msra.mxu0 %v7598_v48  ;;  %9597 = vmatprep.mubr.msk.f32.mxu0 %vm9800_vm0, %v9799_v0 }
 0x9ff   :  { %v5081_v10 = vmax.f32 %v5056_v50, 0.0  ;;  %v5025_v46 = vadd.f32 %v4977_v47, %v12018_v43  ;;  %9595 = vmatprep.subr.mxu0 %v9799_v0  ;;  %v7606_v43 = vunpack.c.h.bf16 %v7647_v24 }
 0xa00   :  { %v9444_v8 = vpop.f32.mrf.mxu1  ;;  %9596 = vmatpush3.msra.mxu0 %v7597_v42 }
 0xa01   :  { %v5057_v60 = vadd.f32 %v12125_v38, %v5025_v46  ;;  %9591 = vmatmul.mubr.msk.f32.vlgmr.msra.gmra.mxu1 %vm5096_vm2, %v5081_v10  ;;  %9607 = vmatprep.subr.mxu0 %v9799_v0 }
 0xa02   :  { %v4982_v52 = vpop.f32.mrf.mxu1  ;;  %9601 = vmatpush3.msra.mxu1 %v7602_v62  ;;  %9604 = vmatprep.mubr.msk.f32.mxu1 %vm9800_vm0, %v9799_v0 }
 0xa03   :  { %v5082_v63 = vmax.f32 %v5057_v60, 0.0  ;;  %v5026_v22 = vadd.f32 %v4982_v52, %v12022_v1  ;;  %9602 = vmatprep.subr.mxu1 %v9799_v0  ;;  %v7610_v1 = vunpack.c.h.bf16 %v7648_v51 }
 0xa04   :  { %v9447_v6 = vpop.f32.mrf.mxu1  ;;  %9603 = vmatpush3.msra.mxu1 %v7601_v44 }
 0xa05   :  { %v5058_v59 = vadd.f32 %v12125_v38, %v5026_v22  ;;  %9598 = vmatmul.mubr.msk.f32.vlgmr.msra.gmra.mxu0 %vm5096_vm2, %v5082_v63  ;;  %9614 = vmatprep.subr.mxu1 %v9799_v0 }
 0xa06   :  { %v4987_v32 = vpop.f32.mrf.mxu1  ;;  %9608 = vmatpush3.msra.mxu0 %v7606_v43  ;;  %9611 = vmatprep.mubr.msk.f32.mxu0 %vm9800_vm0, %v9799_v0 }
 0xa07   :  { %v5083_v61 = vmax.f32 %v5058_v59, 0.0  ;;  %v5027_v14 = vadd.f32 %v4987_v32, %v12025_v31  ;;  %9609 = vmatprep.subr.mxu0 %v9799_v0  ;;  %v7614_v31 = vunpack.c.h.bf16 %v7649_v37 }
 0xa08   :  { %v9450_v4 = vpop.f32.mrf.mxu1  ;;  %9610 = vmatpush3.msra.mxu0 %v7605_v5 }
 0xa09   :  { %v5059_v29 = vadd.f32 %v12125_v38, %v5027_v14  ;;  %9605 = vmatmul.mubr.msk.f32.vlgmr.msra.gmra.mxu1 %vm5096_vm2, %v5083_v61  ;;  %9621 = vmatprep.subr.mxu0 %v9799_v0 }
 0xa0a   :  { %v4992_v7 = vpop.f32.mrf.mxu1  ;;  %9615 = vmatpush3.msra.mxu1 %v7610_v1  ;;  %9618 = vmatprep.mubr.msk.f32.mxu1 %vm9800_vm0, %v9799_v0 }
 0xa0b   :  { %v5084_v28 = vmax.f32 %v5059_v29, 0.0  ;;  %v5028_v25 = vadd.f32 %v4992_v7, %v12028_v35  ;;  %9616 = vmatprep.subr.mxu1 %v9799_v0  ;;  %v7618_v35 = vunpack.c.h.bf16 %v7650_v11 }
 0xa0c   :  { %v9453_v12 = vpop.f32.mrf.mxu1  ;;  %9617 = vmatpush3.msra.mxu1 %v7609_v18 }
 0xa0d   :  { %v5060_v21 = vadd.f32 %v12125_v38, %v5028_v25  ;;  %9612 = vmatmul.mubr.msk.f32.vlgmr.msra.gmra.mxu0 %vm5096_vm2, %v5084_v28  ;;  %9628 = vmatprep.subr.mxu1 %v9799_v0 }
 0xa0e   :  { %v4997_v13 = vpop.f32.mrf.mxu1  ;;  %9622 = vmatpush3.msra.mxu0 %v7614_v31  ;;  %9625 = vmatprep.mubr.msk.f32.mxu0 %vm9800_vm0, %v9799_v0 }
 0xa0f   :  { %v5085_v17 = vmax.f32 %v5060_v21, 0.0  ;;  %v5029_v30 = vadd.f32 %v4997_v13, %v12031_v15  ;;  %9623 = vmatprep.subr.mxu0 %v9799_v0 }
 0xa10   :  { %v9456_v2 = vpop.f32.mrf.mxu1  ;;  %9624 = vmatpush3.msra.mxu0 %v7613_v20 }
 0xa11   :  { %v5061_v23 = vadd.f32 %v12125_v38, %v5029_v30  ;;  %9619 = vmatmul.mubr.msk.f32.vlgmr.msra.gmra.mxu1 %vm5096_vm2, %v5085_v17  ;;  %9635 = vmatprep.subr.mxu0 %v9799_v0 }
 0xa12   :  { %v5002_v34 = vpop.f32.mrf.mxu1  ;;  %9629 = vmatpush3.msra.mxu1 %v7618_v35  ;;  %9632 = vmatprep.mubr.msk.f32.mxu1 %vm9800_vm0, %v9799_v0 }
 0xa13   :  { %v5086_v56 = vmax.f32 %v5061_v23, 0.0  ;;  %v5030_v55 = vadd.f32 %v5002_v34, %v12034_v33  ;;  %9630 = vmatprep.subr.mxu1 %v9799_v0  ;;  %v7625_v33 = vunpack.c.l.bf16 %v7651_v9 }
 0xa14   :  { %v9459_v15 = vpop.f32.mrf.mxu1  ;;  %9631 = vmatpush3.msra.mxu1 %v7617_v36 }
 0xa15   :  { %v5062_v57 = vadd.f32 %v12125_v38, %v5030_v55  ;;  %9626 = vmatmul.mubr.msk.f32.vlgmr.msra.gmra.mxu0 %vm5096_vm2, %v5086_v56  ;;  %v7620_v38 = vld [vmem:[%s12387_s6] sm:$0xff]  }
 0xa16   :  { %9643 = vmatprep.mubr.msk.f32.mxu0 %vm9800_vm0, %v9799_v0  ;;  %9636 = vmatpush3.msra.mxu0 %v7626_v45  ;;  %v7622_v41 = vunpack.c.h.bf16 %v7620_v38  ;;  %v7621_v26 = vunpack.c.l.bf16 %v7620_v38 }
 0xa17   :  { %v5087_v58 = vmax.f32 %v5062_v57, 0.0  ;;  %9637 = vmatprep.subr.mxu0 %v9799_v0 }
 0xa18   :  { %9638 = vmatpush3.msra.mxu0 %v7625_v33 }
 0xa19   :  { %9633 = vmatmul.mubr.msk.f32.vlgmr.msra.gmra.mxu1 %vm5096_vm2, %v5087_v58  ;;  %9639 = vmatprep.subr.mxu0 %v9799_v0 }
 0xa1a   :  { %9640 = vmatpush3.msra.mxu0 %v7622_v41 }
 0xa1b   :  { %9641 = vmatprep.subr.mxu0 %v9799_v0 }
 0xa1c   :  { %9642 = vmatpush3.msra.mxu0 %v7621_v26 }
 0xa79   :  { %v5239_v19 = vpop.f32.mrf.mxu0 }
 0xa7b   :  { %v9473_v27 = vpop.f32.mrf.mxu0 }
 0xa7d   :  { %v5166_v49 = vpop.f32.mrf.mxu1 }
 0xa7e   :  { %v5240_v6 = vadd.f32 %v5239_v19, %v5166_v49 }
 0xa7f   :  { %v9466_v53 = vpop.f32.mrf.mxu1 }
 0xa81   :  { %v5316_v16 = vpop.f32.mrf.mxu1 }
 0xa82   :  { %v5320_v59 = vadd.f32 %v5316_v16, %v5240_v6 }
 0xa83   :  { %v9480_v48 = vpop.f32.mrf.mxu1 }
 0xa85   :  { %v5394_v54 = vpop.f32.mrf.mxu0 }
 0xa86   :  { %v5398_v1 = vadd.f32 %v5394_v54, %v5320_v59 }
 0xa87   :  { %v9487_v3 = vpop.f32.mrf.mxu0 }
 0xa89   :  { %v5472_v39 = vpop.f32.mrf.mxu1 }
 0xa8a   :  { %v5476_v14 = vadd.f32 %v5472_v39, %v5398_v1  ;;  %v7516_v39 = vld [vmem:[%s12388_s5] ss:$0 sm:$0xff] }
 0xa8b   :  { %v9494_v40 = vpop.f32.mrf.mxu1 }
 0xa8d   :  { %v5550_v42 = vpop.f32.mrf.mxu0 }
 0xa8e   :  { %v5554_v4 = vadd.f32 %v5550_v42, %v5476_v14 }
 0xa8f   :  { %v9501_v50 = vpop.f32.mrf.mxu0 }
 0xa91   :  { %v5628_v47 = vpop.f32.mrf.mxu1 }
 0xa92   :  { %v5632_v29 = vadd.f32 %v5628_v47, %v5554_v4 }
 0xa93   :  { %v9508_v62 = vpop.f32.mrf.mxu1 }
 0xa94   :  { %v7517_v62 = vld [vmem:[%s12389_s7] ss:$0 sm:$0xff] }
 0xa95   :  { %v5706_v10 = vpop.f32.mrf.mxu0 }
 0xa96   :  { %v5710_v31 = vadd.f32 %v5706_v10, %v5632_v29 }
 0xa97   :  { %v9515_v46 = vpop.f32.mrf.mxu0 }
 0xa99   :  { %v5784_v24 = vpop.f32.mrf.mxu1 }
 0xa9a   :  { %v5788_v25 = vadd.f32 %v5784_v24, %v5710_v31 }
 0xa9b   :  { %v9522_v8 = vpop.f32.mrf.mxu1 }
 0xa9d   :  { %v5862_v0 = vpop.f32.mrf.mxu0 }
 0xa9e   :  { %v5866_v12 = vadd.f32 %v5862_v0, %v5788_v25 }
 0xa9f   :  { %v9529_v44 = vpop.f32.mrf.mxu0 }
 0xaa1   :  { %v5940_v60 = vpop.f32.mrf.mxu1 }
 0xaa2   :  { %v5944_v21 = vadd.f32 %v5940_v60, %v5866_v12 }
 0xaa3   :  { %v9536_v52 = vpop.f32.mrf.mxu1 }
 0xaa5   :  { %v6018_v43 = vpop.f32.mrf.mxu0 }
 0xaa6   :  { %v6022_v35 = vadd.f32 %v6018_v43, %v5944_v21 }
 0xaa7   :  { %v9543_v63 = vpop.f32.mrf.mxu0 }
 0xaa9   :  { %v6096_v22 = vpop.f32.mrf.mxu1 }
 0xaaa   :  { %v6100_v30 = vadd.f32 %v6096_v22, %v6022_v35 }
 0xaab   :  { %v9550_v51 = vpop.f32.mrf.mxu1 }
 0xaad   :  { %v6174_v5 = vpop.f32.mrf.mxu0 }
 0xaae   :  { %v6178_v36 = vadd.f32 %v6174_v5, %v6100_v30 }
 0xaaf   :  { %v9557_v32 = vpop.f32.mrf.mxu0 }
 0xab1   :  { %v6252_v61 = vpop.f32.mrf.mxu1 }
 0xab2   :  { %v6256_v34 = vadd.f32 %v6252_v61, %v6178_v36 }
 0xab3   :  { %v9564_v37 = vpop.f32.mrf.mxu1 }
 0xab5   :  { %v6330_v18 = vpop.f32.mrf.mxu0 }
 0xab6   :  { %v6334_v55 = vadd.f32 %v6330_v18, %v6256_v34 }
 0xab7   :  { %v9571_v7 = vpop.f32.mrf.mxu0 }
 0xab9   :  { %v6408_v28 = vpop.f32.mrf.mxu1 }
 0xaba   :  { %v6412_v57 = vadd.f32 %v6408_v28, %v6334_v55 }
 0xabb   :  { %v9578_v11 = vpop.f32.mrf.mxu1 }
 0xabd   :  { %v6486_v20 = vpop.f32.mrf.mxu0 }
 0xabe   :  { %v6490_v9 = vadd.f32 %v6486_v20, %v6412_v57 }
 0xabf   :  { %v9585_v13 = vpop.f32.mrf.mxu0 }
 0xac1   :  { %v6564_v17 = vpop.f32.mrf.mxu1 }
 0xac2   :  { %v6568_v33 = vadd.f32 %v6564_v17, %v6490_v9 }
 0xac3   :  { %v9592_v2 = vpop.f32.mrf.mxu1 }
 0xac5   :  { %v6642_v23 = vpop.f32.mrf.mxu0 }
 0xac6   :  { %v6646_v41 = vadd.f32 %v6642_v23, %v6568_v33 }
 0xac7   :  { %v9599_v56 = vpop.f32.mrf.mxu0 }
 0xac9   :  { %v6720_v15 = vpop.f32.mrf.mxu1 }
 0xaca   :  { %v6724_v19 = vadd.f32 %v6720_v15, %v6646_v41 }
 0xacb   :  { %v9606_v58 = vpop.f32.mrf.mxu1 }
 0xacd   :  { %v6798_v45 = vpop.f32.mrf.mxu0 }
 0xace   :  { %v6802_v49 = vadd.f32 %v6798_v45, %v6724_v19 }
 0xacf   :  { %v9613_v38 = vpop.f32.mrf.mxu0 }
 0xad1   :  { %v6876_v26 = vpop.f32.mrf.mxu1 }
 0xad2   :  { %v6880_v16 = vadd.f32 %v6876_v26, %v6802_v49 }
 0xad3   :  { %v9620_v27 = vpop.f32.mrf.mxu1 }
 0xad5   :  { %v6954_v53 = vpop.f32.mrf.mxu0 }
 0xad6   :  { %v6958_v54 = vadd.f32 %v6954_v53, %v6880_v16 }
 0xad7   :  { %v9627_v48 = vpop.f32.mrf.mxu0 }
 0xad9   :  { %v7032_v3 = vpop.f32.mrf.mxu1 }
 0xada   :  { %v7036_v40 = vadd.f32 %v7032_v3, %v6958_v54 }
 0xadb   :  { %v9634_v42 = vpop.f32.mrf.mxu1 }
 0xadc   :  { %v7044_v50 = vadd.f32 %v7516_v39, %v7036_v40 }
 0xade   :  { %v7045_v47 = vmax.f32 %v7044_v50, 0.0 }
 0xae0   :  { %9644 = vmatmul.mubr.msk.f32.vlgmr.msra.gmra.mxu0 %vm7061_vm3, %v7045_v47 }
 0xba0   :  { %v7131_v10 = vpop.f32.mrf.mxu0 }
 0xba1   :  { %v7132_v46 = vadd.f32 %v7517_v62, %v7131_v10 }
 0xba2   :  { %v9645_v24 = vpop.f32.mrf.mxu0 }
 0xba3   :  { %7135 = vst [vmem:[%s12390_s8] sm:$0xff] %v7132_v46 }

</bundles_post_ra>
